<compile_context>
chip_gen: v5e
topology: v5e:2x2
jax: 0.10.0
libtpu: 0.0.40
codegen_flags: <defaults>
</compile_context>

<pallas_src>
import jax
import jax.numpy as jnp
import numpy as np
from jax.experimental import pallas as pl
from jax.experimental.pallas import tpu as pltpu

LEAKY_SLOPE = 0.01  # PyTorch nn.LeakyReLU default negative_slope


def _leaky(h):
    return jnp.where(h > 0, h, LEAKY_SLOPE * h)


# ----------------------------- static layout ---------------------------------
# nn_block (input, hidden, output) widths from the PyTorch constructor.
_SUB_SPECS = (
    (3 * 9 + 10 * 3 + 10 * 3,           128, 2 * 6),   # sub0:  87 -> 12
    (3 * 9 + 10 * 3 + 10 * 3 + 2 * 6,   128, 3 * 6),   # sub1:  99 -> 18
    (3 * 9 + 10 * 3 + 10 * 3 + 5 * 6,   128, 3 * 6),   # sub2: 117 -> 18
    (3 * 9 + 10 * 3 + 10 * 3 + 8 * 6,   128, 6),       # sub3: 135 ->  6
    (5 * 9 + 9 * 3 + 9 * 3 + 9 * 6,     128, 3 * 6),   # sub4: 153 -> 18
    (5 * 9 + 9 * 3 + 9 * 3 + 12 * 6,    128, 3 * 6),   # sub5: 171 -> 18
)
_OUT_W = tuple(s[2] for s in _SUB_SPECS)                # (12, 18, 18, 6, 18, 18)

# activation slab (B, 128): [parms(4) | joints(57) | ori(45) | 0-pad(22)]
_ACT_W = 128
_A_JO = 4            # joints live at act cols 4:61
_A_OR = 61           # ori    lives at act cols 61:106

# packed sub-block weight slab (rows x 768 = 6 blocks * 128 hidden), bf16.
_R_BODY = 0          # rows   0: 64   body-feature   -> layer-1 contribution
_R_ACT = 64          # rows  64:192   act-feature    -> layer-1 contribution
_R_B1 = 192          # row  192       layer-1 biases (block i at cols i*128:(i+1)*128)
_R_X = (200, 216, 240, 264, 272)   # x0..x4 rows -> later blocks' layer-1 contribution
_R_W2 = 296          # rows 296:424   layer-2 weights (block i at cols i*128:i*128+out_i)
_R_B2 = 424          # row  424       layer-2 biases
_SUBW_ROWS = 432
_SUBW_COLS = 6 * 128  # 768

# packed, lane-dense output slab (B, 256):
#   cols 0:90    = cat([x5, x4, x3, x2, x1, x0])
#   cols 128:185 = body (57 valid, zero-padded to 128)
_OUT_SLAB_W = 256
_BODY_COL = 128


# ------------------------------ fused kernel ---------------------------------

def _fused_kernel(act_ref, bm_small_ref, bm_w23_ref, subw_ref, o_ref):
    f32, bf16 = jnp.float32, jnp.bfloat16
    B = act_ref.shape[0]
    act = act_ref[...]                                   # (B, 128) f32

    # ------------------------ bm: gender embed + 3-layer MLP ------------------
    # Layer 1 (6 -> 1024): the two possible gender rows of (embed @ W1[:3] + b1)
    # are precomputed at pack time, so only the tiny prest @ W1[3:6] dot plus a
    # per-row select remains on the critical path.
    idx = act[:, 0:1].astype(jnp.int32)                  # truncation == torch .to(torch.int)
    gh = jnp.where(jnp.broadcast_to(idx == 0, (B, 1024)),
                   jnp.broadcast_to(bm_small_ref[3:4, :], (B, 1024)),
                   jnp.broadcast_to(bm_small_ref[4:5, :], (B, 1024)))
    h = jnp.dot(act[:, 1:4], bm_small_ref[0:3, :], preferred_element_type=f32) + gh
    # TODO(synk): nn.Dropout(0.2) is modeled as identity (eval / inference mode).
    h = _leaky(h)
    h = jnp.dot(h.astype(bf16), bm_w23_ref[:, 0:1024],
                preferred_element_type=f32) + bm_small_ref[5:6, :]
    h = _leaky(h)
    body = jnp.dot(h.astype(bf16), bm_w23_ref[:, 1024:1152],
                   preferred_element_type=f32) + bm_small_ref[6:7, 0:128]
    # body: (B, 128); columns 57..127 are exactly zero by construction.

    # ------------------- kinematic chain via pre-activation accumulator -------
    # hpre[:, i*128:(i+1)*128] is block i's first-layer pre-activation.  The
    # body/joints/ori contribution for all six blocks comes from two aligned
    # dots; each x_j then rank-updates hpre for the later blocks.  No concat
    # buffers, no unaligned VMEM scatter.
    hpre = (jnp.dot(body[:, 0:64].astype(bf16), subw_ref[_R_BODY:_R_BODY + 64, :],
                    preferred_element_type=f32)
            + jnp.dot(act.astype(bf16), subw_ref[_R_ACT:_R_ACT + 128, :],
                      preferred_element_type=f32)
            + subw_ref[_R_B1:_R_B1 + 1, :].astype(f32))              # (B, 768)

    xs = []
    for i in range(6):
        c0 = i * 128
        hi = _leaky(hpre[:, c0:c0 + 128])                            # aligned slice
        yi = (jnp.dot(hi.astype(bf16), subw_ref[_R_W2:_R_W2 + 128, c0:c0 + 128],
                      preferred_element_type=f32)
              + subw_ref[_R_B2:_R_B2 + 1, c0:c0 + 128].astype(f32))  # (B, 128)
        xi = yi[:, 0:_OUT_W[i]]                                      # real output columns
        xs.append(xi)
        if i < 5:                                                    # feed later blocks
            r0 = _R_X[i]
            hpre = hpre + jnp.dot(xi.astype(bf16), subw_ref[r0:r0 + _OUT_W[i], :],
                                  preferred_element_type=f32)

    # ------------------------- lane-dense output assembly ---------------------
    xcat = jnp.concatenate(
        [xs[5], xs[4], xs[3], xs[2], xs[1], xs[0],
         jnp.zeros((B, 128 - sum(_OUT_W)), f32)], axis=1)            # (B, 128)
    o_ref[:, 0:128] = xcat                               # aligned 128-lane store
    o_ref[:, _BODY_COL:_BODY_COL + 128] = body           # aligned 128-lane store


_VMEM_SPEC = pl.BlockSpec(memory_space=pltpu.MemorySpace.VMEM)

_CHAIN_FLOPS_PER_ROW = 2 * (3 * 1024 + 1024 * 1024 + 1024 * 128      # bm
                            + 64 * 768 + 128 * 768                   # chain base
                            + sum(w * 768 for w in _OUT_W[:5])       # x_j rank updates
                            + 6 * 128 * 128)                         # second layers
_WEIGHT_BYTES = (1024 * 1152 + _SUBW_ROWS * _SUBW_COLS) * 2 + 8 * 1024 * 4


def kinect_chain_forward(packed, parms, joints, ori):
    B = parms.shape[0]
    # One (B, 128) activation slab -> a single input DMA instead of three.
    act = jnp.concatenate(
        [parms, joints, ori, jnp.zeros((B, _ACT_W - 106), jnp.float32)], axis=1)
    slab = pl.pallas_call(
        _fused_kernel,
        out_shape=jax.ShapeDtypeStruct((B, _OUT_SLAB_W), jnp.float32),
        in_specs=[_VMEM_SPEC] * 4,
        out_specs=_VMEM_SPEC,
        cost_estimate=pl.CostEstimate(
            flops=_CHAIN_FLOPS_PER_ROW * B,
            transcendentals=0,
            bytes_accessed=_WEIGHT_BYTES + B * (_ACT_W + _OUT_SLAB_W) * 4),
    )(act, packed["bm_small"], packed["bm_w23"], packed["subw"])
    out = slab[:, :sum(_OUT_W)]
    body = slab[:, _BODY_COL:_BODY_COL + 57].reshape(B, 19, 3)
    return out, body


# ---------------- Parameter init (deterministic, PyTorch-style ranges) -------

def _init_linear(key, fan_in, fan_out):
    kw, kb = jax.random.split(key)
    bound = 1.0 / (fan_in ** 0.5)
    w = jax.random.uniform(kw, (fan_in, fan_out), jnp.float32, -bound, bound)
    b = jax.random.uniform(kb, (fan_out,), jnp.float32, -bound, bound)
    return w, b


def init_params(key):
    keys = jax.random.split(key, 10)
    params = {"gender_embed": jax.random.normal(keys[0], (2, 3), jnp.float32)}
    w1, b1 = _init_linear(keys[1], 6, 1024)
    w2, b2 = _init_linear(keys[2], 1024, 1024)
    w3, b3 = _init_linear(keys[3], 1024, 19 * 3)
    params["bm"] = (w1, b1, w2, b2, w3, b3)
    subs = []
    for i, (din, dh, dout) in enumerate(_SUB_SPECS):
        k1, k2 = jax.random.split(keys[4 + i])
        sw1, sb1 = _init_linear(k1, din, dh)
        sw2, sb2 = _init_linear(k2, dh, dout)
        subs.append((sw1, sb1, sw2, sb2))
    params["sub"] = tuple(subs)
    return params


def pack_params(params):
    """Pack the logical params into the four fused-kernel slabs."""
    f32 = np.float32
    w1, b1, w2, b2, w3, b3 = [np.asarray(a, f32) for a in params["bm"]]
    embed = np.asarray(params["gender_embed"], f32)

    # Small f32 slab: bm layer-1 pieces + all bm biases (32 KiB, one DMA).
    bm_small = np.zeros((8, 1024), f32)
    bm_small[0:3] = w1[3:6]                      # prest rows of bm layer-1
    bm_small[3] = embed[0] @ w1[0:3] + b1        # gender-0 row (layer-1 bias folded)
    bm_small[4] = embed[1] @ w1[0:3] + b1        # gender-1 row
    bm_small[5] = b2
    bm_small[6, :57] = b3

    # bm layer-2 | layer-3 weights side by side, bf16 (dominant stream, one DMA).
    bm_w23 = np.zeros((1024, 1152), f32)
    bm_w23[:, 0:1024] = w2
    bm_w23[:, 1024:1081] = w3

    # All six nn_block parameters in one bf16 slab (one DMA, no K=256 padding).
    subw = np.zeros((_SUBW_ROWS, _SUBW_COLS), f32)
    for i, (sw1, sb1, sw2, sb2) in enumerate(params["sub"]):
        sw1, sb1 = np.asarray(sw1, f32), np.asarray(sb1, f32)
        sw2, sb2 = np.asarray(sw2, f32), np.asarray(sb2, f32)
        c0, c1 = i * 128, (i + 1) * 128
        o = _OUT_W[i]
        if i < 4:   # chain A: input = [body[27:57] | joints[27:57] | ori[:27] | x0..]
            subw[_R_BODY + 27:_R_BODY + 57, c0:c1] = sw1[0:30]
            subw[_R_ACT + _A_JO + 27:_R_ACT + _A_JO + 57, c0:c1] = sw1[30:60]
            subw[_R_ACT + _A_OR:_R_ACT + _A_OR + 27, c0:c1] = sw1[60:87]
            off = 87
        else:       # chain B: input = [body[:27] | joints[:27] | ori | x0..]
            subw[_R_BODY:_R_BODY + 27, c0:c1] = sw1[0:27]
            subw[_R_ACT + _A_JO:_R_ACT + _A_JO + 27, c0:c1] = sw1[27:54]
            subw[_R_ACT + _A_OR:_R_ACT + _A_OR + 45, c0:c1] = sw1[54:99]
            off = 99
        subw[_R_B1, c0:c1] = sb1
        for j in range(i):                       # x_j segments of this block's layer-1
            wj = _OUT_W[j]
            subw[_R_X[j]:_R_X[j] + wj, c0:c1] = sw1[off:off + wj]
            off += wj
        assert off == sw1.shape[0]
        subw[_R_W2:_R_W2 + 128, c0:c0 + o] = sw2
        subw[_R_B2, c0:c0 + o] = sb2

    return {
        "bm_small": jnp.asarray(bm_small),
        "bm_w23": jnp.asarray(bm_w23, dtype=jnp.bfloat16),
        "subw": jnp.asarray(subw, dtype=jnp.bfloat16),
    }


# ---------------- Pure-JAX reference (mirrors the kernel's precision) ---------

def ref_forward(params, parms, joints, ori):
    """bm layer-1 in f32; bm layers 2/3 and all nn_blocks use bf16 weights with
    f32 accumulation, matching the packed kernel.  NOTE: this intentionally
    drifts ~1e-2 from a pure-f32 PyTorch run (half the HBM weight stream)."""
    f32, bf16 = jnp.float32, jnp.bfloat16
    w1, b1, w2, b2, w3, b3 = params["bm"]
    gender = params["gender_embed"][parms[:, 0].astype(jnp.int32)]
    body_in = jnp.concatenate([gender, parms[:, 1:]], axis=1)
    h = jnp.dot(body_in, w1, preferred_element_type=f32) + b1
    h = _leaky(h)
    h = jnp.dot(h.astype(bf16), w2.astype(bf16), preferred_element_type=f32) + b2
    h = _leaky(h)
    body = jnp.dot(h.astype(bf16), w3.astype(bf16), preferred_element_type=f32) + b3

    def sub(x, p):
        sw1, sb1, sw2, sb2 = p
        hh = jnp.dot(x.astype(bf16), sw1.astype(bf16), preferred_element_type=f32)
        hh = _leaky(hh + sb1.astype(bf16).astype(f32))
        yy = jnp.dot(hh.astype(bf16), sw2.astype(bf16), preferred_element_type=f32)
        return yy + sb2.astype(bf16).astype(f32)

    xa = jnp.concatenate([body[:, 27:], joints[:, 27:], ori[:, :27]], axis=1)
    x0 = sub(xa, params["sub"][0])
    x1 = sub(jnp.concatenate([xa, x0], 1), params["sub"][1])
    x2 = sub(jnp.concatenate([xa, x0, x1], 1), params["sub"][2])
    x3 = sub(jnp.concatenate([xa, x0, x1, x2], 1), params["sub"][3])
    xb = jnp.concatenate([body[:, :27], joints[:, :27], ori], axis=1)
    x4 = sub(jnp.concatenate([xb, x0, x1, x2, x3], 1), params["sub"][4])
    x5 = sub(jnp.concatenate([xb, x0, x1, x2, x3, x4], 1), params["sub"][5])
    out = jnp.concatenate([x5, x4, x3, x2, x1, x0], 1)
    return out, body.reshape(body.shape[0], 19, 3)


# ---------------- Demo ---------------------------------------------------------

if __name__ == "__main__":
    B = 2
    key = jax.random.PRNGKey(0)
    k_params, k_gender, k_parms, k_joints, k_ori = jax.random.split(key, 5)

    params = init_params(k_params)
    packed = pack_params(params)

    gender_idx = jax.random.randint(k_gender, (B, 1), 0, 2).astype(jnp.float32)
    parms = jnp.concatenate(
        [gender_idx, jax.random.normal(k_parms, (B, 3), jnp.float32)], axis=1)   # (B, 4)
    joints = jax.random.normal(k_joints, (B, 57), jnp.float32)                   # (B, 57)
    ori = jax.random.normal(k_ori, (B, 45), jnp.float32)                         # (B, 45)

    fwd = jax.jit(kinect_chain_forward)
    out, body = fwd(packed, parms, joints, ori)
    jax.block_until_ready((out, body))

    assert out.shape == (B, 90), out.shape
    assert body.shape == (B, 19, 3), body.shape

    ref_out, ref_body = ref_forward(params, parms, joints, ori)
    np.testing.assert_allclose(np.asarray(out), np.asarray(ref_out), rtol=2e-2, atol=2e-2)
    np.testing.assert_allclose(np.asarray(body), np.asarray(ref_body), rtol=2e-2, atol=2e-2)

    print("KERNEL_OK")
</pallas_src>

<mosaic_0001>
module attributes {stable_mosaic.version = 11 : i64} {
  func.func @_fused_kernel(%arg0: memref<2x128xf32, #tpu.memory_space<vmem>>, %arg1: memref<8x1024xf32, #tpu.memory_space<vmem>>, %arg2: memref<1024x1152xbf16, #tpu.memory_space<vmem>>, %arg3: memref<432x768xbf16, #tpu.memory_space<vmem>>, %arg4: memref<2x256xf32, #tpu.memory_space<vmem>>) attributes {dimension_semantics = [], scalar_prefetch = 0 : i64, scratch_operands = 0 : i64, tpu.core_type = #tpu.core_type<tc>} {
    %c0 = arith.constant 0 : index
    %c0_0 = arith.constant 0 : index
    %0 = vector.load %arg0[%c0, %c0_0] : memref<2x128xf32, #tpu.memory_space<vmem>>, vector<2x128xf32>
    %1 = vector.extract_strided_slice %0 {offsets = [0, 0], sizes = [2, 1], strides = [1, 1]} : vector<2x128xf32> to vector<2x1xf32>
    %2 = arith.fptosi %1 : vector<2x1xf32> to vector<2x1xi32>
    %c0_i32 = arith.constant 0 : i32
    %3 = vector.broadcast %c0_i32 : i32 to vector<2x1xi32>
    %4 = arith.cmpi eq, %2, %3 : vector<2x1xi32>
    %5 = vector.shape_cast %4 : vector<2x1xi1> to vector<2x1xi1>
    %6 = vector.broadcast %5 : vector<2x1xi1> to vector<2x1024xi1>
    %c3 = arith.constant 3 : index
    %c0_1 = arith.constant 0 : index
    %7 = vector.load %arg1[%c3, %c0_1] : memref<8x1024xf32, #tpu.memory_space<vmem>>, vector<1x1024xf32>
    %8 = vector.shape_cast %7 : vector<1x1024xf32> to vector<1x1024xf32>
    %9 = vector.broadcast %8 : vector<1x1024xf32> to vector<2x1024xf32>
    %c4 = arith.constant 4 : index
    %c0_2 = arith.constant 0 : index
    %10 = vector.load %arg1[%c4, %c0_2] : memref<8x1024xf32, #tpu.memory_space<vmem>>, vector<1x1024xf32>
    %11 = vector.shape_cast %10 : vector<1x1024xf32> to vector<1x1024xf32>
    %12 = vector.broadcast %11 : vector<1x1024xf32> to vector<2x1024xf32>
    %13 = arith.select %6, %9, %12 : vector<2x1024xi1>, vector<2x1024xf32>
    %14 = vector.extract_strided_slice %0 {offsets = [0, 1], sizes = [2, 3], strides = [1, 1]} : vector<2x128xf32> to vector<2x3xf32>
    %c0_3 = arith.constant 0 : index
    %c0_4 = arith.constant 0 : index
    %15 = vector.load %arg1[%c0_3, %c0_4] : memref<8x1024xf32, #tpu.memory_space<vmem>>, vector<3x1024xf32>
    %cst = arith.constant dense<0.000000e+00> : vector<2x1024xf32>
    %16 = tpu.matmul %14, %15, %cst {dimension_numbers = #tpu.dot_dimension_numbers<[1], [0], [0], [1], [0, 0, 1, 1], [], []>} : vector<2x3xf32>, vector<3x1024xf32>, vector<2x1024xf32> -> vector<2x1024xf32>
    %17 = arith.addf %16, %13 : vector<2x1024xf32>
    %cst_5 = arith.constant 0.000000e+00 : f32
    %18 = vector.broadcast %cst_5 : f32 to vector<2x1024xf32>
    %19 = arith.cmpf ogt, %17, %18 : vector<2x1024xf32>
    %cst_6 = arith.constant 0.00999999977 : f32
    %20 = vector.broadcast %cst_6 : f32 to vector<2x1024xf32>
    %21 = arith.mulf %20, %17 : vector<2x1024xf32>
    %22 = arith.select %19, %17, %21 : vector<2x1024xi1>, vector<2x1024xf32>
    %23 = arith.truncf %22 : vector<2x1024xf32> to vector<2x1024xbf16>
    %c0_7 = arith.constant 0 : index
    %c0_8 = arith.constant 0 : index
    %24 = vector.load %arg2[%c0_7, %c0_8] : memref<1024x1152xbf16, #tpu.memory_space<vmem>>, vector<1024x1024xbf16>
    %cst_9 = arith.constant dense<0.000000e+00> : vector<2x1024xf32>
    %25 = tpu.matmul %23, %24, %cst_9 {dimension_numbers = #tpu.dot_dimension_numbers<[1], [0], [0], [1], [0, 0, 1, 1], [], []>} : vector<2x1024xbf16>, vector<1024x1024xbf16>, vector<2x1024xf32> -> vector<2x1024xf32>
    %c5 = arith.constant 5 : index
    %c0_10 = arith.constant 0 : index
    %26 = vector.load %arg1[%c5, %c0_10] : memref<8x1024xf32, #tpu.memory_space<vmem>>, vector<1x1024xf32>
    %27 = vector.broadcast %26 : vector<1x1024xf32> to vector<2x1024xf32>
    %28 = arith.addf %25, %27 : vector<2x1024xf32>
    %cst_11 = arith.constant 0.000000e+00 : f32
    %29 = vector.broadcast %cst_11 : f32 to vector<2x1024xf32>
    %30 = arith.cmpf ogt, %28, %29 : vector<2x1024xf32>
    %cst_12 = arith.constant 0.00999999977 : f32
    %31 = vector.broadcast %cst_12 : f32 to vector<2x1024xf32>
    %32 = arith.mulf %31, %28 : vector<2x1024xf32>
    %33 = arith.select %30, %28, %32 : vector<2x1024xi1>, vector<2x1024xf32>
    %34 = arith.truncf %33 : vector<2x1024xf32> to vector<2x1024xbf16>
    %c0_13 = arith.constant 0 : index
    %c1024 = arith.constant 1024 : index
    %35 = vector.load %arg2[%c0_13, %c1024] : memref<1024x1152xbf16, #tpu.memory_space<vmem>>, vector<1024x128xbf16>
    %cst_14 = arith.constant dense<0.000000e+00> : vector<2x128xf32>
    %36 = tpu.matmul %34, %35, %cst_14 {dimension_numbers = #tpu.dot_dimension_numbers<[1], [0], [0], [1], [0, 0, 1, 1], [], []>} : vector<2x1024xbf16>, vector<1024x128xbf16>, vector<2x128xf32> -> vector<2x128xf32>
    %c6 = arith.constant 6 : index
    %c0_15 = arith.constant 0 : index
    %37 = vector.load %arg1[%c6, %c0_15] : memref<8x1024xf32, #tpu.memory_space<vmem>>, vector<1x128xf32>
    %38 = vector.broadcast %37 : vector<1x128xf32> to vector<2x128xf32>
    %39 = arith.addf %36, %38 : vector<2x128xf32>
    %40 = vector.extract_strided_slice %39 {offsets = [0, 0], sizes = [2, 64], strides = [1, 1]} : vector<2x128xf32> to vector<2x64xf32>
    %41 = arith.truncf %40 : vector<2x64xf32> to vector<2x64xbf16>
    %c0_16 = arith.constant 0 : index
    %c0_17 = arith.constant 0 : index
    %42 = vector.load %arg3[%c0_16, %c0_17] : memref<432x768xbf16, #tpu.memory_space<vmem>>, vector<64x768xbf16>
    %cst_18 = arith.constant dense<0.000000e+00> : vector<2x768xf32>
    %43 = tpu.matmul %41, %42, %cst_18 {dimension_numbers = #tpu.dot_dimension_numbers<[1], [0], [0], [1], [0, 0, 1, 1], [], []>} : vector<2x64xbf16>, vector<64x768xbf16>, vector<2x768xf32> -> vector<2x768xf32>
    %44 = arith.truncf %0 : vector<2x128xf32> to vector<2x128xbf16>
    %c64 = arith.constant 64 : index
    %c0_19 = arith.constant 0 : index
    %45 = vector.load %arg3[%c64, %c0_19] : memref<432x768xbf16, #tpu.memory_space<vmem>>, vector<128x768xbf16>
    %cst_20 = arith.constant dense<0.000000e+00> : vector<2x768xf32>
    %46 = tpu.matmul %44, %45, %cst_20 {dimension_numbers = #tpu.dot_dimension_numbers<[1], [0], [0], [1], [0, 0, 1, 1], [], []>} : vector<2x128xbf16>, vector<128x768xbf16>, vector<2x768xf32> -> vector<2x768xf32>
    %47 = arith.addf %43, %46 : vector<2x768xf32>
    %c192 = arith.constant 192 : index
    %c0_21 = arith.constant 0 : index
    %48 = vector.load %arg3[%c192, %c0_21] : memref<432x768xbf16, #tpu.memory_space<vmem>>, vector<1x768xbf16>
    %49 = arith.extf %48 : vector<1x768xbf16> to vector<1x768xf32>
    %50 = vector.broadcast %49 : vector<1x768xf32> to vector<2x768xf32>
    %51 = arith.addf %47, %50 : vector<2x768xf32>
    %52 = vector.extract_strided_slice %51 {offsets = [0, 0], sizes = [2, 128], strides = [1, 1]} : vector<2x768xf32> to vector<2x128xf32>
    %cst_22 = arith.constant 0.000000e+00 : f32
    %53 = vector.broadcast %cst_22 : f32 to vector<2x128xf32>
    %54 = arith.cmpf ogt, %52, %53 : vector<2x128xf32>
    %cst_23 = arith.constant 0.00999999977 : f32
    %55 = vector.broadcast %cst_23 : f32 to vector<2x128xf32>
    %56 = arith.mulf %55, %52 : vector<2x128xf32>
    %57 = arith.select %54, %52, %56 : vector<2x128xi1>, vector<2x128xf32>
    %58 = arith.truncf %57 : vector<2x128xf32> to vector<2x128xbf16>
    %c296 = arith.constant 296 : index
    %c0_24 = arith.constant 0 : index
    %59 = vector.load %arg3[%c296, %c0_24] : memref<432x768xbf16, #tpu.memory_space<vmem>>, vector<128x128xbf16>
    %cst_25 = arith.constant dense<0.000000e+00> : vector<2x128xf32>
    %60 = tpu.matmul %58, %59, %cst_25 {dimension_numbers = #tpu.dot_dimension_numbers<[1], [0], [0], [1], [0, 0, 1, 1], [], []>} : vector<2x128xbf16>, vector<128x128xbf16>, vector<2x128xf32> -> vector<2x128xf32>
    %c424 = arith.constant 424 : index
    %c0_26 = arith.constant 0 : index
    %61 = vector.load %arg3[%c424, %c0_26] : memref<432x768xbf16, #tpu.memory_space<vmem>>, vector<1x128xbf16>
    %62 = arith.extf %61 : vector<1x128xbf16> to vector<1x128xf32>
    %63 = vector.broadcast %62 : vector<1x128xf32> to vector<2x128xf32>
    %64 = arith.addf %60, %63 : vector<2x128xf32>
    %65 = vector.extract_strided_slice %64 {offsets = [0, 0], sizes = [2, 12], strides = [1, 1]} : vector<2x128xf32> to vector<2x12xf32>
    %66 = arith.truncf %65 : vector<2x12xf32> to vector<2x12xbf16>
    %c200 = arith.constant 200 : index
    %c0_27 = arith.constant 0 : index
    %67 = vector.load %arg3[%c200, %c0_27] : memref<432x768xbf16, #tpu.memory_space<vmem>>, vector<12x768xbf16>
    %cst_28 = arith.constant dense<0.000000e+00> : vector<2x768xf32>
    %68 = tpu.matmul %66, %67, %cst_28 {dimension_numbers = #tpu.dot_dimension_numbers<[1], [0], [0], [1], [0, 0, 1, 1], [], []>} : vector<2x12xbf16>, vector<12x768xbf16>, vector<2x768xf32> -> vector<2x768xf32>
    %69 = arith.addf %51, %68 : vector<2x768xf32>
    %70 = vector.extract_strided_slice %69 {offsets = [0, 128], sizes = [2, 128], strides = [1, 1]} : vector<2x768xf32> to vector<2x128xf32>
    %cst_29 = arith.constant 0.000000e+00 : f32
    %71 = vector.broadcast %cst_29 : f32 to vector<2x128xf32>
    %72 = arith.cmpf ogt, %70, %71 : vector<2x128xf32>
    %cst_30 = arith.constant 0.00999999977 : f32
    %73 = vector.broadcast %cst_30 : f32 to vector<2x128xf32>
    %74 = arith.mulf %73, %70 : vector<2x128xf32>
    %75 = arith.select %72, %70, %74 : vector<2x128xi1>, vector<2x128xf32>
    %76 = arith.truncf %75 : vector<2x128xf32> to vector<2x128xbf16>
    %c296_31 = arith.constant 296 : index
    %c128 = arith.constant 128 : index
    %77 = vector.load %arg3[%c296_31, %c128] : memref<432x768xbf16, #tpu.memory_space<vmem>>, vector<128x128xbf16>
    %cst_32 = arith.constant dense<0.000000e+00> : vector<2x128xf32>
    %78 = tpu.matmul %76, %77, %cst_32 {dimension_numbers = #tpu.dot_dimension_numbers<[1], [0], [0], [1], [0, 0, 1, 1], [], []>} : vector<2x128xbf16>, vector<128x128xbf16>, vector<2x128xf32> -> vector<2x128xf32>
    %c424_33 = arith.constant 424 : index
    %c128_34 = arith.constant 128 : index
    %79 = vector.load %arg3[%c424_33, %c128_34] : memref<432x768xbf16, #tpu.memory_space<vmem>>, vector<1x128xbf16>
    %80 = arith.extf %79 : vector<1x128xbf16> to vector<1x128xf32>
    %81 = vector.broadcast %80 : vector<1x128xf32> to vector<2x128xf32>
    %82 = arith.addf %78, %81 : vector<2x128xf32>
    %83 = vector.extract_strided_slice %82 {offsets = [0, 0], sizes = [2, 18], strides = [1, 1]} : vector<2x128xf32> to vector<2x18xf32>
    %84 = arith.truncf %83 : vector<2x18xf32> to vector<2x18xbf16>
    %c216 = arith.constant 216 : index
    %c0_35 = arith.constant 0 : index
    %85 = vector.load %arg3[%c216, %c0_35] : memref<432x768xbf16, #tpu.memory_space<vmem>>, vector<18x768xbf16>
    %cst_36 = arith.constant dense<0.000000e+00> : vector<2x768xf32>
    %86 = tpu.matmul %84, %85, %cst_36 {dimension_numbers = #tpu.dot_dimension_numbers<[1], [0], [0], [1], [0, 0, 1, 1], [], []>} : vector<2x18xbf16>, vector<18x768xbf16>, vector<2x768xf32> -> vector<2x768xf32>
    %87 = arith.addf %69, %86 : vector<2x768xf32>
    %88 = vector.extract_strided_slice %87 {offsets = [0, 256], sizes = [2, 128], strides = [1, 1]} : vector<2x768xf32> to vector<2x128xf32>
    %cst_37 = arith.constant 0.000000e+00 : f32
    %89 = vector.broadcast %cst_37 : f32 to vector<2x128xf32>
    %90 = arith.cmpf ogt, %88, %89 : vector<2x128xf32>
    %cst_38 = arith.constant 0.00999999977 : f32
    %91 = vector.broadcast %cst_38 : f32 to vector<2x128xf32>
    %92 = arith.mulf %91, %88 : vector<2x128xf32>
    %93 = arith.select %90, %88, %92 : vector<2x128xi1>, vector<2x128xf32>
    %94 = arith.truncf %93 : vector<2x128xf32> to vector<2x128xbf16>
    %c296_39 = arith.constant 296 : index
    %c256 = arith.constant 256 : index
    %95 = vector.load %arg3[%c296_39, %c256] : memref<432x768xbf16, #tpu.memory_space<vmem>>, vector<128x128xbf16>
    %cst_40 = arith.constant dense<0.000000e+00> : vector<2x128xf32>
    %96 = tpu.matmul %94, %95, %cst_40 {dimension_numbers = #tpu.dot_dimension_numbers<[1], [0], [0], [1], [0, 0, 1, 1], [], []>} : vector<2x128xbf16>, vector<128x128xbf16>, vector<2x128xf32> -> vector<2x128xf32>
    %c424_41 = arith.constant 424 : index
    %c256_42 = arith.constant 256 : index
    %97 = vector.load %arg3[%c424_41, %c256_42] : memref<432x768xbf16, #tpu.memory_space<vmem>>, vector<1x128xbf16>
    %98 = arith.extf %97 : vector<1x128xbf16> to vector<1x128xf32>
    %99 = vector.broadcast %98 : vector<1x128xf32> to vector<2x128xf32>
    %100 = arith.addf %96, %99 : vector<2x128xf32>
    %101 = vector.extract_strided_slice %100 {offsets = [0, 0], sizes = [2, 18], strides = [1, 1]} : vector<2x128xf32> to vector<2x18xf32>
    %102 = arith.truncf %101 : vector<2x18xf32> to vector<2x18xbf16>
    %c240 = arith.constant 240 : index
    %c0_43 = arith.constant 0 : index
    %103 = vector.load %arg3[%c240, %c0_43] : memref<432x768xbf16, #tpu.memory_space<vmem>>, vector<18x768xbf16>
    %cst_44 = arith.constant dense<0.000000e+00> : vector<2x768xf32>
    %104 = tpu.matmul %102, %103, %cst_44 {dimension_numbers = #tpu.dot_dimension_numbers<[1], [0], [0], [1], [0, 0, 1, 1], [], []>} : vector<2x18xbf16>, vector<18x768xbf16>, vector<2x768xf32> -> vector<2x768xf32>
    %105 = arith.addf %87, %104 : vector<2x768xf32>
    %106 = vector.extract_strided_slice %105 {offsets = [0, 384], sizes = [2, 128], strides = [1, 1]} : vector<2x768xf32> to vector<2x128xf32>
    %cst_45 = arith.constant 0.000000e+00 : f32
    %107 = vector.broadcast %cst_45 : f32 to vector<2x128xf32>
    %108 = arith.cmpf ogt, %106, %107 : vector<2x128xf32>
    %cst_46 = arith.constant 0.00999999977 : f32
    %109 = vector.broadcast %cst_46 : f32 to vector<2x128xf32>
    %110 = arith.mulf %109, %106 : vector<2x128xf32>
    %111 = arith.select %108, %106, %110 : vector<2x128xi1>, vector<2x128xf32>
    %112 = arith.truncf %111 : vector<2x128xf32> to vector<2x128xbf16>
    %c296_47 = arith.constant 296 : index
    %c384 = arith.constant 384 : index
    %113 = vector.load %arg3[%c296_47, %c384] : memref<432x768xbf16, #tpu.memory_space<vmem>>, vector<128x128xbf16>
    %cst_48 = arith.constant dense<0.000000e+00> : vector<2x128xf32>
    %114 = tpu.matmul %112, %113, %cst_48 {dimension_numbers = #tpu.dot_dimension_numbers<[1], [0], [0], [1], [0, 0, 1, 1], [], []>} : vector<2x128xbf16>, vector<128x128xbf16>, vector<2x128xf32> -> vector<2x128xf32>
    %c424_49 = arith.constant 424 : index
    %c384_50 = arith.constant 384 : index
    %115 = vector.load %arg3[%c424_49, %c384_50] : memref<432x768xbf16, #tpu.memory_space<vmem>>, vector<1x128xbf16>
    %116 = arith.extf %115 : vector<1x128xbf16> to vector<1x128xf32>
    %117 = vector.broadcast %116 : vector<1x128xf32> to vector<2x128xf32>
    %118 = arith.addf %114, %117 : vector<2x128xf32>
    %119 = vector.extract_strided_slice %118 {offsets = [0, 0], sizes = [2, 6], strides = [1, 1]} : vector<2x128xf32> to vector<2x6xf32>
    %120 = arith.truncf %119 : vector<2x6xf32> to vector<2x6xbf16>
    %c264 = arith.constant 264 : index
    %c0_51 = arith.constant 0 : index
    %121 = vector.load %arg3[%c264, %c0_51] : memref<432x768xbf16, #tpu.memory_space<vmem>>, vector<6x768xbf16>
    %cst_52 = arith.constant dense<0.000000e+00> : vector<2x768xf32>
    %122 = tpu.matmul %120, %121, %cst_52 {dimension_numbers = #tpu.dot_dimension_numbers<[1], [0], [0], [1], [0, 0, 1, 1], [], []>} : vector<2x6xbf16>, vector<6x768xbf16>, vector<2x768xf32> -> vector<2x768xf32>
    %123 = arith.addf %105, %122 : vector<2x768xf32>
    %124 = vector.extract_strided_slice %123 {offsets = [0, 512], sizes = [2, 128], strides = [1, 1]} : vector<2x768xf32> to vector<2x128xf32>
    %cst_53 = arith.constant 0.000000e+00 : f32
    %125 = vector.broadcast %cst_53 : f32 to vector<2x128xf32>
    %126 = arith.cmpf ogt, %124, %125 : vector<2x128xf32>
    %cst_54 = arith.constant 0.00999999977 : f32
    %127 = vector.broadcast %cst_54 : f32 to vector<2x128xf32>
    %128 = arith.mulf %127, %124 : vector<2x128xf32>
    %129 = arith.select %126, %124, %128 : vector<2x128xi1>, vector<2x128xf32>
    %130 = arith.truncf %129 : vector<2x128xf32> to vector<2x128xbf16>
    %c296_55 = arith.constant 296 : index
    %c512 = arith.constant 512 : index
    %131 = vector.load %arg3[%c296_55, %c512] : memref<432x768xbf16, #tpu.memory_space<vmem>>, vector<128x128xbf16>
    %cst_56 = arith.constant dense<0.000000e+00> : vector<2x128xf32>
    %132 = tpu.matmul %130, %131, %cst_56 {dimension_numbers = #tpu.dot_dimension_numbers<[1], [0], [0], [1], [0, 0, 1, 1], [], []>} : vector<2x128xbf16>, vector<128x128xbf16>, vector<2x128xf32> -> vector<2x128xf32>
    %c424_57 = arith.constant 424 : index
    %c512_58 = arith.constant 512 : index
    %133 = vector.load %arg3[%c424_57, %c512_58] : memref<432x768xbf16, #tpu.memory_space<vmem>>, vector<1x128xbf16>
    %134 = arith.extf %133 : vector<1x128xbf16> to vector<1x128xf32>
    %135 = vector.broadcast %134 : vector<1x128xf32> to vector<2x128xf32>
    %136 = arith.addf %132, %135 : vector<2x128xf32>
    %137 = vector.extract_strided_slice %136 {offsets = [0, 0], sizes = [2, 18], strides = [1, 1]} : vector<2x128xf32> to vector<2x18xf32>
    %138 = arith.truncf %137 : vector<2x18xf32> to vector<2x18xbf16>
    %c272 = arith.constant 272 : index
    %c0_59 = arith.constant 0 : index
    %139 = vector.load %arg3[%c272, %c0_59] : memref<432x768xbf16, #tpu.memory_space<vmem>>, vector<18x768xbf16>
    %cst_60 = arith.constant dense<0.000000e+00> : vector<2x768xf32>
    %140 = tpu.matmul %138, %139, %cst_60 {dimension_numbers = #tpu.dot_dimension_numbers<[1], [0], [0], [1], [0, 0, 1, 1], [], []>} : vector<2x18xbf16>, vector<18x768xbf16>, vector<2x768xf32> -> vector<2x768xf32>
    %141 = arith.addf %123, %140 : vector<2x768xf32>
    %142 = vector.extract_strided_slice %141 {offsets = [0, 640], sizes = [2, 128], strides = [1, 1]} : vector<2x768xf32> to vector<2x128xf32>
    %cst_61 = arith.constant 0.000000e+00 : f32
    %143 = vector.broadcast %cst_61 : f32 to vector<2x128xf32>
    %144 = arith.cmpf ogt, %142, %143 : vector<2x128xf32>
    %cst_62 = arith.constant 0.00999999977 : f32
    %145 = vector.broadcast %cst_62 : f32 to vector<2x128xf32>
    %146 = arith.mulf %145, %142 : vector<2x128xf32>
    %147 = arith.select %144, %142, %146 : vector<2x128xi1>, vector<2x128xf32>
    %148 = arith.truncf %147 : vector<2x128xf32> to vector<2x128xbf16>
    %c296_63 = arith.constant 296 : index
    %c640 = arith.constant 640 : index
    %149 = vector.load %arg3[%c296_63, %c640] : memref<432x768xbf16, #tpu.memory_space<vmem>>, vector<128x128xbf16>
    %cst_64 = arith.constant dense<0.000000e+00> : vector<2x128xf32>
    %150 = tpu.matmul %148, %149, %cst_64 {dimension_numbers = #tpu.dot_dimension_numbers<[1], [0], [0], [1], [0, 0, 1, 1], [], []>} : vector<2x128xbf16>, vector<128x128xbf16>, vector<2x128xf32> -> vector<2x128xf32>
    %c424_65 = arith.constant 424 : index
    %c640_66 = arith.constant 640 : index
    %151 = vector.load %arg3[%c424_65, %c640_66] : memref<432x768xbf16, #tpu.memory_space<vmem>>, vector<1x128xbf16>
    %152 = arith.extf %151 : vector<1x128xbf16> to vector<1x128xf32>
    %153 = vector.broadcast %152 : vector<1x128xf32> to vector<2x128xf32>
    %154 = arith.addf %150, %153 : vector<2x128xf32>
    %155 = vector.extract_strided_slice %154 {offsets = [0, 0], sizes = [2, 18], strides = [1, 1]} : vector<2x128xf32> to vector<2x18xf32>
    %cst_67 = arith.constant 0.000000e+00 : f32
    %156 = vector.broadcast %cst_67 : f32 to vector<2x38xf32>
    %157 = tpu.concatenate %155, %137, %119, %101, %83, %65, %156 in 1 : vector<2x18xf32>, vector<2x18xf32>, vector<2x6xf32>, vector<2x18xf32>, vector<2x18xf32>, vector<2x12xf32>, vector<2x38xf32> -> vector<2x128xf32>
    %c0_68 = arith.constant 0 : index
    %c0_69 = arith.constant 0 : index
    %158 = vector.load %arg4[%c0_68, %c0_69] : memref<2x256xf32, #tpu.memory_space<vmem>>, vector<2x128xf32>
    tpu.vector_store %arg4[%c0_68, %c0_69], %157 {strides = array<i32>} : memref<2x256xf32, #tpu.memory_space<vmem>>, vector<2x128xf32>,
    %c0_70 = arith.constant 0 : index
    %c128_71 = arith.constant 128 : index
    %159 = vector.load %arg4[%c0_70, %c128_71] : memref<2x256xf32, #tpu.memory_space<vmem>>, vector<2x128xf32>
    tpu.vector_store %arg4[%c0_70, %c128_71], %39 {strides = array<i32>} : memref<2x256xf32, #tpu.memory_space<vmem>>, vector<2x128xf32>,
    return
  }
}

</mosaic_0001>

<bundles_post_ra>
// kernel: kinect_chain_forward.1
= control target key start
LH: loop header
LB: loop body
LE: loop exit
PB: predicated region body
PF: predicated region fallthrough
CT: control target
= control target key end

     0   :  { %9 = vsyncpa [#allocation3], 0  ;;  %s10547_s0 = inlined_call_operand.vmem [shape: f32[2,128], index: 0, kind: input, shape index: {}]   ;;  %s10548_s1 = inlined_call_operand.hbm [shape: f32[8,1024], index: 1, kind: input, shape index: {}]   ;;  %s10549_s2 = inlined_call_operand.hbm [shape: bf16[1024,1152], index: 2, kind: input, shape index: {}]   ;;  %s10550_s3 = inlined_call_operand.hbm [shape: bf16[432,768], index: 3, kind: input, shape index: {}]   ;;  %s10551_s4 = inlined_call_operand.vmem [shape: f32[2,256], index: 4, kind: output, shape index: {}]  }
   0x1   :  { %10 = vsyncpa [#allocation5], 0  ;;  %s28_s17 = sshll.u32 %s10549_s2, 4  ;;  %s10153_s18 = smov [#allocation4]   ;;  %s29_s17 = int_to_ptr.hbm [resolvable:$true] %s28_s17 }
   0x2   :  { %s30_s19 = sshll.u32 %s10153_s18, 4  ;;  %s18_s22 = sshll.u32 %s10548_s1, 4  ;;  %s31_s19 = int_to_ptr.vmem [resolvable:$true] %s30_s19  ;;  %s19_s22 = int_to_ptr.hbm [resolvable:$true] %s18_s22 }
   0x3   :  { %s10154_s23 = smov 576   ;;  %s10155_s24 = smov 36  }
   0x4   :  { %36 = dma.hbm_to_vmem [thread:$0]  %s29_s17, 73728, %s31_s19, [#allocation5], %s10154_s23, %s10154_s23, %s10155_s24  }
   0x5   :  { %s10156_s25 = smov [#allocation2]   ;;  %s41_s29 = sshll.u32 %s10550_s3, 4  ;;  %s42_s29 = int_to_ptr.hbm [resolvable:$true] %s41_s29 }
   0x6   :  { %s20_s26 = sshll.u32 %s10156_s25, 4  ;;  %s10157_s2 = smov [#allocation6]   ;;  %s21_s26 = int_to_ptr.vmem [resolvable:$true] %s20_s26 }
   0x7   :  { %23 = dma.hbm_to_vmem [thread:$0]  %s19_s22, 1024, %s21_s26, [#allocation3]  }
   0x8   :  { %s43_s30 = sshll.u32 %s10157_s2, 4  ;;  %s10158_s5 = smov 384   ;;  %s44_s30 = int_to_ptr.vmem [resolvable:$true] %s43_s30 }
   0x9   :  { %s10159_s6 = smov 24  }
   0xa   :  { %49 = dma.hbm_to_vmem [thread:$0]  %s42_s29, 20736, %s44_s30, [#allocation5], %s10158_s5, %s10158_s5, %s10159_s6  }
   0xb   :  { %10149 = dma.done.wait [#allocation3], 1024  }
   0xc   :  { %10150 = vsyncadd [#allocation3], 4294966272 }
   0xd   :  { %10151 = dma.done.wait [#allocation5], 94464  }
   0xe   :  { %10152 = vsyncadd [#allocation5], 4294872832  ;;  %vm135_vm0 = vcmask 1042432   ;;  %v63_v0 = vld [vmem:[%s10547_s0] sm:$0x3]  ;;  %s10160_s3 = smov 127  }
   0xf   :  { %v121_v1 = vld [vmem:[#allocation2] sm:$0x7]  ;;  %v122_v2 = vld [vmem:[#allocation2 + $0x8] sm:$0x7]  ;;  %130 = vrot.lane.b32.xlu0 %v63_v0, %s10160_s3  ;;  %v124_v3 = vld [vmem:[#allocation2 + $0x18] sm:$0x7]  ;;  %v10058_v8 = vceil.f32 %v63_v0  ;;  %v10059_v9 = vfloor.f32 %v63_v0 }
  0x10   :  { %6475 = vmatpush.msk.msra.mxu0 %vm135_vm0, %v121_v1  ;;  %v127_v4 = vld [vmem:[#allocation2 + $0x30] sm:$0x7]  ;;  %6477 = vmatpush.msk.msra.mxu1 %vm135_vm0, %v122_v2  ;;  %v126_v6 = vld [vmem:[#allocation2 + $0x28] sm:$0x7]  ;;  %v128_v7 = vld [vmem:[#allocation2 + $0x38] sm:$0x7] }
  0x11   :  { %6481 = vmatpush.msk.msra.mxu3 %vm135_vm0, %v124_v3  ;;  %6487 = vmatpush.msk.msra.mxu2 %vm135_vm0, %v127_v4  ;;  %v123_v5 = vld [vmem:[#allocation2 + $0x10] sm:$0x7]  ;;  %vm10057_vm1 = vcmp.lt.s32.totalorder %v63_v0, 0  ;;  %v10161_v10 = vmov 0   ;;  %v7229_v14 = vld [vmem:[#allocation4 + $0x678] sm:$0xf] }
  0x12   :  { %6479 = vmatpush.msk.msrb.mxu0 %vm135_vm0, %v123_v5  ;;  %6485 = vmatpush.msk.msrb.mxu1 %vm135_vm0, %v126_v6  ;;  %v10060_v11 = vsel %vm10057_vm1, %v10058_v8, %v10059_v9  ;;  %v9536_v15 = vld [vmem:[#allocation4 + $0x698] sm:$0xf0]  ;;  %v7197_v17 = vld [vmem:[#allocation4 + $0x630] sm:$0xf]  ;;  %v9528_v18 = vld [vmem:[#allocation4 + $0x650] sm:$0xf0] }
  0x13   :  { %6489 = vmatpush.msk.msrb.mxu3 %vm135_vm0, %v128_v7  ;;  %10075 = vset.pattern.permute.xlu0 %v10161_v10  ;;  %v10061_v12 = vcvt.f32.s32 %v10060_v11  ;;  %v7230_v16 = vor.u32 %v9536_v15, %v7229_v14  ;;  %v7198_v19 = vor.u32 %v9528_v18, %v7197_v17  ;;  %v6973_v20 = vld [vmem:[#allocation4 + $0x438] sm:$0xf]  ;;  %v9472_v21 = vld [vmem:[#allocation4 + $0x458] sm:$0xf0]  ;;  %v7165_v24 = vld [vmem:[#allocation4 + $0x5e8] sm:$0xf] }
  0x14   :  { %v7485_v22 = vld [vmem:[#allocation4 + $0x8b8] sm:$0xf]  ;;  %v9600_v23 = vld [vmem:[#allocation4 + $0x8d8] sm:$0xf0]  ;;  %v9520_v25 = vld [vmem:[#allocation4 + $0x608] sm:$0xf0]  ;;  %v6974_v27 = vor.u32 %v9472_v21, %v6973_v20 }
  0x15   :  { %vm65_vm2 = vcmp.eq.s32.totalorder %v10061_v12, 0  ;;  %3471 = vmatpush.bf16.msrb.mxu2 %v7230_v16  ;;  %vm132_vm3 = vcmask 23552   ;;  %v125_v26 = vld [vmem:[#allocation2 + $0x20] sm:$0x7]  ;;  %v6941_v29 = vld [vmem:[#allocation4 + $0x3f0] sm:$0xf]  ;;  %v7486_v31 = vor.u32 %v9600_v23, %v7485_v22  ;;  %v7166_v33 = vor.u32 %v9520_v25, %v7165_v24 }
  0x16   :  { %v66_v13 = vsel %vm65_vm2, 1, %v10161_v10  ;;  %v9464_v30 = vld [vmem:[#allocation4 + $0x410] sm:$0xf0]  ;;  %v7453_v32 = vld [vmem:[#allocation4 + $0x870] sm:$0xf]  ;;  %s10162_s11 = smov 42  }
  0x17   :  { %68 = vperm.xlu0 %10075, %v66_v13   ;;  %v9592_v34 = vld [vmem:[#allocation4 + $0x890] sm:$0xf0]  ;;  %v7133_v35 = vld [vmem:[#allocation4 + $0x5a0] sm:$0xf]  ;;  %v9512_v36 = vld [vmem:[#allocation4 + $0x5c0] sm:$0xf0]  ;;  %v6942_v39 = vor.u32 %v9464_v30, %v6941_v29 }
  0x18   :  { %v6717_v37 = vld [vmem:[#allocation4 + $0x1f8] sm:$0xf]  ;;  %v9408_v38 = vld [vmem:[#allocation4 + $0x218] sm:$0xf0]  ;;  %v6909_v40 = vld [vmem:[#allocation4 + $0x3a8] sm:$0xf]  ;;  %v7454_v42 = vor.u32 %v9592_v34, %v7453_v32  ;;  %v7134_v44 = vor.u32 %v9512_v36, %v7133_v35 }
  0x19   :  { %3472 = vmatpush.bf16.msrb.mxu2 %v7198_v19  ;;  %v9456_v41 = vld [vmem:[#allocation4 + $0x3c8] sm:$0xf0]  ;;  %v7421_v43 = vld [vmem:[#allocation4 + $0x828] sm:$0xf]  ;;  %v7101_v46 = vld [vmem:[#allocation4 + $0x558] sm:$0xf]  ;;  %v6718_v48 = vor.u32 %v9408_v38, %v6717_v37 }
  0x1a   :  { %v9584_v45 = vld [vmem:[#allocation4 + $0x848] sm:$0xf0]  ;;  %v9504_v47 = vld [vmem:[#allocation4 + $0x578] sm:$0xf0]  ;;  %v6685_v49 = vld [vmem:[#allocation4 + $0x1b0] sm:$0xf]  ;;  %v6910_v51 = vor.u32 %v9456_v41, %v6909_v40 }
  0x1b   :  { %v9400_v50 = vld [vmem:[#allocation4 + $0x1d0] sm:$0xf0]  ;;  %v6877_v52 = vld [vmem:[#allocation4 + $0x360] sm:$0xf]  ;;  %v9448_v53 = vld [vmem:[#allocation4 + $0x380] sm:$0xf0]  ;;  %v7422_v54 = vor.u32 %v9584_v45, %v7421_v43  ;;  %v7102_v56 = vor.u32 %v9504_v47, %v7101_v46 }
  0x1c   :  { %v7389_v55 = vld [vmem:[#allocation4 + $0x7e0] sm:$0xf]  ;;  %v9576_v57 = vld [vmem:[#allocation4 + $0x800] sm:$0xf0]  ;;  %v7069_v58 = vld [vmem:[#allocation4 + $0x510] sm:$0xf]  ;;  %v6686_v60 = vor.u32 %v9400_v50, %v6685_v49  ;;  %v6878_v63 = vor.u32 %v9448_v53, %v6877_v52 }
  0x1d   :  { %3473 = vmatpush.bf16.msrb.mxu2 %v7166_v33  ;;  %v9496_v59 = vld [vmem:[#allocation4 + $0x530] sm:$0xf0]  ;;  %v6653_v61 = vld [vmem:[#allocation4 + $0x168] sm:$0xf]  ;;  %v9392_v62 = vld [vmem:[#allocation4 + $0x188] sm:$0xf0]  ;;  %v7390_v2 = vor.u32 %v9576_v57, %v7389_v55 }
  0x1e   :  { %v6845_v0 = vld [vmem:[#allocation4 + $0x318] sm:$0xf]  ;;  %v9440_v1 = vld [vmem:[#allocation4 + $0x338] sm:$0xf0]  ;;  %v7070_v4 = vor.u32 %v9496_v59, %v7069_v58  ;;  %v7037_v6 = vld [vmem:[#allocation4 + $0x4c8] sm:$0xf]  ;;  %v6654_v8 = vor.u32 %v9392_v62, %v6653_v61 }
  0x1f   :  { %v7357_v3 = vld [vmem:[#allocation4 + $0x798] sm:$0xf]  ;;  %v9568_v5 = vld [vmem:[#allocation4 + $0x7b8] sm:$0xf0]  ;;  %v9488_v7 = vld [vmem:[#allocation4 + $0x4e8] sm:$0xf0]  ;;  %v6846_v11 = vor.u32 %v9440_v1, %v6845_v0 }
  0x20   :  { %v6621_v9 = vld [vmem:[#allocation4 + $0x120] sm:$0xf]  ;;  %v9384_v10 = vld [vmem:[#allocation4 + $0x140] sm:$0xf0]  ;;  %v6813_v12 = vld [vmem:[#allocation4 + $0x2d0] sm:$0xf]  ;;  %v7358_v14 = vor.u32 %v9568_v5, %v7357_v3  ;;  %v7038_v16 = vor.u32 %v9488_v7, %v7037_v6 }
  0x21   :  { %3474 = vmatpush.bf16.msrb.mxu2 %v7134_v44  ;;  %v9432_v13 = vld [vmem:[#allocation4 + $0x2f0] sm:$0xf0]  ;;  %v7325_v15 = vld [vmem:[#allocation4 + $0x750] sm:$0xf]  ;;  %v7005_v18 = vld [vmem:[#allocation4 + $0x480] sm:$0xf]  ;;  %v6622_v20 = vor.u32 %v9384_v10, %v6621_v9 }
  0x22   :  { %v9560_v17 = vld [vmem:[#allocation4 + $0x770] sm:$0xf0]  ;;  %v9480_v19 = vld [vmem:[#allocation4 + $0x4a0] sm:$0xf0]  ;;  %v8253_v21 = vld [vmem:[#allocation4 + $0xf78] sm:$0xf]  ;;  %v6814_v25 = vor.u32 %v9432_v13, %v6813_v12 }
  0x23   :  { %v9792_v22 = vld [vmem:[#allocation4 + $0xf98] sm:$0xf0]  ;;  %v6589_v23 = vld [vmem:[#allocation4 + $0xd8] sm:$0xf]  ;;  %v7326_v29 = vor.u32 %v9560_v17, %v7325_v15  ;;  %v7006_v30 = vor.u32 %v9480_v19, %v7005_v18  ;;  %v9552_v32 = vld [vmem:[#allocation4 + $0x728] sm:$0xf0] }
  0x24   :  { %v9376_v24 = vld [vmem:[#allocation4 + $0xf8] sm:$0xf0]  ;;  %v8221_v34 = vld [vmem:[#allocation4 + $0xf30] sm:$0xf]  ;;  %v9784_v35 = vld [vmem:[#allocation4 + $0xf50] sm:$0xf0] }
  0x25   :  { %3475 = vmatpush.bf16.msrb.mxu2 %v7102_v56  ;;  %v6590_v33 = vor.u32 %v9376_v24, %v6589_v23  ;;  %v6557_v36 = vld [vmem:[#allocation4 + $0x90] sm:$0xf]  ;;  %v9368_v37 = vld [vmem:[#allocation4 + $0xb0] sm:$0xf0]  ;;  %v9416_v40 = vld [vmem:[#allocation4 + $0x260] sm:$0xf0]  ;;  %v8222_v47 = vor.u32 %v9784_v35, %v8221_v34 }
  0x26   :  { %v7997_v41 = vld [vmem:[#allocation4 + $0xd38] sm:$0xf]  ;;  %v7261_v44 = vld [vmem:[#allocation4 + $0x6c0] sm:$0xf]  ;;  %v9544_v45 = vld [vmem:[#allocation4 + $0x6e0] sm:$0xf0] }
  0x27   :  { %v8509_v46 = vld [vmem:[#allocation4 + $0x11b8] sm:$0xf]  ;;  %v9856_v49 = vld [vmem:[#allocation4 + $0x11d8] sm:$0xf0]  ;;  %v8189_v50 = vld [vmem:[#allocation4 + $0xee8] sm:$0xf]  ;;  %v7262_v56 = vor.u32 %v9544_v45, %v7261_v44 }
  0x28   :  { %v6525_v52 = vld [vmem:[#allocation4 + $0x48] sm:$0xf]  ;;  %v9360_v53 = vld [vmem:[#allocation4 + $0x68] sm:$0xf0]  ;;  %v7965_v57 = vld [vmem:[#allocation4 + $0xcf0] sm:$0xf]  ;;  %v8510_v59 = vor.u32 %v9856_v49, %v8509_v46 }
  0x29   :  { %3476 = vmatpush.bf16.msrb.mxu2 %v7070_v4  ;;  %v9720_v58 = vld [vmem:[#allocation4 + $0xd10] sm:$0xf0]  ;;  %v6526_v61 = vor.u32 %v9360_v53, %v6525_v52  ;;  %v8477_v62 = vld [vmem:[#allocation4 + $0x1170] sm:$0xf]  ;;  %v6493_v0 = vld [vmem:[#allocation4] sm:$0xf] }
  0x2a   :  { %v9352_v1 = vld [vmem:[#allocation4 + $0x20] sm:$0xf0]  ;;  %v9664_v3 = vld [vmem:[#allocation4 + $0xb18] sm:$0xf0]  ;;  %v7966_v4 = vor.u32 %v9720_v58, %v7965_v57  ;;  %v7933_v5 = vld [vmem:[#allocation4 + $0xca8] sm:$0xf] }
  0x2b   :  { %v9712_v6 = vld [vmem:[#allocation4 + $0xcc8] sm:$0xf0]  ;;  %v8445_v9 = vld [vmem:[#allocation4 + $0x1128] sm:$0xf]  ;;  %v7709_v12 = vld [vmem:[#allocation4 + $0xab0] sm:$0xf] }
  0x2c   :  { %v9840_v10 = vld [vmem:[#allocation4 + $0x1148] sm:$0xf0]  ;;  %v9656_v13 = vld [vmem:[#allocation4 + $0xad0] sm:$0xf0]  ;;  %v7901_v15 = vld [vmem:[#allocation4 + $0xc60] sm:$0xf] }
  0x2d   :  { %3477 = vmatpush.bf16.msrb.mxu2 %v7038_v16  ;;  %v9704_v16 = vld [vmem:[#allocation4 + $0xc80] sm:$0xf0]  ;;  %v8446_v17 = vor.u32 %v9840_v10, %v8445_v9  ;;  %v8413_v18 = vld [vmem:[#allocation4 + $0x10e0] sm:$0xf]  ;;  %v7869_v24 = vld [vmem:[#allocation4 + $0xc18] sm:$0xf] }
  0x2e   :  { %v9832_v19 = vld [vmem:[#allocation4 + $0x1100] sm:$0xf0]  ;;  %v7902_v23 = vor.u32 %v9704_v16, %v7901_v15  ;;  %v7581_v35 = vld [vmem:[#allocation4 + $0x990] sm:$0xf]  ;;  %v8381_v44 = vld [vmem:[#allocation4 + $0x1098] sm:$0xf] }
  0x2f   :  { %v9824_v45 = vld [vmem:[#allocation4 + $0x10b8] sm:$0xf0]  ;;  %v7805_v49 = vld [vmem:[#allocation4 + $0xb88] sm:$0xf]  ;;  %v8125_v52 = vld [vmem:[#allocation4 + $0xe58] sm:$0xf] }
  0x30   :  { %v8382_v46 = vor.u32 %v9824_v45, %v8381_v44  ;;  %v9760_v53 = vld [vmem:[#allocation4 + $0xe78] sm:$0xf0]  ;;  %v9816_v57 = vld [vmem:[#allocation4 + $0x1070] sm:$0xf0]  ;;  %v8285_v10 = vld [vmem:[#allocation4 + $0xfc0] sm:$0xf] }
  0x31   :  { %3478 = vmatpush.bf16.msrb.mxu2 %v7006_v30  ;;  %v9640_v30 = vld [vmem:[#allocation4 + $0xa40] sm:$0xf0]  ;;  %v72_v16 = vld [vmem:[#allocation2 + $0x3] ss:$8 sm:$0xf]  ;;  %s10163_s12 = smov 60  }
  0x32   :  { %s10164_s13 = smov 18   ;;  %s10165_s14 = smov 78  }
  0x81   :  { %v10211_v28 = vpop.permute.xlu0 %130 }
  0x82   :  { %6476 = vmatmul.msk.f32.vlgmr.msra.gmra.mxu0 %vm132_vm3, %v10211_v28  ;;  %6478 = vmatmul.msk.f32.vlgmr.msra.gmra.mxu1 %vm132_vm3, %v10211_v28 }
  0x83   :  { %6482 = vmatmul.msk.f32.vlgmr.msra.gmra.mxu3 %vm132_vm3, %v10211_v28  ;;  %6488 = vmatmul.msk.f32.vlgmr.msra.gmra.mxu2 %vm132_vm3, %v10211_v28 }
  0x84   :  { %6483 = vmatpush.msk.msra.mxu0 %vm135_vm0, %v125_v26  ;;  %3458 = vmatpush.bf16.msra.mxu1 %v6974_v27  ;;  %v6781_v26 = vld [vmem:[#allocation4 + $0x288] sm:$0xf]  ;;  %v9424_v27 = vld [vmem:[#allocation4 + $0x2a8] sm:$0xf0] }
  0x85   :  { %3484 = vmatpush.bf16.msra.mxu3 %v7486_v31  ;;  %v7293_v31 = vld [vmem:[#allocation4 + $0x708] sm:$0xf]  ;;  %v6782_v38 = vor.u32 %v9424_v27, %v6781_v26  ;;  %v8414_v26 = vor.u32 %v9832_v19, %v8413_v18  ;;  %v93_v18 = vld [vmem:[#allocation2 + $0x4] ss:$8 sm:$0xf] }
  0x86   :  { %v7294_v43 = vor.u32 %v9552_v32, %v7293_v31  ;;  %v94_v19 = vld [vmem:[#allocation2 + $0x4] ss:$8 sm:$0xf0] }
  0x88   :  { %3459 = vmatpush.bf16.msra.mxu1 %v6942_v39  ;;  %v6749_v39 = vld [vmem:[#allocation4 + $0x240] sm:$0xf] }
  0x89   :  { %3485 = vmatpush.bf16.msra.mxu3 %v7454_v42  ;;  %v9728_v42 = vld [vmem:[#allocation4 + $0xd58] sm:$0xf0] }
  0x8a   :  { %6480 = vmatmul.msk.f32.vlgmr.msrb.gmra.mxu0 %vm132_vm3, %v10211_v28  ;;  %6486 = vmatmul.msk.f32.vlgmr.msrb.gmra.mxu1 %vm132_vm3, %v10211_v28  ;;  %v7998_v55 = vor.u32 %v9728_v42, %v7997_v41  ;;  %v9768_v41 = vld [vmem:[#allocation4 + $0xec0] sm:$0xf0] }
  0x8b   :  { %6490 = vmatmul.msk.f32.vlgmr.msrb.gmra.mxu3 %vm132_vm3, %v10211_v28  ;;  %3445 = vmatpush.bf16.msrb.mxu0 %v6718_v48  ;;  %v6558_v48 = vor.u32 %v9368_v37, %v6557_v36  ;;  %v9624_v36 = vld [vmem:[#allocation4 + $0x9b0] sm:$0xf0]  ;;  %v7837_v37 = vld [vmem:[#allocation4 + $0xbd0] sm:$0xf] }
  0x8c   :  { %3460 = vmatpush.bf16.msra.mxu1 %v6910_v51  ;;  %v9776_v51 = vld [vmem:[#allocation4 + $0xf08] sm:$0xf0] }
  0x8d   :  { %3486 = vmatpush.bf16.msra.mxu3 %v7422_v54  ;;  %v6750_v54 = vor.u32 %v9416_v40, %v6749_v39  ;;  %v9688_v39 = vld [vmem:[#allocation4 + $0xbf0] sm:$0xf0]  ;;  %v8157_v40 = vld [vmem:[#allocation4 + $0xea0] sm:$0xf] }
  0x8e   :  { %v7838_v42 = vor.u32 %v9688_v39, %v7837_v37  ;;  %v9404_v37 = vld [vmem:[#allocation4 + $0x1fc] sm:$0xf] }
  0x8f   :  { %3446 = vmatpush.bf16.msrb.mxu0 %v6686_v60  ;;  %v8190_v60 = vor.u32 %v9776_v51, %v8189_v50  ;;  %v9680_v51 = vld [vmem:[#allocation4 + $0xba8] sm:$0xf0]  ;;  %v9468_v39 = vld [vmem:[#allocation4 + $0x43c] sm:$0xf] }
  0x90   :  { %3461 = vmatpush.bf16.msra.mxu1 %v6878_v63  ;;  %v9848_v63 = vld [vmem:[#allocation4 + $0x1190] sm:$0xf0] }
  0x91   :  { %3487 = vmatpush.bf16.msra.mxu3 %v7390_v2  ;;  %v7741_v2 = vld [vmem:[#allocation4 + $0xaf8] sm:$0xf]  ;;  %v8478_v7 = vor.u32 %v9848_v63, %v8477_v62  ;;  %v9672_v62 = vld [vmem:[#allocation4 + $0xb60] sm:$0xf0] }
  0x92   :  { %6484 = vmatmul.msk.f32.vlgmr.msra.gmra.mxu0 %vm132_vm3, %v10211_v28  ;;  %v8254_v28 = vor.u32 %v9792_v22, %v8253_v21  ;;  %v7677_v21 = vld [vmem:[#allocation4 + $0xa68] sm:$0xf]  ;;  %v9648_v22 = vld [vmem:[#allocation4 + $0xa88] sm:$0xf0] }
  0x93   :  { %3447 = vmatpush.bf16.msrb.mxu0 %v6654_v8  ;;  %v6494_v8 = vor.u32 %v9352_v1, %v6493_v0  ;;  %v7678_v27 = vor.u32 %v9648_v22, %v7677_v21  ;;  %v8093_v1 = vld [vmem:[#allocation4 + $0xe10] sm:$0xf]  ;;  %v10232_v21 = vor.u32 %v94_v19, %v93_v18  ;;  %v10234_v22 = vpop.permute.xlu0 %68 }
  0x94   :  { %3462 = vmatpush.bf16.msra.mxu1 %v6846_v11  ;;  %3523 = vmatpush.bf16.msra.mxu2 %v8254_v28  ;;  %v7742_v11 = vor.u32 %v9664_v3, %v7741_v2  ;;  %v7613_v28 = vld [vmem:[#allocation4 + $0x9d8] sm:$0xf]  ;;  %v9752_v2 = vld [vmem:[#allocation4 + $0xe30] sm:$0xf0]  ;;  %vm70_vm4 = vcmp.eq.s32.totalorder %v10234_v22, 1 }
  0x95   :  { %3488 = vmatpush.bf16.msra.mxu3 %v7358_v14  ;;  %v7934_v14 = vor.u32 %v9712_v6, %v7933_v5  ;;  %v8094_v3 = vor.u32 %v9752_v2, %v8093_v1  ;;  %v9808_v5 = vld [vmem:[#allocation4 + $0x1028] sm:$0xf0]  ;;  %v8061_v6 = vld [vmem:[#allocation4 + $0xdc8] sm:$0xf]  ;;  %v102_v45 = vperm.slane %v10232_v21, 5  ;;  %v101_v19 = vperm.slane %v10232_v21, 4 }
  0x96   :  { %v9388_v1 = vld [vmem:[#allocation4 + $0x16c] sm:$0xf]  ;;  %v6847_v22 = vld [vmem:[#allocation4 + $0x33c] sm:$0xf0] }
  0x97   :  { %3448 = vmatpush.bf16.msrb.mxu0 %v6622_v20  ;;  %v7710_v20 = vor.u32 %v9656_v13, %v7709_v12  ;;  %v8029_v13 = vld [vmem:[#allocation4 + $0xd80] sm:$0xf] }
  0x98   :  { %3463 = vmatpush.bf16.msra.mxu1 %v6814_v25  ;;  %3524 = vmatpush.bf16.msra.mxu2 %v8222_v47  ;;  %v9696_v25 = vld [vmem:[#allocation4 + $0xc38] sm:$0xf0]  ;;  %v7549_v47 = vld [vmem:[#allocation4 + $0x948] sm:$0xf] }
  0x99   :  { %3489 = vmatpush.bf16.msra.mxu3 %v7326_v29  ;;  %v7645_v29 = vld [vmem:[#allocation4 + $0xa20] sm:$0xf]  ;;  %v7870_v31 = vor.u32 %v9696_v25, %v7869_v24  ;;  %v97_v24 = vperm.slane %v10232_v21, 0 }
  0x9a   :  { %v7646_v32 = vor.u32 %v9640_v30, %v7645_v29 }
  0x9b   :  { %3449 = vmatpush.bf16.msrb.mxu0 %v6590_v33  ;;  %v9632_v33 = vld [vmem:[#allocation4 + $0x9f8] sm:$0xf0] }
  0x9c   :  { %3464 = vmatpush.bf16.msra.mxu1 %v6782_v38  ;;  %3525 = vmatpush.bf16.msra.mxu2 %v8190_v60  ;;  %v7614_v34 = vor.u32 %v9632_v33, %v7613_v28  ;;  %v7582_v38 = vor.u32 %v9624_v36, %v7581_v35  ;;  %v9608_v60 = vld [vmem:[#allocation4 + $0x920] sm:$0xf0]  ;;  %v100_v28 = vperm.slane %v10232_v21, 3  ;;  %v99_v36 = vperm.slane %v10232_v21, 2 }
  0x9d   :  { %3490 = vmatpush.bf16.msra.mxu3 %v7294_v43  ;;  %v8158_v43 = vor.u32 %v9768_v41, %v8157_v40  ;;  %v6975_v40 = vld [vmem:[#allocation4 + $0x45c] sm:$0xf0] }
  0x9f   :  { %3450 = vmatpush.bf16.msrb.mxu0 %v6558_v48  ;;  %v9616_v48 = vld [vmem:[#allocation4 + $0x968] sm:$0xf0] }
  0xa0   :  { %3465 = vmatpush.bf16.msra.mxu1 %v6750_v54  ;;  %3526 = vmatpush.bf16.msra.mxu2 %v8158_v43  ;;  %v7550_v50 = vor.u32 %v9616_v48, %v7549_v47  ;;  %v7806_v54 = vor.u32 %v9680_v51, %v7805_v49  ;;  %v6978_v49 = vor.u32 %v9468_v39, %v6975_v40 }
  0xa1   :  { %3491 = vmatpush.bf16.msra.mxu3 %v7262_v56  ;;  %v8349_v56 = vld [vmem:[#allocation4 + $0x1050] sm:$0xf] }
  0xa2   :  { %v8350_v58 = vor.u32 %v9816_v57, %v8349_v56  ;;  %v103_v57 = vperm.slane %v10232_v21, 6 }
  0xa3   :  { %3451 = vmatpush.bf16.msrb.mxu0 %v6526_v61  ;;  %v7773_v61 = vld [vmem:[#allocation4 + $0xb40] sm:$0xf] }
  0xa4   :  { %3510 = vmatpush.bf16.msrb.mxu1 %v7998_v55  ;;  %v8126_v55 = vor.u32 %v9760_v53, %v8125_v52  ;;  %v7774_v0 = vor.u32 %v9672_v62, %v7773_v61 }
  0xa5   :  { %3536 = vmatpush.bf16.msrb.mxu3 %v8510_v59  ;;  %v7517_v59 = vld [vmem:[#allocation4 + $0x900] sm:$0xf] }
  0xa6   :  { %3527 = vmatpush.bf16.msra.mxu2 %v8126_v55  ;;  %v7518_v63 = vor.u32 %v9608_v60, %v7517_v59  ;;  %v6687_v55 = vld [vmem:[#allocation4 + $0x1d4] sm:$0xf0] }
  0xa7   :  { %3452 = vmatpush.bf16.msrb.mxu0 %v6494_v8  ;;  %v9744_v8 = vld [vmem:[#allocation4 + $0xde8] sm:$0xf0]  ;;  %v6943_v59 = vld [vmem:[#allocation4 + $0x414] sm:$0xf0] }
  0xa8   :  { %3511 = vmatpush.bf16.msrb.mxu1 %v7966_v4  ;;  %v8317_v4 = vld [vmem:[#allocation4 + $0x1008] sm:$0xf]  ;;  %v8062_v9 = vor.u32 %v9744_v8, %v8061_v6  ;;  %v6655_v6 = vld [vmem:[#allocation4 + $0x18c] sm:$0xf0]  ;;  %v9532_v8 = vld [vmem:[#allocation4 + $0x67c] sm:$0xf] }
  0xa9   :  { %3537 = vmatpush.bf16.msrb.mxu3 %v8478_v7  ;;  %v8318_v7 = vor.u32 %v9808_v5, %v8317_v4 }
  0xaa   :  { %3528 = vmatpush.bf16.msra.mxu2 %v8094_v3 }
  0xab   :  { %3497 = vmatpush.bf16.msra.mxu0 %v7742_v11  ;;  %v9800_v11 = vld [vmem:[#allocation4 + $0xfe0] sm:$0xf0] }
  0xac   :  { %3512 = vmatpush.bf16.msrb.mxu1 %v7934_v14  ;;  %v8286_v12 = vor.u32 %v9800_v11, %v8285_v10  ;;  %v9736_v14 = vld [vmem:[#allocation4 + $0xda0] sm:$0xf0]  ;;  %v104_v11 = vperm.slane %v10232_v21, 7 }
  0xad   :  { %3538 = vmatpush.bf16.msrb.mxu3 %v8446_v17  ;;  %v8030_v15 = vor.u32 %v9736_v14, %v8029_v13  ;;  %v73_v17 = vld [vmem:[#allocation2 + $0x3] ss:$8 sm:$0xf0] }
  0xae   :  { %3529 = vmatpush.bf16.msra.mxu2 %v8062_v9 }
  0xaf   :  { %3498 = vmatpush.bf16.msra.mxu0 %v7710_v20  ;;  %v10230_v20 = vor.u32 %v73_v17, %v72_v16 }
  0xb0   :  { %3513 = vmatpush.bf16.msrb.mxu1 %v7902_v23 }
  0xb1   :  { %3539 = vmatpush.bf16.msrb.mxu3 %v8414_v26  ;;  %v76_v23 = vperm.slane %v10230_v20, 0  ;;  %v77_v25 = vperm.slane %v10230_v20, 1  ;;  %v98_v26 = vperm.slane %v10232_v21, 1  ;;  %v78_v35 = vperm.slane %v10230_v20, 2 }
  0xb2   :  { %3530 = vmatpush.bf16.msra.mxu2 %v8030_v15  ;;  %v81_v44 = vperm.slane %v10230_v20, 5  ;;  %v82_v52 = vperm.slane %v10230_v20, 6  ;;  %v83_v60 = vperm.slane %v10230_v20, 7  ;;  %v80_v14 = vperm.slane %v10230_v20, 4  ;;  %v6911_v15 = vld [vmem:[#allocation4 + $0x3cc] sm:$0xf0] }
  0xb3   :  { %3499 = vmatpush.bf16.msra.mxu0 %v7678_v27  ;;  %v113_v27 = vsel %vm70_vm4, %v76_v23, %v97_v24  ;;  %v114_v29 = vsel %vm70_vm4, %v77_v25, %v98_v26  ;;  %v115_v53 = vsel %vm70_vm4, %v78_v35, %v99_v36  ;;  %v6658_v25 = vor.u32 %v9388_v1, %v6655_v6  ;;  %v9444_v35 = vld [vmem:[#allocation4 + $0x364] sm:$0xf]  ;;  %v6879_v36 = vld [vmem:[#allocation4 + $0x384] sm:$0xf0]  ;;  %v9364_v1 = vld [vmem:[#allocation4 + $0x94] sm:$0xf] }
  0xb4   :  { %3514 = vmatpush.bf16.msrb.mxu1 %v7870_v31  ;;  %v118_v3 = vsel %vm70_vm4, %v81_v44, %v102_v45  ;;  %v120_v39 = vsel %vm70_vm4, %v83_v60, %v104_v11  ;;  %v117_v40 = vsel %vm70_vm4, %v80_v14, %v101_v19  ;;  %v7423_v44 = vld [vmem:[#allocation4 + $0x84c] sm:$0xf0] }
  0xb5   :  { %3540 = vmatpush.bf16.msrb.mxu3 %v8382_v46 }
  0xb7   :  { %3500 = vmatpush.bf16.msra.mxu0 %v7646_v32  ;;  %v79_v32 = vperm.slane %v10230_v20, 3  ;;  %v6623_v20 = vld [vmem:[#allocation4 + $0x144] sm:$0xf0] }
  0xb8   :  { %3515 = vmatpush.bf16.msrb.mxu1 %v7838_v42 }
  0xb9   :  { %3541 = vmatpush.bf16.msrb.mxu3 %v8350_v58  ;;  %v116_v43 = vsel %vm70_vm4, %v79_v32, %v100_v28  ;;  %v9460_v58 = vld [vmem:[#allocation4 + $0x3f4] sm:$0xf] }
  0xba   :  { %v6946_v10 = vor.u32 %v9460_v58, %v6943_v59  ;;  %v9524_v28 = vld [vmem:[#allocation4 + $0x634] sm:$0xf]  ;;  %v7167_v58 = vld [vmem:[#allocation4 + $0x60c] sm:$0xf0] }
  0xbb   :  { %3501 = vmatpush.bf16.msra.mxu0 %v7614_v34 }
  0xbc   :  { %3516 = vmatpush.bf16.msrb.mxu1 %v7806_v54  ;;  %v9396_v54 = vld [vmem:[#allocation4 + $0x1b4] sm:$0xf] }
  0xbd   :  { %3542 = vmatpush.bf16.msrb.mxu3 %v8318_v7  ;;  %v6690_v5 = vor.u32 %v9396_v54, %v6687_v55  ;;  %v9452_v7 = vld [vmem:[#allocation4 + $0x3ac] sm:$0xf]  ;;  %v9436_v54 = vld [vmem:[#allocation4 + $0x31c] sm:$0xf] }
  0xbe   :  { %v6914_v32 = vor.u32 %v9452_v7, %v6911_v15  ;;  %v9516_v55 = vld [vmem:[#allocation4 + $0x5ec] sm:$0xf]  ;;  %v6850_v6 = vor.u32 %v9436_v54, %v6847_v22  ;;  %v9564_v15 = vld [vmem:[#allocation4 + $0x79c] sm:$0xf] }
  0xbf   :  { %3502 = vmatpush.bf16.msra.mxu0 %v7582_v38  ;;  %v6719_v38 = vld [vmem:[#allocation4 + $0x21c] sm:$0xf0]  ;;  %v7170_v7 = vor.u32 %v9516_v55, %v7167_v58  ;;  %v7039_v58 = vld [vmem:[#allocation4 + $0x4ec] sm:$0xf0] }
  0xc0   :  { %3517 = vmatpush.bf16.msrb.mxu1 %v7774_v0  ;;  %v6722_v48 = vor.u32 %v9404_v37, %v6719_v38  ;;  %v7487_v0 = vld [vmem:[#allocation4 + $0x8dc] sm:$0xf0] }
  0xc1   :  { %3543 = vmatpush.bf16.msrb.mxu3 %v8286_v12  ;;  %v7231_v12 = vld [vmem:[#allocation4 + $0x69c] sm:$0xf0] }
  0xc2   :  { %v7234_v26 = vor.u32 %v9532_v8, %v7231_v12  ;;  %v6815_v8 = vld [vmem:[#allocation4 + $0x2f4] sm:$0xf0]  ;;  %v7135_v12 = vld [vmem:[#allocation4 + $0x5c4] sm:$0xf0] }
  0xc3   :  { %3503 = vmatpush.bf16.msra.mxu0 %v7550_v50 }
  0xc7   :  { %3504 = vmatpush.bf16.msra.mxu0 %v7518_v63  ;;  %v9596_v63 = vld [vmem:[#allocation4 + $0x8bc] sm:$0xf] }
  0xc8   :  { %v7490_v18 = vor.u32 %v9596_v63, %v7487_v0 }
  0xff   :  { %v177_v30 = vpop.f32.mrf.mxu0  ;;  %v197_v31 = vpop.f32.mrf.mxu1 }
 0x100   :  { %v178_v33 = vadd.f32 %v177_v30, %v113_v27  ;;  %v198_v34 = vadd.f32 %v197_v31, %v114_v29  ;;  %v9588_v27 = vld [vmem:[#allocation4 + $0x874] sm:$0xf]  ;;  %v7455_v29 = vld [vmem:[#allocation4 + $0x894] sm:$0xf0]  ;;  %v9380_v30 = vld [vmem:[#allocation4 + $0x124] sm:$0xf] }
 0x102   :  { %vm320_vm5 = vcmp.gt.f32.partialorder %v178_v33, 0.0  ;;  %v328_v41 = vmul.f32 0.01, %v178_v33  ;;  %vm321_vm6 = vcmp.gt.f32.partialorder %v198_v34, 0.0  ;;  %v329_v42 = vmul.f32 0.01, %v198_v34 }
 0x104   :  { %v336_v46 = vsel %vm320_vm5, %v178_v33, %v328_v41  ;;  %v337_v47 = vsel %vm321_vm6, %v198_v34, %v329_v42  ;;  %v7199_v33 = vld [vmem:[#allocation4 + $0x654] sm:$0xf0]  ;;  %v119_v34 = vsel %vm70_vm4, %v82_v52, %v103_v57  ;;  %v7458_v42 = vor.u32 %v9588_v27, %v7455_v29  ;;  %v6783_v29 = vld [vmem:[#allocation4 + $0x2ac] sm:$0xf0] }
 0x105   :  { %v10253_v50 = vpack.c.bf16 %v336_v46, %v336_v46  ;;  %v10255_v51 = vpack.c.bf16 %v337_v47, %v337_v47  ;;  %v6626_v46 = vor.u32 %v9380_v30, %v6623_v20  ;;  %v7202_v47 = vor.u32 %v9524_v28, %v7199_v33  ;;  %v9500_v30 = vld [vmem:[#allocation4 + $0x55c] sm:$0xf] }
 0x106   :  { %v237_v56 = vpop.f32.mrf.mxu3  ;;  %v297_v37 = vpop.f32.mrf.mxu2  ;;  %vm5438_vm6 = vcmask 523264  }
 0x107   :  { %v238_v61 = vadd.f32 %v237_v56, %v116_v43  ;;  %v217_v62 = vpop.f32.mrf.mxu0  ;;  %3453 = vmatmul.bf16.vlgmr.msrb.gmra.mxu0 %v10253_v50  ;;  %3466 = vmatmul.bf16.vlgmr.msra.gmra.mxu1 %v10255_v51  ;;  %v277_v4 = vpop.f32.mrf.mxu1  ;;  %v9580_v43 = vld [vmem:[#allocation4 + $0x82c] sm:$0xf]  ;;  %v298_v56 = vadd.f32 %v297_v37, %v119_v34  ;;  %v9556_v34 = vld [vmem:[#allocation4 + $0x754] sm:$0xf] }
 0x108   :  { %v218_v2 = vadd.f32 %v217_v62, %v115_v53  ;;  %3549 = vmatpush.bf16.msrb.mxu0 %v6722_v48  ;;  %3562 = vmatpush.bf16.msra.mxu1 %v6978_v49  ;;  %v278_v17 = vadd.f32 %v277_v4, %v118_v3  ;;  %v9372_v48 = vld [vmem:[#allocation4 + $0xdc] sm:$0xf]  ;;  %v6591_v49 = vld [vmem:[#allocation4 + $0xfc] sm:$0xf0]  ;;  %v6882_v53 = vor.u32 %v9444_v35, %v6879_v36  ;;  %v7391_v62 = vld [vmem:[#allocation4 + $0x804] sm:$0xf0] }
 0x109   :  { %vm323_vm7 = vcmp.gt.f32.partialorder %v238_v61, 0.0  ;;  %v331_v9 = vmul.f32 0.01, %v238_v61  ;;  %v7426_v60 = vor.u32 %v9580_v43, %v7423_v44  ;;  %v6594_v0 = vor.u32 %v9372_v48, %v6591_v49  ;;  %v9428_v3 = vld [vmem:[#allocation4 + $0x2d4] sm:$0xf] }
 0x10a   :  { %vm322_vm8 = vcmp.gt.f32.partialorder %v218_v2, 0.0  ;;  %v330_v13 = vmul.f32 0.01, %v218_v2  ;;  %v333_v38 = vmul.f32 0.01, %v278_v17  ;;  %vm325_vm9 = vcmp.gt.f32.partialorder %v278_v17, 0.0 }
 0x10b   :  { %v339_v16 = vsel %vm323_vm7, %v238_v61, %v331_v9  ;;  %v9572_v61 = vld [vmem:[#allocation4 + $0x7e4] sm:$0xf]  ;;  %vm326_vm12 = vcmp.gt.f32.partialorder %v298_v56, 0.0  ;;  %v7071_v43 = vld [vmem:[#allocation4 + $0x534] sm:$0xf0]  ;;  %vm5657_vm7 = vcmask 1045504  }
 0x10c   :  { %v10269_v23 = vpack.c.bf16 %v339_v16, %v339_v16  ;;  %v338_v24 = vsel %vm322_vm8, %v218_v2, %v330_v13  ;;  %3550 = vmatpush.bf16.msrb.mxu0 %v6690_v5  ;;  %3563 = vmatpush.bf16.msra.mxu1 %v6946_v10  ;;  %v341_v59 = vsel %vm325_vm9, %v278_v17, %v333_v38  ;;  %v6559_v2 = vld [vmem:[#allocation4 + $0xb4] sm:$0xf0]  ;;  %v9508_v9 = vld [vmem:[#allocation4 + $0x5a4] sm:$0xf]  ;;  %v334_v10 = vmul.f32 0.01, %v298_v56 }
 0x10d   :  { %v10271_v31 = vpack.c.bf16 %v338_v24, %v338_v24  ;;  %v10284_v11 = vpack.c.bf16 %v341_v59, %v341_v59  ;;  %v7394_v13 = vor.u32 %v9572_v61, %v7391_v62  ;;  %v6562_v14 = vor.u32 %v9364_v1, %v6559_v2  ;;  %v7359_v16 = vld [vmem:[#allocation4 + $0x7bc] sm:$0xf0]  ;;  %v9356_v24 = vld [vmem:[#allocation4 + $0x4c] sm:$0xf]  ;;  %v9348_v35 = vld [vmem:[#allocation4 + $0x4] sm:$0xf] }
 0x10e   :  { %v317_v21 = vpop.f32.mrf.mxu3  ;;  %3492 = vmatmul.bf16.vlgmr.msra.gmra.mxu3 %v10269_v23  ;;  %v7138_v19 = vor.u32 %v9508_v9, %v7135_v12  ;;  %v342_v27 = vsel %vm326_vm12, %v298_v56, %v334_v10  ;;  %v7362_v20 = vor.u32 %v9564_v15, %v7359_v16  ;;  %v9660_v44 = vld [vmem:[#allocation4 + $0xafc] sm:$0xf]  ;;  %v7999_v48 = vld [vmem:[#allocation4 + $0xd5c] sm:$0xf0]  ;;  %v9652_v59 = vld [vmem:[#allocation4 + $0xab4] sm:$0xf] }
 0x10f   :  { %3588 = vmatpush.bf16.msra.mxu3 %v7490_v18  ;;  %v257_v41 = vpop.f32.mrf.mxu0  ;;  %3479 = vmatmul.bf16.vlgmr.msrb.gmra.mxu2 %v10271_v31  ;;  %v318_v52 = vadd.f32 %v317_v21, %v120_v39  ;;  %v6818_v18 = vor.u32 %v9428_v3, %v6815_v8  ;;  %v7327_v21 = vld [vmem:[#allocation4 + $0x774] sm:$0xf0]  ;;  %v10291_v36 = vpack.c.bf16 %v342_v27, %v342_v27  ;;  %v6495_v39 = vld [vmem:[#allocation4 + $0x24] sm:$0xf0]  ;;  %v9716_v62 = vld [vmem:[#allocation4 + $0xcf4] sm:$0xf] }
 0x110   :  { %v258_v45 = vadd.f32 %v257_v41, %v117_v40  ;;  %3551 = vmatpush.bf16.msrb.mxu0 %v6658_v25  ;;  %3575 = vmatpush.bf16.msrb.mxu2 %v7234_v26  ;;  %v6527_v25 = vld [vmem:[#allocation4 + $0x6c] sm:$0xf0]  ;;  %v9420_v26 = vld [vmem:[#allocation4 + $0x28c] sm:$0xf]  ;;  %v9412_v40 = vld [vmem:[#allocation4 + $0x244] sm:$0xf]  ;;  %v6498_v49 = vor.u32 %v9348_v35, %v6495_v39 }
 0x111   :  { %3564 = vmatpush.bf16.msra.mxu1 %v6914_v32  ;;  %v335_v4 = vmul.f32 0.01, %v318_v52  ;;  %vm327_vm11 = vcmp.gt.f32.partialorder %v318_v52, 0.0  ;;  %v7103_v32 = vld [vmem:[#allocation4 + $0x57c] sm:$0xf0]  ;;  %v6530_v33 = vor.u32 %v9356_v24, %v6527_v25  ;;  %v6786_v37 = vor.u32 %v9420_v26, %v6783_v29 }
 0x112   :  { %vm324_vm10 = vcmp.gt.f32.partialorder %v258_v45, 0.0  ;;  %v332_v57 = vmul.f32 0.01, %v258_v45  ;;  %v7106_v38 = vor.u32 %v9500_v30, %v7103_v32  ;;  %v6751_v41 = vld [vmem:[#allocation4 + $0x264] sm:$0xf0]  ;;  %vm5653_vm9 = vcmask 97280  }
 0x113   :  { %3589 = vmatpush.bf16.msra.mxu3 %v7458_v42  ;;  %v343_v17 = vsel %vm327_vm11, %v318_v52, %v335_v4  ;;  %v9492_v42 = vld [vmem:[#allocation4 + $0x514] sm:$0xf]  ;;  %v9548_v52 = vld [vmem:[#allocation4 + $0x70c] sm:$0xf]  ;;  %v6754_v54 = vor.u32 %v9412_v40, %v6751_v41  ;;  %v7711_v61 = vld [vmem:[#allocation4 + $0xad4] sm:$0xf0] }
 0x114   :  { %v340_v63 = vsel %vm324_vm10, %v258_v45, %v332_v57  ;;  %3552 = vmatpush.bf16.msrb.mxu0 %v6626_v46  ;;  %3576 = vmatpush.bf16.msrb.mxu2 %v7202_v47  ;;  %v10289_v28 = vpack.c.bf16 %v343_v17, %v343_v17  ;;  %v7330_v45 = vor.u32 %v9556_v34, %v7327_v21  ;;  %v7743_v46 = vld [vmem:[#allocation4 + $0xb1c] sm:$0xf0]  ;;  %v9724_v47 = vld [vmem:[#allocation4 + $0xd3c] sm:$0xf]  ;;  %v9484_v57 = vld [vmem:[#allocation4 + $0x4cc] sm:$0xf] }
 0x115   :  { %v10282_v5 = vpack.c.bf16 %v340_v63, %v340_v63  ;;  %3565 = vmatpush.bf16.msra.mxu1 %v6882_v53  ;;  %v7295_v53 = vld [vmem:[#allocation4 + $0x72c] sm:$0xf0]  ;;  %v7074_v22 = vor.u32 %v9492_v42, %v7071_v43  ;;  %v7746_v55 = vor.u32 %v9660_v44, %v7743_v46  ;;  %v8002_v56 = vor.u32 %v9724_v47, %v7999_v48  ;;  %v7967_v63 = vld [vmem:[#allocation4 + $0xd14] sm:$0xf0]  ;;  %v7263_v1 = vld [vmem:[#allocation4 + $0x6e4] sm:$0xf0] }
 0x116   :  { %v7042_v2 = vor.u32 %v9484_v57, %v7039_v58  ;;  %v9852_v3 = vld [vmem:[#allocation4 + $0x11bc] sm:$0xf]  ;;  %v8511_v4 = vld [vmem:[#allocation4 + $0x11dc] sm:$0xf0]  ;;  %v9476_v8 = vld [vmem:[#allocation4 + $0x484] sm:$0xf] }
 0x117   :  { %3590 = vmatpush.bf16.msra.mxu3 %v7426_v60  ;;  %3505 = vmatmul.bf16.vlgmr.msra.gmra.mxu0 %v10282_v5  ;;  %v7298_v60 = vor.u32 %v9548_v52, %v7295_v53  ;;  %v7007_v9 = vld [vmem:[#allocation4 + $0x4a4] sm:$0xf0]  ;;  %v9644_v10 = vld [vmem:[#allocation4 + $0xa6c] sm:$0xf]  ;;  %v7935_v15 = vld [vmem:[#allocation4 + $0xccc] sm:$0xf0]  ;;  %v8514_v16 = vor.u32 %v9852_v3, %v8511_v4 }
 0x118   :  { %3518 = vmatmul.bf16.vlgmr.msrb.gmra.mxu1 %v10284_v11  ;;  %3553 = vmatpush.bf16.msrb.mxu0 %v6594_v0  ;;  %v9540_v0 = vld [vmem:[#allocation4 + $0x6c4] sm:$0xf]  ;;  %v9788_v17 = vld [vmem:[#allocation4 + $0xf7c] sm:$0xf]  ;;  %v9844_v24 = vld [vmem:[#allocation4 + $0x1174] sm:$0xf] }
 0x119   :  { %3566 = vmatpush.bf16.msra.mxu1 %v6850_v6  ;;  %3577 = vmatpush.bf16.msrb.mxu2 %v7170_v7  ;;  %v7714_v6 = vor.u32 %v9652_v59, %v7711_v61  ;;  %v7970_v7 = vor.u32 %v9716_v62, %v7967_v63  ;;  %v7266_v12 = vor.u32 %v9540_v0, %v7263_v1  ;;  %v8479_v25 = vld [vmem:[#allocation4 + $0x1194] sm:$0xf0]  ;;  %v9636_v29 = vld [vmem:[#allocation4 + $0xa24] sm:$0xf]  ;;  %v7647_v32 = vld [vmem:[#allocation4 + $0xa44] sm:$0xf0] }
 0x11a   :  { %v8482_v34 = vor.u32 %v9844_v24, %v8479_v25  ;;  %v9780_v21 = vld [vmem:[#allocation4 + $0xf34] sm:$0xf]  ;;  %v8223_v35 = vld [vmem:[#allocation4 + $0xf54] sm:$0xf0]  ;;  %v7650_v39 = vor.u32 %v9636_v29, %v7647_v32  ;;  %v9628_v41 = vld [vmem:[#allocation4 + $0x9dc] sm:$0xf] }
 0x11b   :  { %3591 = vmatpush.bf16.msra.mxu3 %v7394_v13  ;;  %v7679_v13 = vld [vmem:[#allocation4 + $0xa8c] sm:$0xf0]  ;;  %v8226_v42 = vor.u32 %v9780_v21, %v8223_v35  ;;  %v7615_v43 = vld [vmem:[#allocation4 + $0x9fc] sm:$0xf0]  ;;  %v9692_v44 = vld [vmem:[#allocation4 + $0xc1c] sm:$0xf] }
 0x11c   :  { %3554 = vmatpush.bf16.msrb.mxu0 %v6562_v14  ;;  %v9708_v14 = vld [vmem:[#allocation4 + $0xcac] sm:$0xf]  ;;  %v7682_v26 = vor.u32 %v9644_v10, %v7679_v13  ;;  %v8191_v48 = vld [vmem:[#allocation4 + $0xf0c] sm:$0xf0]  ;;  %v8415_v52 = vld [vmem:[#allocation4 + $0x1104] sm:$0xf0]  ;;  %v7618_v53 = vor.u32 %v9628_v41, %v7615_v43 }
 0x11d   :  { %3567 = vmatpush.bf16.msra.mxu1 %v6818_v18  ;;  %3578 = vmatpush.bf16.msrb.mxu2 %v7138_v19  ;;  %v8255_v18 = vld [vmem:[#allocation4 + $0xf9c] sm:$0xf0]  ;;  %v7010_v19 = vor.u32 %v9476_v8, %v7007_v9  ;;  %v7938_v27 = vor.u32 %v9708_v14, %v7935_v15  ;;  %v9772_v47 = vld [vmem:[#allocation4 + $0xeec] sm:$0xf]  ;;  %v9684_v57 = vld [vmem:[#allocation4 + $0xbd4] sm:$0xf] }
 0x11e   :  { %3544 = vmatmul.bf16.vlgmr.msrb.gmra.mxu3 %v10289_v28  ;;  %v8258_v30 = vor.u32 %v9788_v17, %v8255_v18  ;;  %v7839_v58 = vld [vmem:[#allocation4 + $0xbf4] sm:$0xf0]  ;;  %v8159_v61 = vld [vmem:[#allocation4 + $0xec4] sm:$0xf0]  ;;  %v9820_v62 = vld [vmem:[#allocation4 + $0x109c] sm:$0xf] }
 0x11f   :  { %3592 = vmatpush.bf16.msra.mxu3 %v7362_v20  ;;  %3531 = vmatmul.bf16.vlgmr.msra.gmra.mxu2 %v10291_v36  ;;  %v9700_v20 = vld [vmem:[#allocation4 + $0xc64] sm:$0xf]  ;;  %v8383_v63 = vld [vmem:[#allocation4 + $0x10bc] sm:$0xf0]  ;;  %v7842_v1 = vor.u32 %v9684_v57, %v7839_v58  ;;  %v7551_v4 = vld [vmem:[#allocation4 + $0x96c] sm:$0xf0] }
 0x120   :  { %3555 = vmatpush.bf16.msrb.mxu0 %v6530_v33  ;;  %v7903_v33 = vld [vmem:[#allocation4 + $0xc84] sm:$0xf0]  ;;  %v8386_v8 = vor.u32 %v9820_v62, %v8383_v63  ;;  %v9756_v9 = vld [vmem:[#allocation4 + $0xe5c] sm:$0xf]  ;;  %v8127_v10 = vld [vmem:[#allocation4 + $0xe7c] sm:$0xf0] }
 0x121   :  { %3568 = vmatpush.bf16.msra.mxu1 %v6786_v37  ;;  %3579 = vmatpush.bf16.msrb.mxu2 %v7106_v38  ;;  %v9836_v37 = vld [vmem:[#allocation4 + $0x112c] sm:$0xf]  ;;  %v8447_v38 = vld [vmem:[#allocation4 + $0x114c] sm:$0xf0]  ;;  %v7906_v40 = vor.u32 %v9700_v20, %v7903_v33  ;;  %v8351_v13 = vld [vmem:[#allocation4 + $0x1074] sm:$0xf0] }
 0x122   :  { %v8450_v46 = vor.u32 %v9836_v37, %v8447_v38  ;;  %v7519_v17 = vld [vmem:[#allocation4 + $0x924] sm:$0xf0]  ;;  %v9668_v18 = vld [vmem:[#allocation4 + $0xb44] sm:$0xf]  ;;  %v9748_v25 = vld [vmem:[#allocation4 + $0xe14] sm:$0xf] }
 0x123   :  { %3593 = vmatpush.bf16.msra.mxu3 %v7330_v45  ;;  %v7871_v45 = vld [vmem:[#allocation4 + $0xc3c] sm:$0xf0]  ;;  %v7775_v24 = vld [vmem:[#allocation4 + $0xb64] sm:$0xf0]  ;;  %v9473_v20 = vld [vmem:[#allocation4 + $0x460] sm:$0xf0] }
 0x124   :  { %3556 = vmatpush.bf16.msrb.mxu0 %v6498_v49  ;;  %v9828_v49 = vld [vmem:[#allocation4 + $0x10e4] sm:$0xf]  ;;  %v6725_v29 = vld [vmem:[#allocation4 + $0x200] sm:$0xf]  ;;  %v9804_v33 = vld [vmem:[#allocation4 + $0x100c] sm:$0xf]  ;;  %v7778_v35 = vor.u32 %v9668_v18, %v7775_v24 }
 0x125   :  { %3569 = vmatpush.bf16.msra.mxu1 %v6754_v54  ;;  %3580 = vmatpush.bf16.msrb.mxu2 %v7074_v22  ;;  %v7874_v54 = vor.u32 %v9692_v44, %v7871_v45  ;;  %v9620_v22 = vld [vmem:[#allocation4 + $0x994] sm:$0xf]  ;;  %v8418_v59 = vor.u32 %v9828_v49, %v8415_v52  ;;  %v6981_v32 = vld [vmem:[#allocation4 + $0x440] sm:$0xf]  ;;  %v6693_v43 = vld [vmem:[#allocation4 + $0x1b8] sm:$0xf] }
 0x126   :  { %v6982_v41 = vor.u32 %v9473_v20, %v6981_v32  ;;  %v9401_v44 = vld [vmem:[#allocation4 + $0x1d8] sm:$0xf0]  ;;  %v6949_v45 = vld [vmem:[#allocation4 + $0x3f8] sm:$0xf]  ;;  %v7493_v49 = vld [vmem:[#allocation4 + $0x8c0] sm:$0xf] }
 0x127   :  { %3594 = vmatpush.bf16.msra.mxu3 %v7298_v60  ;;  %3557 = vmatmul.bf16.vlgmr.msrb.gmra.mxu0 %v10253_v50  ;;  %v9764_v60 = vld [vmem:[#allocation4 + $0xea4] sm:$0xf]  ;;  %v8031_v57 = vld [vmem:[#allocation4 + $0xda4] sm:$0xf0]  ;;  %v6661_v58 = vld [vmem:[#allocation4 + $0x170] sm:$0xf] }
 0x128   :  { %3601 = vmatpush.bf16.msra.mxu0 %v7746_v55  ;;  %3570 = vmatmul.bf16.vlgmr.msra.gmra.mxu1 %v10255_v51  ;;  %v8194_v55 = vor.u32 %v9772_v47, %v8191_v48  ;;  %v8162_v3 = vor.u32 %v9764_v60, %v8159_v61  ;;  %v9796_v47 = vld [vmem:[#allocation4 + $0xfc4] sm:$0xf]  ;;  %v8287_v48 = vld [vmem:[#allocation4 + $0xfe4] sm:$0xf0]  ;;  %v6917_v61 = vld [vmem:[#allocation4 + $0x3b0] sm:$0xf] }
 0x129   :  { %3614 = vmatpush.bf16.msrb.mxu1 %v8002_v56  ;;  %3581 = vmatpush.bf16.msrb.mxu2 %v7042_v2  ;;  %v7583_v56 = vld [vmem:[#allocation4 + $0x9b4] sm:$0xf0]  ;;  %v9612_v2 = vld [vmem:[#allocation4 + $0x94c] sm:$0xf]  ;;  %v9601_v52 = vld [vmem:[#allocation4 + $0x8e0] sm:$0xf0] }
 0x12a   :  { %v7586_v0 = vor.u32 %v9620_v22, %v7583_v56  ;;  %v7554_v14 = vor.u32 %v9612_v2, %v7551_v4  ;;  %v9732_v22 = vld [vmem:[#allocation4 + $0xd84] sm:$0xf]  ;;  %v8290_v56 = vor.u32 %v9796_v47, %v8287_v48  ;;  %v7494_v60 = vor.u32 %v9601_v52, %v7493_v49  ;;  %v9457_v62 = vld [vmem:[#allocation4 + $0x3d0] sm:$0xf0]  ;;  %v7237_v63 = vld [vmem:[#allocation4 + $0x680] sm:$0xf] }
 0x12b   :  { %3595 = vmatpush.bf16.msra.mxu3 %v7266_v12  ;;  %v9812_v12 = vld [vmem:[#allocation4 + $0x1054] sm:$0xf]  ;;  %v9593_v2 = vld [vmem:[#allocation4 + $0x898] sm:$0xf0]  ;;  %v6597_v24 = vld [vmem:[#allocation4 + $0xe0] sm:$0xf] }
 0x12c   :  { %3602 = vmatpush.bf16.msra.mxu0 %v7714_v6  ;;  %v9676_v6 = vld [vmem:[#allocation4 + $0xb8c] sm:$0xf]  ;;  %v7173_v32 = vld [vmem:[#allocation4 + $0x5f0] sm:$0xf]  ;;  %v9521_v20 = vld [vmem:[#allocation4 + $0x610] sm:$0xf0] }
 0x12d   :  { %3615 = vmatpush.bf16.msrb.mxu1 %v7970_v7  ;;  %3582 = vmatpush.bf16.msrb.mxu2 %v7010_v19  ;;  %v7807_v7 = vld [vmem:[#allocation4 + $0xbac] sm:$0xf0]  ;;  %v8130_v19 = vor.u32 %v9756_v9, %v8127_v10  ;;  %v9361_v52 = vld [vmem:[#allocation4 + $0x70] sm:$0xf0]  ;;  %vm5868_vm10 = vcmask 1040384   ;;  %vm5864_vm12 = vcmask 146432  }
 0x12e   :  { %3596 = vmatmul.bf16.vlgmr.msra.gmra.mxu3 %v10269_v23  ;;  %v7810_v15 = vor.u32 %v9676_v6, %v7807_v7  ;;  %v6918_v6 = vor.u32 %v9457_v62, %v6917_v61  ;;  %v6629_v7 = vld [vmem:[#allocation4 + $0x128] sm:$0xf]  ;;  %v6533_v49 = vld [vmem:[#allocation4 + $0x50] sm:$0xf] }
 0x12f   :  { %3640 = vmatpush.bf16.msrb.mxu3 %v8514_v16  ;;  %v9604_v16 = vld [vmem:[#allocation4 + $0x904] sm:$0xf]  ;;  %v6501_v62 = vld [vmem:[#allocation4 + $0x8] sm:$0xf] }
 0x130   :  { %3603 = vmatpush.bf16.msra.mxu0 %v7682_v26  ;;  %3583 = vmatmul.bf16.vlgmr.msrb.gmra.mxu2 %v10271_v31  ;;  %v8095_v26 = vld [vmem:[#allocation4 + $0xe34] sm:$0xf0]  ;;  %v7522_v21 = vor.u32 %v9604_v16, %v7519_v17  ;;  %v7429_v16 = vld [vmem:[#allocation4 + $0x830] sm:$0xf]  ;;  %v9585_v17 = vld [vmem:[#allocation4 + $0x850] sm:$0xf0] }
 0x131   :  { %3616 = vmatpush.bf16.msrb.mxu1 %v7938_v27  ;;  %3627 = vmatpush.bf16.msra.mxu2 %v8258_v30  ;;  %v8354_v27 = vor.u32 %v9812_v12, %v8351_v13  ;;  %v9409_v30 = vld [vmem:[#allocation4 + $0x220] sm:$0xf0]  ;;  %v8098_v37 = vor.u32 %v9748_v25, %v8095_v26  ;;  %v6885_v12 = vld [vmem:[#allocation4 + $0x368] sm:$0xf]  ;;  %v9449_v13 = vld [vmem:[#allocation4 + $0x388] sm:$0xf0] }
 0x132   :  { %v6726_v38 = vor.u32 %v9409_v30, %v6725_v29  ;;  %v9377_v25 = vld [vmem:[#allocation4 + $0x100] sm:$0xf0]  ;;  %v6853_v29 = vld [vmem:[#allocation4 + $0x320] sm:$0xf] }
 0x133   :  { %3641 = vmatpush.bf16.msrb.mxu3 %v8482_v34  ;;  %v8319_v34 = vld [vmem:[#allocation4 + $0x102c] sm:$0xf0]  ;;  %v9441_v30 = vld [vmem:[#allocation4 + $0x340] sm:$0xf0] }
 0x134   :  { %3604 = vmatpush.bf16.msra.mxu0 %v7650_v39  ;;  %v9740_v39 = vld [vmem:[#allocation4 + $0xdcc] sm:$0xf] }
 0x135   :  { %3617 = vmatpush.bf16.msrb.mxu1 %v7906_v40  ;;  %3628 = vmatpush.bf16.msra.mxu2 %v8226_v42  ;;  %v8063_v40 = vld [vmem:[#allocation4 + $0xdec] sm:$0xf0]  ;;  %v8322_v42 = vor.u32 %v9804_v33, %v8319_v34  ;;  %v7397_v33 = vld [vmem:[#allocation4 + $0x7e8] sm:$0xf]  ;;  %v9577_v34 = vld [vmem:[#allocation4 + $0x808] sm:$0xf0] }
 0x137   :  { %3642 = vmatpush.bf16.msrb.mxu3 %v8450_v46  ;;  %v9465_v46 = vld [vmem:[#allocation4 + $0x418] sm:$0xf0] }
 0x138   :  { %3605 = vmatpush.bf16.msra.mxu0 %v7618_v53  ;;  %v8066_v53 = vor.u32 %v9740_v39, %v8063_v40  ;;  %v7174_v39 = vor.u32 %v9521_v20, %v7173_v32  ;;  %v7398_v40 = vor.u32 %v9577_v34, %v7397_v33  ;;  %v7269_v32 = vld [vmem:[#allocation4 + $0x6c8] sm:$0xf]  ;;  %v9545_v20 = vld [vmem:[#allocation4 + $0x6e8] sm:$0xf0]  ;;  %v8517_v33 = vld [vmem:[#allocation4 + $0x11c0] sm:$0xf] }
 0x139   :  { %3618 = vmatpush.bf16.msrb.mxu1 %v7874_v54  ;;  %3629 = vmatpush.bf16.msra.mxu2 %v8194_v55  ;;  %v6694_v54 = vor.u32 %v9401_v44, %v6693_v43  ;;  %v6950_v55 = vor.u32 %v9465_v46, %v6949_v45  ;;  %v7141_v43 = vld [vmem:[#allocation4 + $0x5a8] sm:$0xf]  ;;  %v9513_v44 = vld [vmem:[#allocation4 + $0x5c8] sm:$0xf0]  ;;  %v7365_v45 = vld [vmem:[#allocation4 + $0x7a0] sm:$0xf] }
 0x13a   :  { %v9569_v46 = vld [vmem:[#allocation4 + $0x7c0] sm:$0xf0] }
 0x13b   :  { %3643 = vmatpush.bf16.msrb.mxu3 %v8418_v59  ;;  %v9393_v59 = vld [vmem:[#allocation4 + $0x190] sm:$0xf0]  ;;  %v9857_v34 = vld [vmem:[#allocation4 + $0x11e0] sm:$0xf0] }
 0x13c   :  { %3606 = vmatpush.bf16.msra.mxu0 %v7586_v0  ;;  %v9537_v0 = vld [vmem:[#allocation4 + $0x6a0] sm:$0xf0]  ;;  %v6662_v4 = vor.u32 %v9393_v59, %v6661_v58  ;;  %v7333_v58 = vld [vmem:[#allocation4 + $0x758] sm:$0xf]  ;;  %v9561_v59 = vld [vmem:[#allocation4 + $0x778] sm:$0xf0] }
 0x13d   :  { %3619 = vmatpush.bf16.msrb.mxu1 %v7842_v1  ;;  %3630 = vmatpush.bf16.msra.mxu2 %v8162_v3  ;;  %v7461_v1 = vld [vmem:[#allocation4 + $0x878] sm:$0xf]  ;;  %v8034_v3 = vor.u32 %v9732_v22, %v8031_v57  ;;  %v7238_v9 = vor.u32 %v9537_v0, %v7237_v63  ;;  %v6789_v22 = vld [vmem:[#allocation4 + $0x290] sm:$0xf]  ;;  %v9505_v57 = vld [vmem:[#allocation4 + $0x580] sm:$0xf0] }
 0x13e   :  { %v7462_v10 = vor.u32 %v9593_v2, %v7461_v1  ;;  %v9353_v63 = vld [vmem:[#allocation4 + $0x28] sm:$0xf0]  ;;  %v6757_v0 = vld [vmem:[#allocation4 + $0x248] sm:$0xf]  ;;  %v7334_v2 = vor.u32 %v9561_v59, %v7333_v58 }
 0x13f   :  { %3644 = vmatpush.bf16.msrb.mxu3 %v8386_v8  ;;  %v9385_v8 = vld [vmem:[#allocation4 + $0x148] sm:$0xf0]  ;;  %v7909_v58 = vld [vmem:[#allocation4 + $0xc68] sm:$0xf] }
 0x140   :  { %3607 = vmatpush.bf16.msra.mxu0 %v7554_v14  ;;  %v7205_v14 = vld [vmem:[#allocation4 + $0x638] sm:$0xf]  ;;  %v6630_v18 = vor.u32 %v9385_v8, %v6629_v7  ;;  %v7749_v7 = vld [vmem:[#allocation4 + $0xb00] sm:$0xf]  ;;  %v9665_v8 = vld [vmem:[#allocation4 + $0xb20] sm:$0xf0] }
 0x141   :  { %3620 = vmatpush.bf16.msrb.mxu1 %v7810_v15  ;;  %3631 = vmatpush.bf16.msra.mxu2 %v8130_v19  ;;  %v9529_v15 = vld [vmem:[#allocation4 + $0x658] sm:$0xf0]  ;;  %v6886_v19 = vor.u32 %v9449_v13, %v6885_v12  ;;  %v7301_v12 = vld [vmem:[#allocation4 + $0x710] sm:$0xf]  ;;  %v9553_v13 = vld [vmem:[#allocation4 + $0x730] sm:$0xf0] }
 0x142   :  { %v7206_v26 = vor.u32 %v9529_v15, %v7205_v14  ;;  %v6502_v14 = vor.u32 %v9353_v63, %v6501_v62  ;;  %v9705_v59 = vld [vmem:[#allocation4 + $0xc88] sm:$0xf0]  ;;  %v8453_v62 = vld [vmem:[#allocation4 + $0x1130] sm:$0xf]  ;;  %v9841_v63 = vld [vmem:[#allocation4 + $0x1150] sm:$0xf0] }
 0x143   :  { %3645 = vmatpush.bf16.msrb.mxu3 %v8354_v27  ;;  %v7430_v27 = vor.u32 %v9585_v17, %v7429_v16  ;;  %v7750_v17 = vor.u32 %v9665_v8, %v7749_v7  ;;  %v7877_v7 = vld [vmem:[#allocation4 + $0xc20] sm:$0xf]  ;;  %v9697_v8 = vld [vmem:[#allocation4 + $0xc40] sm:$0xf0] }
 0x144   :  { %3608 = vmatpush.bf16.msra.mxu0 %v7522_v21  ;;  %v6598_v21 = vor.u32 %v9377_v25, %v6597_v24  ;;  %v7302_v25 = vor.u32 %v9553_v13, %v7301_v12  ;;  %v8421_v12 = vld [vmem:[#allocation4 + $0x10e8] sm:$0xf]  ;;  %v9833_v13 = vld [vmem:[#allocation4 + $0x1108] sm:$0xf0] }
 0x145   :  { %3621 = vmatpush.bf16.msrb.mxu1 %v7778_v35  ;;  %3632 = vmatpush.bf16.msra.mxu2 %v8098_v37  ;;  %v6854_v35 = vor.u32 %v9441_v30, %v6853_v29  ;;  %v6565_v37 = vld [vmem:[#allocation4 + $0x98] sm:$0xf]  ;;  %v9721_v30 = vld [vmem:[#allocation4 + $0xd18] sm:$0xf0] }
 0x146   :  { %v7973_v29 = vld [vmem:[#allocation4 + $0xcf8] sm:$0xf] }
 0x147   :  { %3646 = vmatpush.bf16.msrb.mxu3 %v8322_v42  ;;  %3609 = vmatmul.bf16.vlgmr.msra.gmra.mxu0 %v10282_v5  ;;  %v9433_v42 = vld [vmem:[#allocation4 + $0x2f8] sm:$0xf0] }
 0x148   :  { %3653 = vmatpush.bf16.msrb.mxu0 %v6726_v38  ;;  %3622 = vmatmul.bf16.vlgmr.msrb.gmra.mxu1 %v10284_v11  ;;  %v9369_v38 = vld [vmem:[#allocation4 + $0xb8] sm:$0xf0] }
 0x149   :  { %3666 = vmatpush.bf16.msra.mxu1 %v6982_v41  ;;  %3633 = vmatpush.bf16.msra.mxu2 %v8066_v53  ;;  %v6821_v41 = vld [vmem:[#allocation4 + $0x2d8] sm:$0xf]  ;;  %v6566_v47 = vor.u32 %v9369_v38, %v6565_v37  ;;  %v7142_v53 = vor.u32 %v9513_v44, %v7141_v43  ;;  %v7013_v37 = vld [vmem:[#allocation4 + $0x488] sm:$0xf]  ;;  %v7974_v38 = vor.u32 %v9721_v30, %v7973_v29  ;;  %v7941_v44 = vld [vmem:[#allocation4 + $0xcb0] sm:$0xf] }
 0x14a   :  { %v6822_v48 = vor.u32 %v9433_v42, %v6821_v41  ;;  %v7685_v41 = vld [vmem:[#allocation4 + $0xa70] sm:$0xf]  ;;  %v9649_v42 = vld [vmem:[#allocation4 + $0xa90] sm:$0xf0]  ;;  %v8518_v43 = vor.u32 %v9857_v34, %v8517_v33  ;;  %v8389_v29 = vld [vmem:[#allocation4 + $0x10a0] sm:$0xf] }
 0x14b   :  { %3647 = vmatpush.bf16.msrb.mxu3 %v8290_v56  ;;  %v7109_v56 = vld [vmem:[#allocation4 + $0x560] sm:$0xf]  ;;  %v9825_v30 = vld [vmem:[#allocation4 + $0x10c0] sm:$0xf0]  ;;  %v7557_v33 = vld [vmem:[#allocation4 + $0x950] sm:$0xf] }
 0x14c   :  { %3654 = vmatpush.bf16.msrb.mxu0 %v6694_v54  ;;  %v7366_v54 = vor.u32 %v9569_v46, %v7365_v45  ;;  %v7110_v1 = vor.u32 %v9505_v57, %v7109_v56  ;;  %v9713_v45 = vld [vmem:[#allocation4 + $0xcd0] sm:$0xf0]  ;;  %v8261_v46 = vld [vmem:[#allocation4 + $0xf80] sm:$0xf] }
 0x14d   :  { %3667 = vmatpush.bf16.msra.mxu1 %v6950_v55  ;;  %3634 = vmatpush.bf16.msra.mxu2 %v8034_v3  ;;  %v9425_v55 = vld [vmem:[#allocation4 + $0x2b0] sm:$0xf0]  ;;  %v9417_v3 = vld [vmem:[#allocation4 + $0x268] sm:$0xf0] }
 0x14e   :  { %3648 = vmatmul.bf16.vlgmr.msrb.gmra.mxu3 %v10289_v28  ;;  %v6790_v61 = vor.u32 %v9425_v55, %v6789_v22  ;;  %v6758_v15 = vor.u32 %v9417_v3, %v6757_v0  ;;  %v7653_v22 = vld [vmem:[#allocation4 + $0xa28] sm:$0xf]  ;;  %v9641_v55 = vld [vmem:[#allocation4 + $0xa48] sm:$0xf0]  ;;  %v9633_v3 = vld [vmem:[#allocation4 + $0xa00] sm:$0xf0] }
 0x14f   :  { %3692 = vmatpush.bf16.msra.mxu3 %v7494_v60  ;;  %v6534_v60 = vor.u32 %v9361_v52, %v6533_v49  ;;  %v9849_v49 = vld [vmem:[#allocation4 + $0x1198] sm:$0xf0]  ;;  %v7654_v0 = vor.u32 %v9641_v55, %v7653_v22  ;;  %v9617_v34 = vld [vmem:[#allocation4 + $0x970] sm:$0xf0]  ;;  %v9405_v22 = vld [vmem:[#allocation4 + $0x204] sm:$0xf] }
 0x150   :  { %3655 = vmatpush.bf16.msrb.mxu0 %v6662_v4  ;;  %3635 = vmatmul.bf16.vlgmr.msra.gmra.mxu2 %v10291_v36  ;;  %v7077_v4 = vld [vmem:[#allocation4 + $0x518] sm:$0xf]  ;;  %v6727_v55 = vld [vmem:[#allocation4 + $0x224] sm:$0xf0] }
 0x151   :  { %3668 = vmatpush.bf16.msra.mxu1 %v6918_v6  ;;  %3679 = vmatpush.bf16.msrb.mxu2 %v7238_v9  ;;  %v9497_v6 = vld [vmem:[#allocation4 + $0x538] sm:$0xf0]  ;;  %v8005_v9 = vld [vmem:[#allocation4 + $0xd40] sm:$0xf] }
 0x152   :  { %v7078_v16 = vor.u32 %v9497_v6, %v7077_v4  ;;  %v8454_v6 = vor.u32 %v9841_v63, %v8453_v62  ;;  %v865_v62 = vld [vmem:[#allocation2 + $0x5] ss:$8 sm:$0xf] }
 0x153   :  { %3693 = vmatpush.bf16.msra.mxu3 %v7462_v10  ;;  %v9729_v10 = vld [vmem:[#allocation4 + $0xd60] sm:$0xf0] }
 0x154   :  { %3656 = vmatpush.bf16.msrb.mxu0 %v6630_v18  ;;  %v7045_v18 = vld [vmem:[#allocation4 + $0x4d0] sm:$0xf]  ;;  %v8006_v24 = vor.u32 %v9729_v10, %v8005_v9  ;;  %v9777_v10 = vld [vmem:[#allocation4 + $0xf10] sm:$0xf0] }
 0x155   :  { %3669 = vmatpush.bf16.msra.mxu1 %v6886_v19  ;;  %3680 = vmatpush.bf16.msrb.mxu2 %v7206_v26  ;;  %v9489_v19 = vld [vmem:[#allocation4 + $0x4f0] sm:$0xf0]  ;;  %v7717_v26 = vld [vmem:[#allocation4 + $0xab8] sm:$0xf]  ;;  %v8197_v9 = vld [vmem:[#allocation4 + $0xef0] sm:$0xf] }
 0x156   :  { %v866_v63 = vld [vmem:[#allocation2 + $0x5] ss:$8 sm:$0xf0] }
 0x157   :  { %3694 = vmatpush.bf16.msra.mxu3 %v7430_v27  ;;  %v9657_v27 = vld [vmem:[#allocation4 + $0xad8] sm:$0xf0] }
 0x158   :  { %3657 = vmatpush.bf16.msrb.mxu0 %v6598_v21  ;;  %v7046_v21 = vor.u32 %v9489_v19, %v7045_v18  ;;  %v8198_v18 = vor.u32 %v9777_v10, %v8197_v9  ;;  %v8422_v19 = vor.u32 %v9833_v13, %v8421_v12  ;;  %v9461_v9 = vld [vmem:[#allocation4 + $0x3fc] sm:$0xf]  ;;  %v6951_v10 = vld [vmem:[#allocation4 + $0x41c] sm:$0xf0]  ;;  %v8293_v12 = vld [vmem:[#allocation4 + $0xfc8] sm:$0xf] }
 0x159   :  { %3670 = vmatpush.bf16.msra.mxu1 %v6854_v35  ;;  %3681 = vmatpush.bf16.msrb.mxu2 %v7174_v39  ;;  %v7718_v35 = vor.u32 %v9657_v27, %v7717_v26  ;;  %v7270_v39 = vor.u32 %v9545_v20, %v7269_v32  ;;  %v8165_v26 = vld [vmem:[#allocation4 + $0xea8] sm:$0xf]  ;;  %v9769_v27 = vld [vmem:[#allocation4 + $0xec8] sm:$0xf0] }
 0x15a   :  { %v9801_v13 = vld [vmem:[#allocation4 + $0xfe8] sm:$0xf0] }
 0x15b   :  { %3695 = vmatpush.bf16.msra.mxu3 %v7398_v40  ;;  %v9481_v40 = vld [vmem:[#allocation4 + $0x4a8] sm:$0xf0] }
 0x15c   :  { %3658 = vmatpush.bf16.msrb.mxu0 %v6566_v47  ;;  %v9793_v47 = vld [vmem:[#allocation4 + $0xfa0] sm:$0xf0]  ;;  %v7014_v52 = vor.u32 %v9481_v40, %v7013_v37  ;;  %v7813_v37 = vld [vmem:[#allocation4 + $0xb90] sm:$0xf] }
 0x15d   :  { %3671 = vmatpush.bf16.msra.mxu1 %v6822_v48  ;;  %3682 = vmatpush.bf16.msrb.mxu2 %v7142_v53  ;;  %v8485_v48 = vld [vmem:[#allocation4 + $0x1178] sm:$0xf]  ;;  %v7686_v53 = vor.u32 %v9649_v42, %v7685_v41  ;;  %v8262_v56 = vor.u32 %v9793_v47, %v8261_v46  ;;  %v9761_v40 = vld [vmem:[#allocation4 + $0xe80] sm:$0xf0]  ;;  %v9817_v42 = vld [vmem:[#allocation4 + $0x1078] sm:$0xf0] }
 0x15e   :  { %v8486_v57 = vor.u32 %v9849_v49, %v8485_v48  ;;  %v8357_v41 = vld [vmem:[#allocation4 + $0x1058] sm:$0xf]  ;;  %v9609_v46 = vld [vmem:[#allocation4 + $0x928] sm:$0xf0]  ;;  %v7781_v47 = vld [vmem:[#allocation4 + $0xb48] sm:$0xf] }
 0x15f   :  { %3696 = vmatpush.bf16.msra.mxu3 %v7366_v54  ;;  %v7942_v54 = vor.u32 %v9713_v45, %v7941_v44  ;;  %v7525_v45 = vld [vmem:[#allocation4 + $0x908] sm:$0xf]  ;;  %v8358_v49 = vor.u32 %v9817_v42, %v8357_v41 }
 0x160   :  { %3659 = vmatpush.bf16.msrb.mxu0 %v6534_v60  ;;  %v8229_v60 = vld [vmem:[#allocation4 + $0xf38] sm:$0xf] }
 0x161   :  { %3672 = vmatpush.bf16.msra.mxu1 %v6790_v61  ;;  %3683 = vmatpush.bf16.msrb.mxu2 %v7110_v1  ;;  %v9785_v61 = vld [vmem:[#allocation4 + $0xf58] sm:$0xf0]  ;;  %v7910_v1 = vor.u32 %v9705_v59, %v7909_v58  ;;  %v8325_v58 = vld [vmem:[#allocation4 + $0x1010] sm:$0xf]  ;;  %v9809_v59 = vld [vmem:[#allocation4 + $0x1030] sm:$0xf0] }
 0x162   :  { %v8230_v4 = vor.u32 %v9785_v61, %v8229_v60  ;;  %v7526_v60 = vor.u32 %v9609_v46, %v7525_v45 }
 0x163   :  { %3697 = vmatpush.bf16.msra.mxu3 %v7334_v2  ;;  %v7621_v2 = vld [vmem:[#allocation4 + $0x9e0] sm:$0xf] }
 0x164   :  { %3660 = vmatpush.bf16.msrb.mxu0 %v6502_v14  ;;  %v7622_v14 = vor.u32 %v9633_v3, %v7621_v2  ;;  %v8069_v2 = vld [vmem:[#allocation4 + $0xdd0] sm:$0xf]  ;;  %v9745_v3 = vld [vmem:[#allocation4 + $0xdf0] sm:$0xf0] }
 0x165   :  { %3673 = vmatpush.bf16.msra.mxu1 %v6758_v15  ;;  %3684 = vmatpush.bf16.msrb.mxu2 %v7078_v16  ;;  %v7878_v15 = vor.u32 %v9697_v8, %v7877_v7  ;;  %v7589_v16 = vld [vmem:[#allocation4 + $0x998] sm:$0xf]  ;;  %v9397_v7 = vld [vmem:[#allocation4 + $0x1bc] sm:$0xf]  ;;  %v6695_v8 = vld [vmem:[#allocation4 + $0x1dc] sm:$0xf0] }
 0x167   :  { %3698 = vmatpush.bf16.msra.mxu3 %v7302_v25  ;;  %3661 = vmatmul.bf16.vlgmr.msrb.gmra.mxu0 %v10253_v50  ;;  %v9689_v25 = vld [vmem:[#allocation4 + $0xbf8] sm:$0xf0] }
 0x168   :  { %3705 = vmatpush.bf16.msra.mxu0 %v7750_v17  ;;  %3674 = vmatmul.bf16.vlgmr.msra.gmra.mxu1 %v10255_v51  ;;  %v9625_v17 = vld [vmem:[#allocation4 + $0x9b8] sm:$0xf0] }
 0x169   :  { %3718 = vmatpush.bf16.msrb.mxu1 %v8006_v24  ;;  %3685 = vmatpush.bf16.msrb.mxu2 %v7046_v21  ;;  %v7845_v24 = vld [vmem:[#allocation4 + $0xbd8] sm:$0xf]  ;;  %v7590_v32 = vor.u32 %v9625_v17, %v7589_v16  ;;  %v8166_v21 = vor.u32 %v9769_v27, %v8165_v26  ;;  %v7495_v16 = vld [vmem:[#allocation4 + $0x8e4] sm:$0xf0]  ;;  %v8070_v17 = vor.u32 %v9745_v3, %v8069_v2  ;;  %v9389_v27 = vld [vmem:[#allocation4 + $0x174] sm:$0xf] }
 0x16a   :  { %v7846_v20 = vor.u32 %v9689_v25, %v7845_v24  ;;  %v9737_v24 = vld [vmem:[#allocation4 + $0xda8] sm:$0xf0]  ;;  %v6954_v25 = vor.u32 %v9461_v9, %v6951_v10  ;;  %v8294_v26 = vor.u32 %v9801_v13, %v8293_v12  ;;  %v7399_v3 = vld [vmem:[#allocation4 + $0x80c] sm:$0xf0]  ;;  %v9365_v9 = vld [vmem:[#allocation4 + $0x9c] sm:$0xf] }
 0x16b   :  { %3699 = vmatpush.bf16.msra.mxu3 %v7270_v39  ;;  %v8133_v39 = vld [vmem:[#allocation4 + $0xe60] sm:$0xf]  ;;  %v9573_v2 = vld [vmem:[#allocation4 + $0x7ec] sm:$0xf] }
 0x16c   :  { %3706 = vmatpush.bf16.msra.mxu0 %v7718_v35  ;;  %v8390_v35 = vor.u32 %v9825_v30, %v8389_v29  ;;  %v8134_v48 = vor.u32 %v9761_v40, %v8133_v39  ;;  %v6663_v29 = vld [vmem:[#allocation4 + $0x194] sm:$0xf0]  ;;  %v9453_v30 = vld [vmem:[#allocation4 + $0x3b4] sm:$0xf]  ;;  %v6567_v10 = vld [vmem:[#allocation4 + $0xbc] sm:$0xf0]  ;;  %v7402_v13 = vor.u32 %v9573_v2, %v7399_v3 }
 0x16d   :  { %3719 = vmatpush.bf16.msrb.mxu1 %v7974_v38  ;;  %3686 = vmatpush.bf16.msrb.mxu2 %v7014_v52  ;;  %v9681_v38 = vld [vmem:[#allocation4 + $0xbb0] sm:$0xf0]  ;;  %v9673_v52 = vld [vmem:[#allocation4 + $0xb68] sm:$0xf0]  ;;  %v6666_v39 = vor.u32 %v9389_v27, %v6663_v29  ;;  %v6535_v29 = vld [vmem:[#allocation4 + $0x74] sm:$0xf0] }
 0x16e   :  { %3700 = vmatmul.bf16.vlgmr.msra.gmra.mxu3 %v10269_v23  ;;  %v7814_v44 = vor.u32 %v9681_v38, %v7813_v37  ;;  %v7782_v61 = vor.u32 %v9673_v52, %v7781_v47  ;;  %v7463_v37 = vld [vmem:[#allocation4 + $0x89c] sm:$0xf0]  ;;  %v9525_v52 = vld [vmem:[#allocation4 + $0x63c] sm:$0xf]  ;;  %v9357_v27 = vld [vmem:[#allocation4 + $0x54] sm:$0xf] }
 0x16f   :  { %3744 = vmatpush.bf16.msrb.mxu3 %v8518_v43  ;;  %v7558_v43 = vor.u32 %v9617_v34, %v7557_v33  ;;  %v9533_v33 = vld [vmem:[#allocation4 + $0x684] sm:$0xf] }
 0x170   :  { %3707 = vmatpush.bf16.msra.mxu0 %v7686_v53  ;;  %3687 = vmatmul.bf16.vlgmr.msrb.gmra.mxu2 %v10271_v31  ;;  %v8101_v53 = vld [vmem:[#allocation4 + $0xe18] sm:$0xf] }
 0x171   :  { %3720 = vmatpush.bf16.msrb.mxu1 %v7942_v54  ;;  %3731 = vmatpush.bf16.msra.mxu2 %v8262_v56  ;;  %v9753_v54 = vld [vmem:[#allocation4 + $0xe38] sm:$0xf0]  ;;  %v9469_v56 = vld [vmem:[#allocation4 + $0x444] sm:$0xf] }
 0x173   :  { %3745 = vmatpush.bf16.msrb.mxu3 %v8486_v57  ;;  %v6983_v57 = vld [vmem:[#allocation4 + $0x464] sm:$0xf0] }
 0x174   :  { %3708 = vmatpush.bf16.msra.mxu0 %v7654_v0  ;;  %v8102_v0 = vor.u32 %v9753_v54, %v8101_v53  ;;  %v7207_v53 = vld [vmem:[#allocation4 + $0x65c] sm:$0xf0]  ;;  %v9581_v54 = vld [vmem:[#allocation4 + $0x834] sm:$0xf] }
 0x175   :  { %3721 = vmatpush.bf16.msrb.mxu1 %v7910_v1  ;;  %3732 = vmatpush.bf16.msra.mxu2 %v8230_v4  ;;  %v6730_v1 = vor.u32 %v9405_v22, %v6727_v55  ;;  %v6986_v4 = vor.u32 %v9469_v56, %v6983_v57  ;;  %v7431_v22 = vld [vmem:[#allocation4 + $0x854] sm:$0xf0] }
 0x177   :  { %3746 = vmatpush.bf16.msrb.mxu3 %v8454_v6  ;;  %v8326_v6 = vor.u32 %v9809_v59, %v8325_v58  ;;  %v9373_v58 = vld [vmem:[#allocation4 + $0xe4] sm:$0xf]  ;;  %v6599_v59 = vld [vmem:[#allocation4 + $0x104] sm:$0xf0] }
 0x178   :  { %3709 = vmatpush.bf16.msra.mxu0 %v7622_v14  ;;  %v10307_v14 = vor.u32 %v866_v63, %v865_v62  ;;  %v9437_v62 = vld [vmem:[#allocation4 + $0x324] sm:$0xf]  ;;  %v6855_v63 = vld [vmem:[#allocation4 + $0x344] sm:$0xf0] }
 0x179   :  { %3722 = vmatpush.bf16.msrb.mxu1 %v7878_v15  ;;  %3733 = vmatpush.bf16.msra.mxu2 %v8198_v18  ;;  %v9597_v15 = vld [vmem:[#allocation4 + $0x8c4] sm:$0xf]  ;;  %v6698_v18 = vor.u32 %v9397_v7, %v6695_v8 }
 0x17a   :  { %v869_v34 = vperm.slane %v10307_v14, 0 }
 0x17b   :  { %3747 = vmatpush.bf16.msrb.mxu3 %v8422_v19  ;;  %v8037_v19 = vld [vmem:[#allocation4 + $0xd88] sm:$0xf] }
 0x17c   :  { %3710 = vmatpush.bf16.msra.mxu0 %v7590_v32  ;;  %v7498_v32 = vor.u32 %v9597_v15, %v7495_v16  ;;  %v8038_v38 = vor.u32 %v9737_v24, %v8037_v19  ;;  %v9429_v15 = vld [vmem:[#allocation4 + $0x2dc] sm:$0xf]  ;;  %v6823_v16 = vld [vmem:[#allocation4 + $0x2fc] sm:$0xf0]  ;;  %v9565_v19 = vld [vmem:[#allocation4 + $0x7a4] sm:$0xf] }
 0x17d   :  { %3723 = vmatpush.bf16.msrb.mxu1 %v7846_v20  ;;  %3734 = vmatpush.bf16.msra.mxu2 %v8166_v21  ;;  %v6919_v20 = vld [vmem:[#allocation4 + $0x3d4] sm:$0xf0]  ;;  %v7239_v21 = vld [vmem:[#allocation4 + $0x6a4] sm:$0xf0] }
 0x17e   :  { %v6922_v40 = vor.u32 %v9453_v30, %v6919_v20  ;;  %v7242_v45 = vor.u32 %v9533_v33, %v7239_v21  ;;  %v7367_v24 = vld [vmem:[#allocation4 + $0x7c4] sm:$0xf0]  ;;  %v9421_v33 = vld [vmem:[#allocation4 + $0x294] sm:$0xf]  ;;  %v9501_v21 = vld [vmem:[#allocation4 + $0x564] sm:$0xf] }
 0x17f   :  { %3748 = vmatpush.bf16.msrb.mxu3 %v8390_v35  ;;  %v9589_v35 = vld [vmem:[#allocation4 + $0x87c] sm:$0xf]  ;;  %v7370_v20 = vor.u32 %v9565_v19, %v7367_v24  ;;  %v9853_v19 = vld [vmem:[#allocation4 + $0x11c4] sm:$0xf]  ;;  %v8519_v24 = vld [vmem:[#allocation4 + $0x11e4] sm:$0xf0] }
 0x180   :  { %3711 = vmatpush.bf16.msra.mxu0 %v7558_v43  ;;  %v9381_v43 = vld [vmem:[#allocation4 + $0x12c] sm:$0xf]  ;;  %v7466_v47 = vor.u32 %v9589_v35, %v7463_v37  ;;  %v7111_v37 = vld [vmem:[#allocation4 + $0x584] sm:$0xf0] }
 0x181   :  { %3724 = vmatpush.bf16.msrb.mxu1 %v7814_v44  ;;  %3735 = vmatpush.bf16.msra.mxu2 %v8134_v48  ;;  %v6631_v44 = vld [vmem:[#allocation4 + $0x14c] sm:$0xf0]  ;;  %v9445_v48 = vld [vmem:[#allocation4 + $0x36c] sm:$0xf] }
 0x182   :  { %v6634_v56 = vor.u32 %v9381_v43, %v6631_v44  ;;  %v9349_v44 = vld [vmem:[#allocation4 + $0xc] sm:$0xf] }
 0x183   :  { %3749 = vmatpush.bf16.msrb.mxu3 %v8358_v49  ;;  %v6887_v49 = vld [vmem:[#allocation4 + $0x38c] sm:$0xf0] }
 0x184   :  { %3712 = vmatpush.bf16.msra.mxu0 %v7526_v60  ;;  %v3454_v41 = vpop.f32.mrf.mxu0  ;;  %v3467_v42 = vpop.f32.mrf.mxu1  ;;  %v6890_v57 = vor.u32 %v9445_v48, %v6887_v49  ;;  %v7210_v60 = vor.u32 %v9525_v52, %v7207_v53  ;;  %v6759_v53 = vld [vmem:[#allocation4 + $0x26c] sm:$0xf0] }
 0x185   :  { %3725 = vmatpush.bf16.msrb.mxu1 %v7782_v61  ;;  %3736 = vmatpush.bf16.msra.mxu2 %v8102_v0  ;;  %v3455_v46 = vadd.f32 %v3454_v41, %v869_v34  ;;  %v7434_v61 = vor.u32 %v9581_v54, %v7431_v22  ;;  %v9517_v0 = vld [vmem:[#allocation4 + $0x5f4] sm:$0xf]  ;;  %v6791_v34 = vld [vmem:[#allocation4 + $0x2b4] sm:$0xf0]  ;;  %v6538_v41 = vor.u32 %v9357_v27, %v6535_v29  ;;  %v9493_v54 = vld [vmem:[#allocation4 + $0x51c] sm:$0xf] }
 0x186   :  { %v7079_v22 = vld [vmem:[#allocation4 + $0x53c] sm:$0xf0]  ;;  %v9477_v29 = vld [vmem:[#allocation4 + $0x48c] sm:$0xf] }
 0x187   :  { %3750 = vmatpush.bf16.msrb.mxu3 %v8326_v6  ;;  %3713 = vmatmul.bf16.vlgmr.msra.gmra.mxu0 %v10282_v5  ;;  %v3468_v55 = vadd.f32 %v3467_v42, %v3455_v46  ;;  %v6858_v6 = vor.u32 %v9437_v62, %v6855_v63  ;;  %v6794_v42 = vor.u32 %v9421_v33, %v6791_v34  ;;  %v9413_v46 = vld [vmem:[#allocation4 + $0x24c] sm:$0xf]  ;;  %v9645_v33 = vld [vmem:[#allocation4 + $0xa74] sm:$0xf]  ;;  %v7687_v34 = vld [vmem:[#allocation4 + $0xa94] sm:$0xf0] }
 0x188   :  { %3757 = vmatpush.bf16.msrb.mxu0 %v6730_v1  ;;  %3726 = vmatmul.bf16.vlgmr.msrb.gmra.mxu1 %v10284_v11  ;;  %v7175_v1 = vld [vmem:[#allocation4 + $0x614] sm:$0xf0]  ;;  %v6762_v63 = vor.u32 %v9413_v46, %v6759_v53 }
 0x189   :  { %3770 = vmatpush.bf16.msra.mxu1 %v6986_v4  ;;  %3737 = vmatpush.bf16.msra.mxu2 %v8070_v17  ;;  %v6602_v4 = vor.u32 %v9373_v58, %v6599_v59  ;;  %v7178_v12 = vor.u32 %v9517_v0, %v7175_v1  ;;  %v9509_v17 = vld [vmem:[#allocation4 + $0x5ac] sm:$0xf]  ;;  %v8007_v59 = vld [vmem:[#allocation4 + $0xd64] sm:$0xf0]  ;;  %v7082_v1 = vor.u32 %v9493_v54, %v7079_v22 }
 0x18a   :  { %v9701_v22 = vld [vmem:[#allocation4 + $0xc6c] sm:$0xf] }
 0x18b   :  { %3751 = vmatpush.bf16.msrb.mxu3 %v8294_v26  ;;  %v6826_v26 = vor.u32 %v9429_v15, %v6823_v16  ;;  %v7975_v15 = vld [vmem:[#allocation4 + $0xd1c] sm:$0xf0]  ;;  %v9541_v16 = vld [vmem:[#allocation4 + $0x6cc] sm:$0xf] }
 0x18c   :  { %3758 = vmatpush.bf16.msrb.mxu0 %v6698_v18  ;;  %v3456_v7 = vpop.f32.mrf.mxu0  ;;  %v3469_v8 = vpop.f32.mrf.mxu1  ;;  %v7143_v18 = vld [vmem:[#allocation4 + $0x5cc] sm:$0xf0] }
 0x18d   :  { %3771 = vmatpush.bf16.msra.mxu1 %v6954_v25  ;;  %3738 = vmatpush.bf16.msra.mxu2 %v8038_v38  ;;  %v6570_v25 = vor.u32 %v9365_v9, %v6567_v10  ;;  %v7146_v30 = vor.u32 %v9509_v17, %v7143_v18  ;;  %v9557_v38 = vld [vmem:[#allocation4 + $0x75c] sm:$0xf]  ;;  %v7271_v17 = vld [vmem:[#allocation4 + $0x6ec] sm:$0xf0] }
 0x18e   :  { %3752 = vmatmul.bf16.vlgmr.msrb.gmra.mxu3 %v10289_v28  ;;  %v9653_v10 = vld [vmem:[#allocation4 + $0xabc] sm:$0xf] }
 0x18f   :  { %3796 = vmatpush.bf16.msra.mxu3 %v7498_v32 }
 0x190   :  { %3759 = vmatpush.bf16.msrb.mxu0 %v6666_v39  ;;  %3739 = vmatmul.bf16.vlgmr.msra.gmra.mxu2 %v10291_v36  ;;  %v7335_v39 = vld [vmem:[#allocation4 + $0x77c] sm:$0xf0] }
 0x191   :  { %3772 = vmatpush.bf16.msra.mxu1 %v6922_v40  ;;  %3783 = vmatpush.bf16.msrb.mxu2 %v7242_v45  ;;  %v3493_v32 = vpop.f32.mrf.mxu3  ;;  %v6503_v45 = vld [vmem:[#allocation4 + $0x2c] sm:$0xf0]  ;;  %v7338_v52 = vor.u32 %v9557_v38, %v7335_v39  ;;  %v9789_v38 = vld [vmem:[#allocation4 + $0xf84] sm:$0xf]  ;;  %v8263_v39 = vld [vmem:[#allocation4 + $0xfa4] sm:$0xf0] }
 0x192   :  { %v3480_v35 = vpop.f32.mrf.mxu2  ;;  %v6506_v62 = vor.u32 %v9349_v44, %v6503_v45  ;;  %v870_v44 = vperm.slane %v10307_v14, 1  ;;  %v7690_v45 = vor.u32 %v9645_v33, %v7687_v34  ;;  %v8167_v33 = vld [vmem:[#allocation4 + $0xecc] sm:$0xf0]  ;;  %v9821_v34 = vld [vmem:[#allocation4 + $0x10a4] sm:$0xf] }
 0x193   :  { %3797 = vmatpush.bf16.msra.mxu3 %v7466_v47  ;;  %v3481_v40 = vadd.f32 %v3480_v35, %v3468_v55  ;;  %v7114_v47 = vor.u32 %v9501_v21, %v7111_v37  ;;  %v9725_v55 = vld [vmem:[#allocation4 + $0xd44] sm:$0xf]  ;;  %v8522_v21 = vor.u32 %v9853_v19, %v8519_v24  ;;  %v9709_v35 = vld [vmem:[#allocation4 + $0xcb4] sm:$0xf]  ;;  %v7943_v37 = vld [vmem:[#allocation4 + $0xcd4] sm:$0xf0] }
 0x194   :  { %3760 = vmatpush.bf16.msrb.mxu0 %v6634_v56  ;;  %v3506_v43 = vpop.f32.mrf.mxu0  ;;  %v9661_v56 = vld [vmem:[#allocation4 + $0xb04] sm:$0xf]  ;;  %v8010_v7 = vor.u32 %v9725_v55, %v8007_v59  ;;  %v7946_v46 = vor.u32 %v9709_v35, %v7943_v37  ;;  %v9837_v59 = vld [vmem:[#allocation4 + $0x1134] sm:$0xf]  ;;  %v9621_v24 = vld [vmem:[#allocation4 + $0x99c] sm:$0xf] }
 0x195   :  { %3773 = vmatpush.bf16.msra.mxu1 %v6890_v57  ;;  %3784 = vmatpush.bf16.msrb.mxu2 %v7210_v60  ;;  %v3494_v48 = vadd.f32 %v3493_v32, %v3481_v40  ;;  %v3519_v49 = vpop.f32.mrf.mxu1  ;;  %v7751_v57 = vld [vmem:[#allocation4 + $0xb24] sm:$0xf0]  ;;  %v9549_v60 = vld [vmem:[#allocation4 + $0x714] sm:$0xf]  ;;  %v7274_v32 = vor.u32 %v9541_v16, %v7271_v17  ;;  %v9845_v40 = vld [vmem:[#allocation4 + $0x117c] sm:$0xf] }
 0x196   :  { %v7754_v3 = vor.u32 %v9661_v56, %v7751_v57  ;;  %v7911_v56 = vld [vmem:[#allocation4 + $0xc8c] sm:$0xf0]  ;;  %v9781_v57 = vld [vmem:[#allocation4 + $0xf3c] sm:$0xf] }
 0x197   :  { %3798 = vmatpush.bf16.msra.mxu3 %v7434_v61  ;;  %v3507_v58 = vadd.f32 %v3506_v43, %v3494_v48  ;;  %v7303_v61 = vld [vmem:[#allocation4 + $0x734] sm:$0xf0]  ;;  %v9637_v48 = vld [vmem:[#allocation4 + $0xa2c] sm:$0xf] }
 0x198   :  { %3761 = vmatpush.bf16.msrb.mxu0 %v6602_v4  ;;  %v9485_v4 = vld [vmem:[#allocation4 + $0x4d4] sm:$0xf]  ;;  %v7306_v8 = vor.u32 %v9549_v60, %v7303_v61  ;;  %v8455_v60 = vld [vmem:[#allocation4 + $0x1154] sm:$0xf0] }
 0x199   :  { %3774 = vmatpush.bf16.msra.mxu1 %v6858_v6  ;;  %3785 = vmatpush.bf16.msrb.mxu2 %v7178_v12  ;;  %v3520_v0 = vadd.f32 %v3519_v49, %v3507_v58  ;;  %v3495_v2 = vpop.f32.mrf.mxu3  ;;  %v7047_v6 = vld [vmem:[#allocation4 + $0x4f4] sm:$0xf0]  ;;  %v7719_v12 = vld [vmem:[#allocation4 + $0xadc] sm:$0xf0]  ;;  %v7655_v49 = vld [vmem:[#allocation4 + $0xa4c] sm:$0xf0] }
 0x19a   :  { %v3482_v9 = vpop.f32.mrf.mxu2  ;;  %v7722_v27 = vor.u32 %v9653_v10, %v7719_v12  ;;  %v8231_v58 = vld [vmem:[#allocation4 + $0xf5c] sm:$0xf0]  ;;  %v7914_v2 = vor.u32 %v9701_v22, %v7911_v56  ;;  %v9773_v10 = vld [vmem:[#allocation4 + $0xef4] sm:$0xf]  ;;  %v8199_v12 = vld [vmem:[#allocation4 + $0xf14] sm:$0xf0] }
 0x19b   :  { %3799 = vmatpush.bf16.msra.mxu3 %v7402_v13  ;;  %v9717_v13 = vld [vmem:[#allocation4 + $0xcfc] sm:$0xf]  ;;  %v7879_v9 = vld [vmem:[#allocation4 + $0xc44] sm:$0xf0]  ;;  %v7527_v22 = vld [vmem:[#allocation4 + $0x92c] sm:$0xf0] }
 0x19c   :  { %3762 = vmatpush.bf16.msrb.mxu0 %v6570_v25  ;;  %v3508_v18 = vpop.f32.mrf.mxu0  ;;  %v7050_v25 = vor.u32 %v9485_v4, %v7047_v6  ;;  %v8234_v6 = vor.u32 %v9781_v57, %v8231_v58  ;;  %v9669_v56 = vld [vmem:[#allocation4 + $0xb4c] sm:$0xf] }
 0x19d   :  { %3775 = vmatpush.bf16.msra.mxu1 %v6826_v26  ;;  %3786 = vmatpush.bf16.msrb.mxu2 %v7146_v30  ;;  %v3521_v26 = vpop.f32.mrf.mxu1  ;;  %v7978_v30 = vor.u32 %v9717_v13, %v7975_v15  ;;  %v9829_v13 = vld [vmem:[#allocation4 + $0x10ec] sm:$0xf]  ;;  %v8423_v15 = vld [vmem:[#allocation4 + $0x110c] sm:$0xf0] }
 0x19e   :  { %v8202_v26 = vor.u32 %v9773_v10, %v8199_v12 }
 0x19f   :  { %3800 = vmatpush.bf16.msra.mxu3 %v7370_v20  ;;  %v7015_v20 = vld [vmem:[#allocation4 + $0x4ac] sm:$0xf0] }
 0x1a0   :  { %3763 = vmatpush.bf16.msrb.mxu0 %v6538_v41  ;;  %v8487_v41 = vld [vmem:[#allocation4 + $0x119c] sm:$0xf0] }
 0x1a1   :  { %3776 = vmatpush.bf16.msra.mxu1 %v6794_v42  ;;  %3787 = vmatpush.bf16.msrb.mxu2 %v7114_v47  ;;  %v7018_v42 = vor.u32 %v9477_v29, %v7015_v20  ;;  %v3545_v43 = vpop.f32.mrf.mxu3  ;;  %v8490_v54 = vor.u32 %v9845_v40, %v8487_v41  ;;  %v9685_v29 = vld [vmem:[#allocation4 + $0xbdc] sm:$0xf]  ;;  %v7559_v40 = vld [vmem:[#allocation4 + $0x974] sm:$0xf0] }
 0x1a2   :  { %v3532_v47 = vpop.f32.mrf.mxu2 }
 0x1a3   :  { %3801 = vmatpush.bf16.msra.mxu3 %v7338_v52  ;;  %v8266_v52 = vor.u32 %v9789_v38, %v8263_v39  ;;  %v3533_v53 = vadd.f32 %v3532_v47, %v3520_v0  ;;  %v9629_v0 = vld [vmem:[#allocation4 + $0x9e4] sm:$0xf]  ;;  %v9613_v39 = vld [vmem:[#allocation4 + $0x954] sm:$0xf]  ;;  %v9813_v47 = vld [vmem:[#allocation4 + $0x105c] sm:$0xf] }
 0x1a4   :  { %3764 = vmatpush.bf16.msrb.mxu0 %v6506_v62  ;;  %v3558_v55 = vpop.f32.mrf.mxu0 }
 0x1a5   :  { %3777 = vmatpush.bf16.msra.mxu1 %v6762_v63  ;;  %3788 = vmatpush.bf16.msrb.mxu2 %v7082_v1  ;;  %v10318_v61 = vadd.f32 %v3545_v43, %v3533_v53  ;;  %v3559_v62 = vadd.f32 %v3558_v55, %v870_v44  ;;  %v3571_v63 = vpop.f32.mrf.mxu1  ;;  %v7658_v1 = vor.u32 %v9637_v48, %v7655_v49  ;;  %v9677_v43 = vld [vmem:[#allocation4 + $0xb94] sm:$0xf]  ;;  %v7815_v44 = vld [vmem:[#allocation4 + $0xbb4] sm:$0xf0]  ;;  %v8359_v48 = vld [vmem:[#allocation4 + $0x107c] sm:$0xf0] }
 0x1a6   :  { %v7818_v53 = vor.u32 %v9677_v43, %v7815_v44  ;;  %v8362_v58 = vor.u32 %v9813_v47, %v8359_v48  ;;  %v9458_v43 = vld [vmem:[#allocation4 + $0x3d8] sm:$0xf0]  ;;  %v7245_v44 = vld [vmem:[#allocation4 + $0x688] sm:$0xf]  ;;  %v9594_v47 = vld [vmem:[#allocation4 + $0x8a0] sm:$0xf0] }
 0x1a7   :  { %3802 = vmatpush.bf16.msra.mxu3 %v7306_v8  ;;  %3765 = vmatmul.bf16.vlgmr.msrb.gmra.mxu0 %v10253_v50  ;;  %v3572_v4 = vadd.f32 %v3571_v63, %v3559_v62  ;;  %v9693_v8 = vld [vmem:[#allocation4 + $0xc24] sm:$0xf]  ;;  %v8103_v62 = vld [vmem:[#allocation4 + $0xe3c] sm:$0xf0]  ;;  %vm4277_vm13 = vcmp.gt.f32.partialorder %v10318_v61, 0.0 }
 0x1a8   :  { %3809 = vmatpush.bf16.msra.mxu0 %v7754_v3  ;;  %3778 = vmatmul.bf16.vlgmr.msra.gmra.mxu1 %v10255_v51  ;;  %v7623_v3 = vld [vmem:[#allocation4 + $0xa04] sm:$0xf0]  ;;  %v7882_v18 = vor.u32 %v9693_v8, %v7879_v9 }
 0x1a9   :  { %3822 = vmatpush.bf16.msrb.mxu1 %v8010_v7  ;;  %3789 = vmatpush.bf16.msrb.mxu2 %v7050_v25  ;;  %v8458_v7 = vor.u32 %v9837_v59, %v8455_v60  ;;  %v3547_v16 = vpop.f32.mrf.mxu3  ;;  %v7626_v17 = vor.u32 %v9629_v0, %v7623_v3  ;;  %v7591_v25 = vld [vmem:[#allocation4 + $0x9bc] sm:$0xf0]  ;;  %v7783_v59 = vld [vmem:[#allocation4 + $0xb6c] sm:$0xf0]  ;;  %v9749_v60 = vld [vmem:[#allocation4 + $0xe1c] sm:$0xf] }
 0x1aa   :  { %v3534_v19 = vpop.f32.mrf.mxu2  ;;  %v7594_v37 = vor.u32 %v9621_v24, %v7591_v25  ;;  %v6989_v0 = vld [vmem:[#allocation4 + $0x448] sm:$0xf]  ;;  %v9474_v3 = vld [vmem:[#allocation4 + $0x468] sm:$0xf0]  ;;  %v7786_v9 = vor.u32 %v9669_v56, %v7783_v59  ;;  %v8106_v12 = vor.u32 %v9749_v60, %v8103_v62  ;;  %v8071_v16 = vld [vmem:[#allocation4 + $0xdf4] sm:$0xf0] }
 0x1ab   :  { %3803 = vmatpush.bf16.msra.mxu3 %v7274_v32  ;;  %v9765_v32 = vld [vmem:[#allocation4 + $0xeac] sm:$0xf]  ;;  %v9402_v19 = vld [vmem:[#allocation4 + $0x1e0] sm:$0xf0]  ;;  %v6957_v24 = vld [vmem:[#allocation4 + $0x400] sm:$0xf] }
 0x1ac   :  { %3810 = vmatpush.bf16.msra.mxu0 %v7722_v27  ;;  %v8426_v27 = vor.u32 %v9829_v13, %v8423_v15  ;;  %v3560_v20 = vpop.f32.mrf.mxu0  ;;  %v8170_v41 = vor.u32 %v9765_v32, %v8167_v33  ;;  %v9741_v15 = vld [vmem:[#allocation4 + $0xdd4] sm:$0xf]  ;;  %v9466_v25 = vld [vmem:[#allocation4 + $0x420] sm:$0xf0]  ;;  %v9602_v32 = vld [vmem:[#allocation4 + $0x8e8] sm:$0xf0] }
 0x1ad   :  { %3823 = vmatpush.bf16.msrb.mxu1 %v7978_v30  ;;  %3790 = vmatpush.bf16.msrb.mxu2 %v7018_v42  ;;  %v7847_v30 = vld [vmem:[#allocation4 + $0xbfc] sm:$0xf0]  ;;  %v3573_v35 = vpop.f32.mrf.mxu1  ;;  %v8074_v20 = vor.u32 %v9741_v15, %v8071_v16  ;;  %v9530_v62 = vld [vmem:[#allocation4 + $0x660] sm:$0xf0]  ;;  %v9442_v15 = vld [vmem:[#allocation4 + $0x348] sm:$0xf0] }
 0x1ae   :  { %3804 = vmatmul.bf16.vlgmr.msra.gmra.mxu3 %v10269_v23  ;;  %v7850_v38 = vor.u32 %v9685_v29, %v7847_v30  ;;  %v7501_v30 = vld [vmem:[#allocation4 + $0x8c8] sm:$0xf]  ;;  %v6958_v35 = vor.u32 %v9466_v25, %v6957_v24  ;;  %v7181_v16 = vld [vmem:[#allocation4 + $0x5f8] sm:$0xf]  ;;  %v6573_v24 = vld [vmem:[#allocation4 + $0xa0] sm:$0xf] }
 0x1af   :  { %3848 = vmatpush.bf16.msrb.mxu3 %v8522_v21  ;;  %v8391_v21 = vld [vmem:[#allocation4 + $0x10c4] sm:$0xf0]  ;;  %v9370_v25 = vld [vmem:[#allocation4 + $0xc0] sm:$0xf0] }
 0x1b0   :  { %3811 = vmatpush.bf16.msra.mxu0 %v7690_v45  ;;  %3791 = vmatmul.bf16.vlgmr.msrb.gmra.mxu2 %v10271_v31  ;;  %v8394_v42 = vor.u32 %v9821_v34, %v8391_v21  ;;  %v9757_v45 = vld [vmem:[#allocation4 + $0xe64] sm:$0xf]  ;;  %v9733_v21 = vld [vmem:[#allocation4 + $0xd8c] sm:$0xf] }
 0x1b1   :  { %3824 = vmatpush.bf16.msrb.mxu1 %v7946_v46  ;;  %3835 = vmatpush.bf16.msra.mxu2 %v8266_v52  ;;  %v8135_v46 = vld [vmem:[#allocation4 + $0xe84] sm:$0xf0]  ;;  %v3597_v49 = vpop.f32.mrf.mxu3  ;;  %v7562_v52 = vor.u32 %v9613_v39, %v7559_v40  ;;  %v6669_v39 = vld [vmem:[#allocation4 + $0x178] sm:$0xf]  ;;  %v9394_v40 = vld [vmem:[#allocation4 + $0x198] sm:$0xf0] }
 0x1b2   :  { %v8138_v57 = vor.u32 %v9757_v45, %v8135_v46  ;;  %v9538_v45 = vld [vmem:[#allocation4 + $0x6a8] sm:$0xf0]  ;;  %v7469_v46 = vld [vmem:[#allocation4 + $0x880] sm:$0xf] }
 0x1b3   :  { %3849 = vmatpush.bf16.msrb.mxu3 %v8490_v54  ;;  %v9605_v54 = vld [vmem:[#allocation4 + $0x90c] sm:$0xf]  ;;  %v3584_v55 = vpop.f32.mrf.mxu2  ;;  %v7470_v56 = vor.u32 %v9594_v47, %v7469_v46 }
 0x1b4   :  { %3812 = vmatpush.bf16.msra.mxu0 %v7658_v1  ;;  %v3585_v63 = vadd.f32 %v3584_v55, %v3572_v4  ;;  %v6733_v1 = vld [vmem:[#allocation4 + $0x208] sm:$0xf]  ;;  %v7530_v8 = vor.u32 %v9605_v54, %v7527_v22  ;;  %v9386_v54 = vld [vmem:[#allocation4 + $0x150] sm:$0xf0]  ;;  %v7246_v22 = vor.u32 %v9538_v45, %v7245_v44  ;;  %v9426_v44 = vld [vmem:[#allocation4 + $0x2b8] sm:$0xf0] }
 0x1b5   :  { %3825 = vmatpush.bf16.msrb.mxu1 %v7914_v2  ;;  %3836 = vmatpush.bf16.msra.mxu2 %v8234_v6  ;;  %v9410_v2 = vld [vmem:[#allocation4 + $0x228] sm:$0xf0]  ;;  %v9805_v6 = vld [vmem:[#allocation4 + $0x1014] sm:$0xf]  ;;  %v7117_v45 = vld [vmem:[#allocation4 + $0x568] sm:$0xf] }
 0x1b6   :  { %v10321_v10 = vadd.f32 %v3597_v49, %v3585_v63  ;;  %v6734_v13 = vor.u32 %v9410_v2, %v6733_v1  ;;  %v6670_v49 = vor.u32 %v9394_v40, %v6669_v39  ;;  %v9450_v55 = vld [vmem:[#allocation4 + $0x390] sm:$0xf0]  ;;  %v7437_v63 = vld [vmem:[#allocation4 + $0x838] sm:$0xf]  ;;  %v9586_v1 = vld [vmem:[#allocation4 + $0x858] sm:$0xf0] }
 0x1b7   :  { %3850 = vmatpush.bf16.msrb.mxu3 %v8458_v7  ;;  %v8327_v7 = vld [vmem:[#allocation4 + $0x1034] sm:$0xf0]  ;;  %v9362_v40 = vld [vmem:[#allocation4 + $0x78] sm:$0xf0]  ;;  %v9506_v47 = vld [vmem:[#allocation4 + $0x588] sm:$0xf0] }
 0x1b8   :  { %3813 = vmatpush.bf16.msra.mxu0 %v7626_v17  ;;  %v6990_v17 = vor.u32 %v9474_v3, %v6989_v0  ;;  %v8330_v4 = vor.u32 %v9805_v6, %v8327_v7  ;;  %v6605_v6 = vld [vmem:[#allocation4 + $0xe8] sm:$0xf]  ;;  %v9378_v7 = vld [vmem:[#allocation4 + $0x108] sm:$0xf0]  ;;  %v6541_v39 = vld [vmem:[#allocation4 + $0x58] sm:$0xf] }
 0x1b9   :  { %3826 = vmatpush.bf16.msrb.mxu1 %v7882_v18  ;;  %3837 = vmatpush.bf16.msra.mxu2 %v8202_v26  ;;  %v6701_v18 = vld [vmem:[#allocation4 + $0x1c0] sm:$0xf]  ;;  %v9797_v26 = vld [vmem:[#allocation4 + $0xfcc] sm:$0xf]  ;;  %v3599_v29 = vpop.f32.mrf.mxu3 }
 0x1ba   :  { %v6702_v33 = vor.u32 %v9402_v19, %v6701_v18  ;;  %v9578_v18 = vld [vmem:[#allocation4 + $0x810] sm:$0xf0]  ;;  %v6829_v29 = vld [vmem:[#allocation4 + $0x2e0] sm:$0xf] }
 0x1bb   :  { %3851 = vmatpush.bf16.msrb.mxu3 %v8426_v27  ;;  %v8295_v27 = vld [vmem:[#allocation4 + $0xfec] sm:$0xf0]  ;;  %v3586_v34 = vpop.f32.mrf.mxu2 }
 0x1bc   :  { %3814 = vmatpush.bf16.msra.mxu0 %v7594_v37  ;;  %v8298_v37 = vor.u32 %v9797_v26, %v8295_v27  ;;  %v9514_v34 = vld [vmem:[#allocation4 + $0x5d0] sm:$0xf0] }
 0x1bd   :  { %3827 = vmatpush.bf16.msrb.mxu1 %v7850_v38  ;;  %3838 = vmatpush.bf16.msra.mxu2 %v8170_v41  ;;  %v8039_v38 = vld [vmem:[#allocation4 + $0xdac] sm:$0xf0]  ;;  %v7502_v41 = vor.u32 %v9602_v32, %v7501_v30  ;;  %v9434_v30 = vld [vmem:[#allocation4 + $0x300] sm:$0xf0] }
 0x1be   :  { %v8042_v48 = vor.u32 %v9733_v21, %v8039_v38  ;;  %v7149_v32 = vld [vmem:[#allocation4 + $0x5b0] sm:$0xf]  ;;  %v7373_v21 = vld [vmem:[#allocation4 + $0x7a8] sm:$0xf]  ;;  %v6830_v38 = vor.u32 %v9434_v30, %v6829_v29  ;;  %v9546_v29 = vld [vmem:[#allocation4 + $0x6f0] sm:$0xf0] }
 0x1bf   :  { %3852 = vmatpush.bf16.msrb.mxu3 %v8394_v42  ;;  %v6925_v42 = vld [vmem:[#allocation4 + $0x3b8] sm:$0xf]  ;;  %v8525_v30 = vld [vmem:[#allocation4 + $0x11c8] sm:$0xf] }
 0x1c0   :  { %3815 = vmatpush.bf16.msra.mxu0 %v7562_v52  ;;  %v6926_v52 = vor.u32 %v9458_v43, %v6925_v42  ;;  %v6797_v43 = vld [vmem:[#allocation4 + $0x298] sm:$0xf] }
 0x1c1   :  { %3828 = vmatpush.bf16.msrb.mxu1 %v7818_v53  ;;  %3839 = vmatpush.bf16.msra.mxu2 %v8138_v57  ;;  %v6637_v53 = vld [vmem:[#allocation4 + $0x130] sm:$0xf] }
 0x1c2   :  { %v6893_v57 = vld [vmem:[#allocation4 + $0x370] sm:$0xf]  ;;  %v6638_v0 = vor.u32 %v9386_v54, %v6637_v53  ;;  %v6798_v53 = vor.u32 %v9426_v44, %v6797_v43  ;;  %v9714_v43 = vld [vmem:[#allocation4 + $0xcd8] sm:$0xf0]  ;;  %v8269_v44 = vld [vmem:[#allocation4 + $0xf88] sm:$0xf] }
 0x1c3   :  { %3853 = vmatpush.bf16.msrb.mxu3 %v8362_v58  ;;  %v7213_v58 = vld [vmem:[#allocation4 + $0x640] sm:$0xf]  ;;  %v6894_v3 = vor.u32 %v9450_v55, %v6893_v57  ;;  %v6509_v54 = vld [vmem:[#allocation4 + $0x10] sm:$0xf]  ;;  %v7118_v57 = vor.u32 %v9506_v47, %v7117_v45  ;;  %v9794_v45 = vld [vmem:[#allocation4 + $0xfa8] sm:$0xf0] }
 0x1c4   :  { %3816 = vmatpush.bf16.msra.mxu0 %v7530_v8  ;;  %v3610_v59 = vpop.f32.mrf.mxu0  ;;  %v9850_v47 = vld [vmem:[#allocation4 + $0x11a0] sm:$0xf0] }
 0x1c5   :  { %3829 = vmatpush.bf16.msrb.mxu1 %v7786_v9  ;;  %3840 = vmatpush.bf16.msra.mxu2 %v8106_v12  ;;  %v3623_v60 = vpop.f32.mrf.mxu1  ;;  %v3611_v2 = vadd.f32 %v3610_v59, %v10321_v10  ;;  %v7214_v9 = vor.u32 %v9530_v62, %v7213_v58  ;;  %v7438_v12 = vor.u32 %v9586_v1, %v7437_v63  ;;  %v9418_v59 = vld [vmem:[#allocation4 + $0x270] sm:$0xf0]  ;;  %v9498_v62 = vld [vmem:[#allocation4 + $0x540] sm:$0xf0]  ;;  %v7757_v1 = vld [vmem:[#allocation4 + $0xb08] sm:$0xf] }
 0x1c6   :  { %v6606_v10 = vor.u32 %v9378_v7, %v6605_v6  ;;  %v7309_v6 = vld [vmem:[#allocation4 + $0x718] sm:$0xf]  ;;  %v9554_v7 = vld [vmem:[#allocation4 + $0x738] sm:$0xf0] }
 0x1c7   :  { %3854 = vmatpush.bf16.msrb.mxu3 %v8330_v4  ;;  %3817 = vmatmul.bf16.vlgmr.msra.gmra.mxu0 %v10282_v5  ;;  %v3624_v8 = vadd.f32 %v3623_v60, %v3611_v2  ;;  %v7405_v4 = vld [vmem:[#allocation4 + $0x7f0] sm:$0xf]  ;;  %v7085_v60 = vld [vmem:[#allocation4 + $0x520] sm:$0xf]  ;;  %v9666_v2 = vld [vmem:[#allocation4 + $0xb28] sm:$0xf0] }
 0x1c8   :  { %3861 = vmatpush.bf16.msrb.mxu0 %v6734_v13  ;;  %3830 = vmatmul.bf16.vlgmr.msrb.gmra.mxu1 %v10284_v11  ;;  %v6861_v13 = vld [vmem:[#allocation4 + $0x328] sm:$0xf]  ;;  %v7406_v27 = vor.u32 %v9578_v18, %v7405_v4  ;;  %v9490_v4 = vld [vmem:[#allocation4 + $0x4f8] sm:$0xf0] }
 0x1c9   :  { %3874 = vmatpush.bf16.msra.mxu1 %v6990_v17  ;;  %3841 = vmatpush.bf16.msra.mxu2 %v8074_v20  ;;  %v9522_v17 = vld [vmem:[#allocation4 + $0x618] sm:$0xf0]  ;;  %v6862_v19 = vor.u32 %v9442_v15, %v6861_v13  ;;  %v7086_v15 = vor.u32 %v9498_v62, %v7085_v60 }
 0x1ca   :  { %v7182_v26 = vor.u32 %v9522_v17, %v7181_v16  ;;  %v7758_v16 = vor.u32 %v9666_v2, %v7757_v1  ;;  %v7053_v17 = vld [vmem:[#allocation4 + $0x4d8] sm:$0xf]  ;;  %v9842_v2 = vld [vmem:[#allocation4 + $0x1158] sm:$0xf0] }
 0x1cb   :  { %3855 = vmatpush.bf16.msrb.mxu3 %v8298_v37  ;;  %v6574_v37 = vor.u32 %v9370_v25, %v6573_v24  ;;  %v9658_v24 = vld [vmem:[#allocation4 + $0xae0] sm:$0xf0]  ;;  %v7981_v25 = vld [vmem:[#allocation4 + $0xd00] sm:$0xf]  ;;  %v8461_v1 = vld [vmem:[#allocation4 + $0x1138] sm:$0xf] }
 0x1cc   :  { %3862 = vmatpush.bf16.msrb.mxu0 %v6702_v33  ;;  %v3612_v20 = vpop.f32.mrf.mxu0 }
 0x1cd   :  { %3875 = vmatpush.bf16.msra.mxu1 %v6958_v35  ;;  %3842 = vmatpush.bf16.msra.mxu2 %v8042_v48  ;;  %v3625_v33 = vpop.f32.mrf.mxu1  ;;  %v9570_v35 = vld [vmem:[#allocation4 + $0x7c8] sm:$0xf0]  ;;  %v7341_v48 = vld [vmem:[#allocation4 + $0x760] sm:$0xf]  ;;  %v7054_v20 = vor.u32 %v9490_v4, %v7053_v17  ;;  %v7885_v17 = vld [vmem:[#allocation4 + $0xc28] sm:$0xf] }
 0x1ce   :  { %3856 = vmatmul.bf16.vlgmr.msrb.gmra.mxu3 %v10289_v28  ;;  %v7374_v42 = vor.u32 %v9570_v35, %v7373_v21  ;;  %v7021_v21 = vld [vmem:[#allocation4 + $0x490] sm:$0xf]  ;;  %v9698_v4 = vld [vmem:[#allocation4 + $0xc48] sm:$0xf0] }
 0x1cf   :  { %3900 = vmatpush.bf16.msra.mxu3 %v7502_v41  ;;  %v7150_v41 = vor.u32 %v9514_v34, %v7149_v32  ;;  %v9858_v32 = vld [vmem:[#allocation4 + $0x11e8] sm:$0xf0] }
 0x1d0   :  { %3863 = vmatpush.bf16.msrb.mxu0 %v6670_v49  ;;  %3843 = vmatmul.bf16.vlgmr.msra.gmra.mxu2 %v10291_v36  ;;  %v9562_v49 = vld [vmem:[#allocation4 + $0x780] sm:$0xf0] }
 0x1d1   :  { %3876 = vmatpush.bf16.msra.mxu1 %v6926_v52  ;;  %3887 = vmatpush.bf16.msrb.mxu2 %v7246_v22  ;;  %v3649_v46 = vpop.f32.mrf.mxu3  ;;  %v6542_v52 = vor.u32 %v9362_v40, %v6541_v39  ;;  %v9354_v22 = vld [vmem:[#allocation4 + $0x30] sm:$0xf0]  ;;  %v7342_v58 = vor.u32 %v9562_v49, %v7341_v48  ;;  %v7693_v39 = vld [vmem:[#allocation4 + $0xa78] sm:$0xf]  ;;  %v9650_v40 = vld [vmem:[#allocation4 + $0xa98] sm:$0xf0] }
 0x1d2   :  { %v871_v49 = vperm.slane %v10307_v14, 2 }
 0x1d3   :  { %3901 = vmatpush.bf16.msra.mxu3 %v7470_v56  ;;  %v6765_v56 = vld [vmem:[#allocation4 + $0x250] sm:$0xf]  ;;  %v3636_v55 = vpop.f32.mrf.mxu2 }
 0x1d4   :  { %3864 = vmatpush.bf16.msrb.mxu0 %v6638_v0  ;;  %v3637_v63 = vadd.f32 %v3636_v55, %v3624_v8  ;;  %v8013_v0 = vld [vmem:[#allocation4 + $0xd48] sm:$0xf]  ;;  %v6766_v13 = vor.u32 %v9418_v59, %v6765_v56  ;;  %v7310_v8 = vor.u32 %v9554_v7, %v7309_v6  ;;  %v8270_v56 = vor.u32 %v9794_v45, %v8269_v44  ;;  %v7917_v55 = vld [vmem:[#allocation4 + $0xc70] sm:$0xf]  ;;  %v8237_v59 = vld [vmem:[#allocation4 + $0xf40] sm:$0xf] }
 0x1d5   :  { %3877 = vmatpush.bf16.msra.mxu1 %v6894_v3  ;;  %3888 = vmatpush.bf16.msrb.mxu2 %v7214_v9  ;;  %v9730_v3 = vld [vmem:[#allocation4 + $0xd68] sm:$0xf0]  ;;  %v7629_v7 = vld [vmem:[#allocation4 + $0x9e8] sm:$0xf]  ;;  %v7821_v45 = vld [vmem:[#allocation4 + $0xb98] sm:$0xf] }
 0x1d6   :  { %v10328_v9 = vadd.f32 %v3649_v46, %v3637_v63  ;;  %v8014_v18 = vor.u32 %v9730_v3, %v8013_v0  ;;  %v8493_v46 = vld [vmem:[#allocation4 + $0x1180] sm:$0xf]  ;;  %v9786_v63 = vld [vmem:[#allocation4 + $0xf60] sm:$0xf0] }
 0x1d7   :  { %3902 = vmatpush.bf16.msra.mxu3 %v7438_v12  ;;  %v6510_v12 = vor.u32 %v9354_v22, %v6509_v54  ;;  %v7661_v54 = vld [vmem:[#allocation4 + $0xa30] sm:$0xf]  ;;  %v9642_v22 = vld [vmem:[#allocation4 + $0xa50] sm:$0xf0] }
 0x1d8   :  { %3865 = vmatpush.bf16.msrb.mxu0 %v6606_v10  ;;  %v7662_v3 = vor.u32 %v9642_v22, %v7661_v54  ;;  %vm4278_vm14 = vcmp.gt.f32.partialorder %v10328_v9, 0.0 }
 0x1d9   :  { %3878 = vmatpush.bf16.msra.mxu1 %v6862_v19  ;;  %3889 = vmatpush.bf16.msrb.mxu2 %v7182_v26  ;;  %v3651_v10 = vpop.f32.mrf.mxu3  ;;  %v7725_v19 = vld [vmem:[#allocation4 + $0xac0] sm:$0xf]  ;;  %v9722_v26 = vld [vmem:[#allocation4 + $0xd20] sm:$0xf0] }
 0x1da   :  { %v7726_v34 = vor.u32 %v9658_v24, %v7725_v19  ;;  %v7982_v35 = vor.u32 %v9722_v26, %v7981_v25  ;;  %v8429_v10 = vld [vmem:[#allocation4 + $0x10f0] sm:$0xf]  ;;  %v9834_v19 = vld [vmem:[#allocation4 + $0x1110] sm:$0xf0]  ;;  %v7886_v25 = vor.u32 %v9698_v4, %v7885_v17  ;;  %v7597_v26 = vld [vmem:[#allocation4 + $0x9a0] sm:$0xf] }
 0x1db   :  { %3903 = vmatpush.bf16.msra.mxu3 %v7406_v27  ;;  %v7277_v27 = vld [vmem:[#allocation4 + $0x6d0] sm:$0xf]  ;;  %v3638_v33 = vpop.f32.mrf.mxu2 }
 0x1dc   :  { %3866 = vmatpush.bf16.msrb.mxu0 %v6574_v37  ;;  %v7278_v37 = vor.u32 %v9546_v29, %v7277_v27  ;;  %v9626_v27 = vld [vmem:[#allocation4 + $0x9c0] sm:$0xf0]  ;;  %v8173_v33 = vld [vmem:[#allocation4 + $0xeb0] sm:$0xf] }
 0x1dd   :  { %3879 = vmatpush.bf16.msra.mxu1 %v6830_v38  ;;  %3890 = vmatpush.bf16.msrb.mxu2 %v7150_v41  ;;  %v9482_v38 = vld [vmem:[#allocation4 + $0x4b0] sm:$0xf0]  ;;  %v8526_v41 = vor.u32 %v9858_v32, %v8525_v30  ;;  %v8430_v30 = vor.u32 %v9834_v19, %v8429_v10  ;;  %v7853_v32 = vld [vmem:[#allocation4 + $0xbe0] sm:$0xf]  ;;  %v8077_v10 = vld [vmem:[#allocation4 + $0xdd8] sm:$0xf] }
 0x1de   :  { %v7022_v48 = vor.u32 %v9482_v38, %v7021_v21  ;;  %v9826_v38 = vld [vmem:[#allocation4 + $0x10c8] sm:$0xf0]  ;;  %v9746_v19 = vld [vmem:[#allocation4 + $0xdf8] sm:$0xf0] }
 0x1df   :  { %3904 = vmatpush.bf16.msra.mxu3 %v7374_v42  ;;  %v7949_v42 = vld [vmem:[#allocation4 + $0xcb8] sm:$0xf] }
 0x1e0   :  { %3867 = vmatpush.bf16.msrb.mxu0 %v6542_v52  ;;  %v7694_v52 = vor.u32 %v9650_v40, %v7693_v39  ;;  %v7598_v39 = vor.u32 %v9626_v27, %v7597_v26  ;;  %v9398_v26 = vld [vmem:[#allocation4 + $0x1c4] sm:$0xf]  ;;  %v6703_v27 = vld [vmem:[#allocation4 + $0x1e4] sm:$0xf0] }
 0x1e1   :  { %3880 = vmatpush.bf16.msra.mxu1 %v6798_v53  ;;  %3891 = vmatpush.bf16.msrb.mxu2 %v7118_v57  ;;  %v7950_v53 = vor.u32 %v9714_v43, %v7949_v42  ;;  %v8494_v57 = vor.u32 %v9850_v47, %v8493_v46  ;;  %v9618_v42 = vld [vmem:[#allocation4 + $0x978] sm:$0xf0]  ;;  %v8141_v47 = vld [vmem:[#allocation4 + $0xe68] sm:$0xf] }
 0x1e2   :  { %v9682_v46 = vld [vmem:[#allocation4 + $0xbb8] sm:$0xf0] }
 0x1e3   :  { %3905 = vmatpush.bf16.msra.mxu3 %v7342_v58  ;;  %v9706_v58 = vld [vmem:[#allocation4 + $0xc90] sm:$0xf0]  ;;  %v7822_v22 = vor.u32 %v9682_v46, %v7821_v45  ;;  %v9454_v45 = vld [vmem:[#allocation4 + $0x3bc] sm:$0xf]  ;;  %v6927_v46 = vld [vmem:[#allocation4 + $0x3dc] sm:$0xf0] }
 0x1e4   :  { %3868 = vmatpush.bf16.msrb.mxu0 %v6510_v12  ;;  %v3662_v60 = vpop.f32.mrf.mxu0  ;;  %v7918_v6 = vor.u32 %v9706_v58, %v7917_v55  ;;  %v9634_v12 = vld [vmem:[#allocation4 + $0xa08] sm:$0xf0]  ;;  %v7789_v55 = vld [vmem:[#allocation4 + $0xb50] sm:$0xf] }
 0x1e5   :  { %3881 = vmatpush.bf16.msra.mxu1 %v6766_v13  ;;  %3892 = vmatpush.bf16.msrb.mxu2 %v7086_v15  ;;  %v3675_v62 = vpop.f32.mrf.mxu1  ;;  %v3663_v0 = vadd.f32 %v3662_v60, %v871_v49  ;;  %v8238_v15 = vor.u32 %v9786_v63, %v8237_v59  ;;  %v7630_v24 = vor.u32 %v9634_v12, %v7629_v7  ;;  %v9762_v49 = vld [vmem:[#allocation4 + $0xe88] sm:$0xf0]  ;;  %v8109_v63 = vld [vmem:[#allocation4 + $0xe20] sm:$0xf]  ;;  %v6991_v7 = vld [vmem:[#allocation4 + $0x46c] sm:$0xf0] }
 0x1e6   :  { %v8142_v58 = vor.u32 %v9762_v49, %v8141_v47  ;;  %v8333_v12 = vld [vmem:[#allocation4 + $0x1018] sm:$0xf]  ;;  %v9534_v47 = vld [vmem:[#allocation4 + $0x68c] sm:$0xf]  ;;  %v9590_v49 = vld [vmem:[#allocation4 + $0x884] sm:$0xf] }
 0x1e7   :  { %3906 = vmatpush.bf16.msra.mxu3 %v7310_v8  ;;  %3869 = vmatmul.bf16.vlgmr.msrb.gmra.mxu0 %v10253_v50  ;;  %v3676_v13 = vadd.f32 %v3675_v62, %v3663_v0  ;;  %v9778_v8 = vld [vmem:[#allocation4 + $0xf18] sm:$0xf0]  ;;  %v9674_v62 = vld [vmem:[#allocation4 + $0xb70] sm:$0xf0]  ;;  %v9406_v0 = vld [vmem:[#allocation4 + $0x20c] sm:$0xf] }
 0x1e8   :  { %3913 = vmatpush.bf16.msra.mxu0 %v7758_v16  ;;  %3882 = vmatmul.bf16.vlgmr.msra.gmra.mxu1 %v10255_v51  ;;  %v8462_v16 = vor.u32 %v9842_v2, %v8461_v1  ;;  %v9754_v1 = vld [vmem:[#allocation4 + $0xe40] sm:$0xf0]  ;;  %v7790_v17 = vor.u32 %v9674_v62, %v7789_v55 }
 0x1e9   :  { %3926 = vmatpush.bf16.msrb.mxu1 %v8014_v18  ;;  %3893 = vmatpush.bf16.msrb.mxu2 %v7054_v20  ;;  %v8205_v18 = vld [vmem:[#allocation4 + $0xef8] sm:$0xf]  ;;  %v9690_v20 = vld [vmem:[#allocation4 + $0xc00] sm:$0xf0] }
 0x1ea   :  { %v8206_v29 = vor.u32 %v9778_v8, %v8205_v18  ;;  %v7854_v40 = vor.u32 %v9690_v20, %v7853_v32  ;;  %v8110_v18 = vor.u32 %v9754_v1, %v8109_v63  ;;  %v8301_v32 = vld [vmem:[#allocation4 + $0xfd0] sm:$0xf]  ;;  %v9802_v20 = vld [vmem:[#allocation4 + $0xff0] sm:$0xf0]  ;;  %v9526_v62 = vld [vmem:[#allocation4 + $0x644] sm:$0xf] }
 0x1eb   :  { %3907 = vmatpush.bf16.msra.mxu3 %v7278_v37  ;;  %v8397_v37 = vld [vmem:[#allocation4 + $0x10a8] sm:$0xf] }
 0x1ec   :  { %3914 = vmatpush.bf16.msra.mxu0 %v7726_v34  ;;  %v3664_v34 = vpop.f32.mrf.mxu0  ;;  %v8398_v44 = vor.u32 %v9826_v38, %v8397_v37  ;;  %v6706_v37 = vor.u32 %v9398_v26, %v6703_v27  ;;  %v8045_v38 = vld [vmem:[#allocation4 + $0xd90] sm:$0xf]  ;;  %v7407_v26 = vld [vmem:[#allocation4 + $0x814] sm:$0xf0] }
 0x1ed   :  { %3927 = vmatpush.bf16.msrb.mxu1 %v7982_v35  ;;  %3894 = vmatpush.bf16.msrb.mxu2 %v7022_v48  ;;  %v3677_v21 = vpop.f32.mrf.mxu1  ;;  %v9770_v35 = vld [vmem:[#allocation4 + $0xed0] sm:$0xf0]  ;;  %v7503_v34 = vld [vmem:[#allocation4 + $0x8ec] sm:$0xf0] }
 0x1ee   :  { %3908 = vmatmul.bf16.vlgmr.msra.gmra.mxu3 %v10269_v23  ;;  %v8174_v43 = vor.u32 %v9770_v35, %v8173_v33  ;;  %v9598_v33 = vld [vmem:[#allocation4 + $0x8cc] sm:$0xf]  ;;  %v8078_v21 = vor.u32 %v9746_v19, %v8077_v10  ;;  %v6863_v19 = vld [vmem:[#allocation4 + $0x34c] sm:$0xf0] }
 0x1ef   :  { %3952 = vmatpush.bf16.msrb.mxu3 %v8526_v41  ;;  %v7565_v41 = vld [vmem:[#allocation4 + $0x958] sm:$0xf]  ;;  %v9438_v10 = vld [vmem:[#allocation4 + $0x32c] sm:$0xf] }
 0x1f0   :  { %3915 = vmatpush.bf16.msra.mxu0 %v7694_v52  ;;  %3895 = vmatmul.bf16.vlgmr.msrb.gmra.mxu2 %v10271_v31  ;;  %v8365_v52 = vld [vmem:[#allocation4 + $0x1060] sm:$0xf]  ;;  %v7566_v54 = vor.u32 %v9618_v42, %v7565_v41  ;;  %v9738_v41 = vld [vmem:[#allocation4 + $0xdb0] sm:$0xf0]  ;;  %v9390_v42 = vld [vmem:[#allocation4 + $0x17c] sm:$0xf]  ;;  %v6866_v27 = vor.u32 %v9438_v10, %v6863_v19 }
 0x1f1   :  { %3928 = vmatpush.bf16.msrb.mxu1 %v7950_v53  ;;  %3939 = vmatpush.bf16.msra.mxu2 %v8270_v56  ;;  %v3701_v48 = vpop.f32.mrf.mxu3  ;;  %v9818_v53 = vld [vmem:[#allocation4 + $0x1080] sm:$0xf0]  ;;  %v7533_v56 = vld [vmem:[#allocation4 + $0x910] sm:$0xf] }
 0x1f2   :  { %v8366_v60 = vor.u32 %v9818_v53, %v8365_v52  ;;  %v7471_v52 = vld [vmem:[#allocation4 + $0x8a4] sm:$0xf0]  ;;  %v8046_v53 = vor.u32 %v9738_v41, %v8045_v38  ;;  %v7151_v38 = vld [vmem:[#allocation4 + $0x5d4] sm:$0xf0] }
 0x1f3   :  { %3953 = vmatpush.bf16.msrb.mxu3 %v8494_v57  ;;  %v9610_v57 = vld [vmem:[#allocation4 + $0x930] sm:$0xf0]  ;;  %v3688_v59 = vpop.f32.mrf.mxu2 }
 0x1f4   :  { %3916 = vmatpush.bf16.msra.mxu0 %v7662_v3  ;;  %v3689_v2 = vadd.f32 %v3688_v59, %v3676_v13  ;;  %v6735_v3 = vld [vmem:[#allocation4 + $0x22c] sm:$0xf0]  ;;  %v9446_v59 = vld [vmem:[#allocation4 + $0x374] sm:$0xf] }
 0x1f5   :  { %3929 = vmatpush.bf16.msrb.mxu1 %v7918_v6  ;;  %3940 = vmatpush.bf16.msra.mxu2 %v8238_v15  ;;  %v9470_v6 = vld [vmem:[#allocation4 + $0x44c] sm:$0xf]  ;;  %v9810_v15 = vld [vmem:[#allocation4 + $0x1038] sm:$0xf0]  ;;  %v6738_v8 = vor.u32 %v9406_v0, %v6735_v3  ;;  %v7439_v3 = vld [vmem:[#allocation4 + $0x85c] sm:$0xf0] }
 0x1f6   :  { %v10335_v4 = vadd.f32 %v3701_v48, %v3689_v2  ;;  %v8334_v13 = vor.u32 %v9810_v15, %v8333_v12  ;;  %v7247_v48 = vld [vmem:[#allocation4 + $0x6ac] sm:$0xf0]  ;;  %v7215_v2 = vld [vmem:[#allocation4 + $0x664] sm:$0xf0]  ;;  %v9582_v0 = vld [vmem:[#allocation4 + $0x83c] sm:$0xf] }
 0x1f7   :  { %3954 = vmatpush.bf16.msrb.mxu3 %v8462_v16  ;;  %v7534_v16 = vor.u32 %v9610_v57, %v7533_v56  ;;  %v9382_v56 = vld [vmem:[#allocation4 + $0x134] sm:$0xf]  ;;  %v6639_v57 = vld [vmem:[#allocation4 + $0x154] sm:$0xf0]  ;;  %v7250_v55 = vor.u32 %v9534_v47, %v7247_v48  ;;  %v9374_v15 = vld [vmem:[#allocation4 + $0xec] sm:$0xf] }
 0x1f8   :  { %3917 = vmatpush.bf16.msra.mxu0 %v7630_v24  ;;  %v6994_v24 = vor.u32 %v9470_v6, %v6991_v7  ;;  %v6642_v7 = vor.u32 %v9382_v56, %v6639_v57  ;;  %v9422_v47 = vld [vmem:[#allocation4 + $0x29c] sm:$0xf]  ;;  %v6799_v48 = vld [vmem:[#allocation4 + $0x2bc] sm:$0xf0] }
 0x1f9   :  { %3930 = vmatpush.bf16.msrb.mxu1 %v7886_v25  ;;  %3941 = vmatpush.bf16.msra.mxu2 %v8206_v29  ;;  %v3703_v25 = vpop.f32.mrf.mxu3  ;;  %v9462_v29 = vld [vmem:[#allocation4 + $0x404] sm:$0xf]  ;;  %v6802_v57 = vor.u32 %v9422_v47, %v6799_v48  ;;  %v9710_v47 = vld [vmem:[#allocation4 + $0xcbc] sm:$0xf]  ;;  %v7951_v48 = vld [vmem:[#allocation4 + $0xcdc] sm:$0xf0] }
 0x1fa   :  { %v9574_v25 = vld [vmem:[#allocation4 + $0x7f4] sm:$0xf] }
 0x1fb   :  { %3955 = vmatpush.bf16.msrb.mxu3 %v8430_v30  ;;  %v6959_v30 = vld [vmem:[#allocation4 + $0x424] sm:$0xf0]  ;;  %v3690_v35 = vpop.f32.mrf.mxu2 }
 0x1fc   :  { %3918 = vmatpush.bf16.msra.mxu0 %v7598_v39  ;;  %v6962_v39 = vor.u32 %v9462_v29, %v6959_v30  ;;  %v9366_v29 = vld [vmem:[#allocation4 + $0xa4] sm:$0xf]  ;;  %v6575_v30 = vld [vmem:[#allocation4 + $0xc4] sm:$0xf0] }
 0x1fd   :  { %3931 = vmatpush.bf16.msrb.mxu1 %v7854_v40  ;;  %3942 = vmatpush.bf16.msra.mxu2 %v8174_v43  ;;  %v8302_v40 = vor.u32 %v9802_v20, %v8301_v32  ;;  %v6671_v43 = vld [vmem:[#allocation4 + $0x19c] sm:$0xf0]  ;;  %v7410_v20 = vor.u32 %v9574_v25, %v7407_v26  ;;  %v6578_v41 = vor.u32 %v9366_v29, %v6575_v30  ;;  %v9486_v25 = vld [vmem:[#allocation4 + $0x4dc] sm:$0xf]  ;;  %v9654_v29 = vld [vmem:[#allocation4 + $0xac4] sm:$0xf] }
 0x1fe   :  { %v7055_v26 = vld [vmem:[#allocation4 + $0x4fc] sm:$0xf0]  ;;  %v7727_v30 = vld [vmem:[#allocation4 + $0xae4] sm:$0xf0] }
 0x1ff   :  { %3956 = vmatpush.bf16.msrb.mxu3 %v8398_v44  ;;  %v7506_v44 = vor.u32 %v9598_v33, %v7503_v34  ;;  %v9430_v33 = vld [vmem:[#allocation4 + $0x2e4] sm:$0xf]  ;;  %v6831_v34 = vld [vmem:[#allocation4 + $0x304] sm:$0xf0] }
 0x200   :  { %3919 = vmatpush.bf16.msra.mxu0 %v7566_v54  ;;  %v6674_v54 = vor.u32 %v9390_v42, %v6671_v43  ;;  %v6834_v42 = vor.u32 %v9430_v33, %v6831_v34  ;;  %v9358_v43 = vld [vmem:[#allocation4 + $0x5c] sm:$0xf]  ;;  %v9542_v33 = vld [vmem:[#allocation4 + $0x6d4] sm:$0xf]  ;;  %v7279_v34 = vld [vmem:[#allocation4 + $0x6f4] sm:$0xf0] }
 0x201   :  { %3932 = vmatpush.bf16.msrb.mxu1 %v7822_v22  ;;  %3943 = vmatpush.bf16.msra.mxu2 %v8142_v58  ;;  %v6930_v22 = vor.u32 %v9454_v45, %v6927_v46  ;;  %v7474_v58 = vor.u32 %v9590_v49, %v7471_v52  ;;  %v9502_v49 = vld [vmem:[#allocation4 + $0x56c] sm:$0xf] }
 0x203   :  { %3957 = vmatpush.bf16.msrb.mxu3 %v8366_v60  ;;  %v6895_v60 = vld [vmem:[#allocation4 + $0x394] sm:$0xf0] }
 0x204   :  { %3920 = vmatpush.bf16.msra.mxu0 %v7534_v16  ;;  %v3714_v63 = vpop.f32.mrf.mxu0  ;;  %v6898_v12 = vor.u32 %v9446_v59, %v6895_v60  ;;  %v6607_v16 = vld [vmem:[#allocation4 + $0x10c] sm:$0xf0]  ;;  %v9414_v59 = vld [vmem:[#allocation4 + $0x254] sm:$0xf] }
 0x205   :  { %3933 = vmatpush.bf16.msrb.mxu1 %v7790_v17  ;;  %3944 = vmatpush.bf16.msra.mxu2 %v8110_v18  ;;  %v3727_v1 = vpop.f32.mrf.mxu1  ;;  %v3715_v6 = vadd.f32 %v3714_v63, %v10335_v4  ;;  %v7218_v18 = vor.u32 %v9526_v62, %v7215_v2  ;;  %v6610_v4 = vor.u32 %v9374_v15, %v6607_v16  ;;  %v9494_v2 = vld [vmem:[#allocation4 + $0x524] sm:$0xf]  ;;  %v8015_v15 = vld [vmem:[#allocation4 + $0xd6c] sm:$0xf0]  ;;  %v9550_v16 = vld [vmem:[#allocation4 + $0x71c] sm:$0xf] }
 0x207   :  { %3958 = vmatpush.bf16.msrb.mxu3 %v8334_v13  ;;  %3921 = vmatmul.bf16.vlgmr.msra.gmra.mxu0 %v10282_v5  ;;  %v3728_v17 = vadd.f32 %v3727_v1, %v3715_v6  ;;  %v7183_v13 = vld [vmem:[#allocation4 + $0x61c] sm:$0xf0]  ;;  %v6767_v1 = vld [vmem:[#allocation4 + $0x274] sm:$0xf0]  ;;  %v9662_v6 = vld [vmem:[#allocation4 + $0xb0c] sm:$0xf] }
 0x208   :  { %3965 = vmatpush.bf16.msrb.mxu0 %v6738_v8  ;;  %3934 = vmatmul.bf16.vlgmr.msrb.gmra.mxu1 %v10284_v11  ;;  %v7442_v8 = vor.u32 %v9582_v0, %v7439_v3  ;;  %v7087_v0 = vld [vmem:[#allocation4 + $0x544] sm:$0xf0]  ;;  %v6770_v19 = vor.u32 %v9414_v59, %v6767_v1  ;;  %v7663_v59 = vld [vmem:[#allocation4 + $0xa54] sm:$0xf0] }
 0x209   :  { %3978 = vmatpush.bf16.msra.mxu1 %v6994_v24  ;;  %3945 = vmatpush.bf16.msra.mxu2 %v8078_v21  ;;  %v9518_v24 = vld [vmem:[#allocation4 + $0x5fc] sm:$0xf]  ;;  %v9510_v21 = vld [vmem:[#allocation4 + $0x5b4] sm:$0xf]  ;;  %v7919_v1 = vld [vmem:[#allocation4 + $0xc94] sm:$0xf0] }
 0x20a   :  { %v7186_v32 = vor.u32 %v9518_v24, %v7183_v13  ;;  %v7154_v45 = vor.u32 %v9510_v21, %v7151_v38  ;;  %v7090_v24 = vor.u32 %v9494_v2, %v7087_v0  ;;  %v9854_v21 = vld [vmem:[#allocation4 + $0x11cc] sm:$0xf]  ;;  %v9782_v2 = vld [vmem:[#allocation4 + $0xf44] sm:$0xf] }
 0x20b   :  { %3959 = vmatpush.bf16.msrb.mxu3 %v8302_v40  ;;  %v7375_v40 = vld [vmem:[#allocation4 + $0x7cc] sm:$0xf0] }
 0x20c   :  { %3966 = vmatpush.bf16.msrb.mxu0 %v6706_v37  ;;  %v3716_v35 = vpop.f32.mrf.mxu0 }
 0x20d   :  { %3979 = vmatpush.bf16.msra.mxu1 %v6962_v39  ;;  %3946 = vmatpush.bf16.msra.mxu2 %v8046_v53  ;;  %v3729_v37 = vpop.f32.mrf.mxu1  ;;  %v9566_v39 = vld [vmem:[#allocation4 + $0x7ac] sm:$0xf]  ;;  %v7119_v53 = vld [vmem:[#allocation4 + $0x58c] sm:$0xf0] }
 0x20e   :  { %3960 = vmatmul.bf16.vlgmr.msrb.gmra.mxu3 %v10289_v28  ;;  %v7378_v46 = vor.u32 %v9566_v39, %v7375_v40  ;;  %v7122_v60 = vor.u32 %v9502_v49, %v7119_v53  ;;  %v8527_v35 = vld [vmem:[#allocation4 + $0x11ec] sm:$0xf0]  ;;  %v7058_v37 = vor.u32 %v9486_v25, %v7055_v26  ;;  %v7730_v39 = vor.u32 %v9654_v29, %v7727_v30  ;;  %v9478_v40 = vld [vmem:[#allocation4 + $0x494] sm:$0xf]  ;;  %v9790_v49 = vld [vmem:[#allocation4 + $0xf8c] sm:$0xf] }
 0x20f   :  { %4004 = vmatpush.bf16.msra.mxu3 %v7506_v44  ;;  %v6543_v44 = vld [vmem:[#allocation4 + $0x7c] sm:$0xf0]  ;;  %v9846_v53 = vld [vmem:[#allocation4 + $0x1184] sm:$0xf]  ;;  %v9694_v26 = vld [vmem:[#allocation4 + $0xc2c] sm:$0xf] }
 0x210   :  { %3967 = vmatpush.bf16.msrb.mxu0 %v6674_v54  ;;  %3947 = vmatmul.bf16.vlgmr.msra.gmra.mxu2 %v10291_v36  ;;  %v9558_v54 = vld [vmem:[#allocation4 + $0x764] sm:$0xf]  ;;  %v6546_v56 = vor.u32 %v9358_v43, %v6543_v44  ;;  %v7023_v43 = vld [vmem:[#allocation4 + $0x4b4] sm:$0xf0]  ;;  %v9646_v44 = vld [vmem:[#allocation4 + $0xa7c] sm:$0xf] }
 0x211   :  { %3980 = vmatpush.bf16.msra.mxu1 %v6930_v22  ;;  %3991 = vmatpush.bf16.msrb.mxu2 %v7250_v55  ;;  %v3753_v52 = vpop.f32.mrf.mxu3  ;;  %v7343_v22 = vld [vmem:[#allocation4 + $0x784] sm:$0xf0]  ;;  %v9350_v55 = vld [vmem:[#allocation4 + $0x14] sm:$0xf]  ;;  %v8431_v30 = vld [vmem:[#allocation4 + $0x1114] sm:$0xf0] }
 0x212   :  { %v7346_v63 = vor.u32 %v9558_v54, %v7343_v22  ;;  %v8495_v54 = vld [vmem:[#allocation4 + $0x11a4] sm:$0xf0]  ;;  %v7026_v22 = vor.u32 %v9478_v40, %v7023_v43  ;;  %v9830_v29 = vld [vmem:[#allocation4 + $0x10f4] sm:$0xf]  ;;  %v9822_v43 = vld [vmem:[#allocation4 + $0x10ac] sm:$0xf] }
 0x213   :  { %4005 = vmatpush.bf16.msra.mxu3 %v7474_v58  ;;  %v6511_v58 = vld [vmem:[#allocation4 + $0x34] sm:$0xf0]  ;;  %v3740_v62 = vpop.f32.mrf.mxu2 }
 0x214   :  { %3968 = vmatpush.bf16.msrb.mxu0 %v6642_v7  ;;  %v3741_v3 = vadd.f32 %v3740_v62, %v3728_v17  ;;  %v7759_v7 = vld [vmem:[#allocation4 + $0xb2c] sm:$0xf0]  ;;  %v6514_v10 = vor.u32 %v9350_v55, %v6511_v58  ;;  %v7954_v55 = vor.u32 %v9710_v47, %v7951_v48  ;;  %v9638_v58 = vld [vmem:[#allocation4 + $0xa34] sm:$0xf]  ;;  %v8498_v62 = vor.u32 %v9846_v53, %v8495_v54  ;;  %v9614_v47 = vld [vmem:[#allocation4 + $0x95c] sm:$0xf] }
 0x215   :  { %3981 = vmatpush.bf16.msra.mxu1 %v6898_v12  ;;  %3992 = vmatpush.bf16.msrb.mxu2 %v7218_v18  ;;  %v9726_v12 = vld [vmem:[#allocation4 + $0xd4c] sm:$0xf]  ;;  %v7311_v18 = vld [vmem:[#allocation4 + $0x73c] sm:$0xf0]  ;;  %v7762_v13 = vor.u32 %v9662_v6, %v7759_v7  ;;  %v8239_v6 = vld [vmem:[#allocation4 + $0xf64] sm:$0xf0] }
 0x216   :  { %v7314_v17 = vor.u32 %v9550_v16, %v7311_v18  ;;  %v9838_v7 = vld [vmem:[#allocation4 + $0x113c] sm:$0xf]  ;;  %v7666_v16 = vor.u32 %v9638_v58, %v7663_v59  ;;  %v7567_v48 = vld [vmem:[#allocation4 + $0x97c] sm:$0xf0]  ;;  %v8367_v58 = vld [vmem:[#allocation4 + $0x1084] sm:$0xf0] }
 0x217   :  { %4006 = vmatpush.bf16.msra.mxu3 %v7442_v8  ;;  %v10342_v8 = vadd.f32 %v3753_v52, %v3741_v3  ;;  %v8271_v52 = vld [vmem:[#allocation4 + $0xfac] sm:$0xf0]  ;;  %v9678_v53 = vld [vmem:[#allocation4 + $0xb9c] sm:$0xf]  ;;  %v7823_v54 = vld [vmem:[#allocation4 + $0xbbc] sm:$0xf0]  ;;  %v7570_v59 = vor.u32 %v9614_v47, %v7567_v48 }
 0x218   :  { %3969 = vmatpush.bf16.msrb.mxu0 %v6610_v4  ;;  %v8018_v4 = vor.u32 %v9726_v12, %v8015_v15  ;;  %v8463_v12 = vld [vmem:[#allocation4 + $0x115c] sm:$0xf0]  ;;  %v8047_v48 = vld [vmem:[#allocation4 + $0xdb4] sm:$0xf0] }
 0x219   :  { %3982 = vmatpush.bf16.msra.mxu1 %v6866_v27  ;;  %3993 = vmatpush.bf16.msrb.mxu2 %v7186_v32  ;;  %v3755_v27 = vpop.f32.mrf.mxu3  ;;  %v9718_v32 = vld [vmem:[#allocation4 + $0xd04] sm:$0xf]  ;;  %v8466_v25 = vor.u32 %v9838_v7, %v8463_v12  ;;  %v8111_v12 = vld [vmem:[#allocation4 + $0xe44] sm:$0xf0]  ;;  %vm4279_vm15 = vcmp.gt.f32.partialorder %v10342_v8, 0.0 }
 0x21a   :  { %v8207_v27 = vld [vmem:[#allocation4 + $0xf1c] sm:$0xf0]  ;;  %v9750_v7 = vld [vmem:[#allocation4 + $0xe24] sm:$0xf] }
 0x21b   :  { %4007 = vmatpush.bf16.msra.mxu3 %v7410_v20  ;;  %v7983_v20 = vld [vmem:[#allocation4 + $0xd24] sm:$0xf0]  ;;  %v3742_v38 = vpop.f32.mrf.mxu2 }
 0x21c   :  { %3970 = vmatpush.bf16.msrb.mxu0 %v6578_v41  ;;  %v7986_v41 = vor.u32 %v9718_v32, %v7983_v20  ;;  %v7855_v38 = vld [vmem:[#allocation4 + $0xc04] sm:$0xf0] }
 0x21d   :  { %3983 = vmatpush.bf16.msra.mxu1 %v6834_v42  ;;  %3994 = vmatpush.bf16.msrb.mxu2 %v7154_v45  ;;  %v7282_v42 = vor.u32 %v9542_v33, %v7279_v34  ;;  %v7695_v45 = vld [vmem:[#allocation4 + $0xa9c] sm:$0xf0]  ;;  %v9622_v33 = vld [vmem:[#allocation4 + $0x9a4] sm:$0xf]  ;;  %v7599_v34 = vld [vmem:[#allocation4 + $0x9c4] sm:$0xf0] }
 0x21f   :  { %4008 = vmatpush.bf16.msra.mxu3 %v7378_v46  ;;  %v8530_v46 = vor.u32 %v9854_v21, %v8527_v35  ;;  %v8434_v35 = vor.u32 %v9830_v29, %v8431_v30  ;;  %v9742_v30 = vld [vmem:[#allocation4 + $0xddc] sm:$0xf] }
 0x220   :  { %3971 = vmatpush.bf16.msrb.mxu0 %v6546_v56  ;;  %v872_v56 = vperm.slane %v10307_v14, 3 }
 0x221   :  { %3984 = vmatpush.bf16.msra.mxu1 %v6802_v57  ;;  %3995 = vmatpush.bf16.msrb.mxu2 %v7122_v60  ;;  %v7698_v57 = vor.u32 %v9646_v44, %v7695_v45  ;;  %v8274_v60 = vor.u32 %v9790_v49, %v8271_v52  ;;  %v8399_v44 = vld [vmem:[#allocation4 + $0x10cc] sm:$0xf0]  ;;  %v7602_v45 = vor.u32 %v9622_v33, %v7599_v34  ;;  %v6709_v34 = vld [vmem:[#allocation4 + $0x1c8] sm:$0xf] }
 0x222   :  { %v8402_v52 = vor.u32 %v9822_v43, %v8399_v44 }
 0x223   :  { %4009 = vmatpush.bf16.msra.mxu3 %v7346_v63  ;;  %v9702_v63 = vld [vmem:[#allocation4 + $0xc74] sm:$0xf] }
 0x224   :  { %3972 = vmatpush.bf16.msrb.mxu0 %v6514_v10  ;;  %v3766_v0 = vpop.f32.mrf.mxu0  ;;  %v7922_v18 = vor.u32 %v9702_v63, %v7919_v1  ;;  %v9630_v10 = vld [vmem:[#allocation4 + $0x9ec] sm:$0xf]  ;;  %v7535_v63 = vld [vmem:[#allocation4 + $0x934] sm:$0xf0]  ;;  %v9670_v1 = vld [vmem:[#allocation4 + $0xb54] sm:$0xf] }
 0x225   :  { %3985 = vmatpush.bf16.msra.mxu1 %v6770_v19  ;;  %3996 = vmatpush.bf16.msrb.mxu2 %v7090_v24  ;;  %v3779_v3 = vpop.f32.mrf.mxu1  ;;  %v3767_v15 = vadd.f32 %v3766_v0, %v872_v56  ;;  %v7631_v19 = vld [vmem:[#allocation4 + $0xa0c] sm:$0xf0] }
 0x226   :  { %v7634_v32 = vor.u32 %v9630_v10, %v7631_v19  ;;  %v6997_v10 = vld [vmem:[#allocation4 + $0x450] sm:$0xf]  ;;  %v9475_v19 = vld [vmem:[#allocation4 + $0x470] sm:$0xf0] }
 0x227   :  { %4010 = vmatpush.bf16.msra.mxu3 %v7314_v17  ;;  %3973 = vmatmul.bf16.vlgmr.msrb.gmra.mxu0 %v10253_v50  ;;  %v3780_v24 = vadd.f32 %v3779_v3, %v3767_v15  ;;  %v9774_v17 = vld [vmem:[#allocation4 + $0xefc] sm:$0xf] }
 0x228   :  { %4017 = vmatpush.bf16.msra.mxu0 %v7762_v13  ;;  %3986 = vmatmul.bf16.vlgmr.msra.gmra.mxu1 %v10255_v51  ;;  %v8242_v13 = vor.u32 %v9782_v2, %v8239_v6  ;;  %v8210_v21 = vor.u32 %v9774_v17, %v8207_v27  ;;  %v7791_v6 = vld [vmem:[#allocation4 + $0xb74] sm:$0xf0]  ;;  %v8114_v27 = vor.u32 %v9750_v7, %v8111_v12  ;;  %v7221_v7 = vld [vmem:[#allocation4 + $0x648] sm:$0xf] }
 0x229   :  { %4030 = vmatpush.bf16.msrb.mxu1 %v8018_v4  ;;  %3997 = vmatpush.bf16.msrb.mxu2 %v7058_v37  ;;  %v7887_v4 = vld [vmem:[#allocation4 + $0xc4c] sm:$0xf0]  ;;  %v9686_v37 = vld [vmem:[#allocation4 + $0xbe4] sm:$0xf] }
 0x22a   :  { %v7890_v20 = vor.u32 %v9694_v26, %v7887_v4  ;;  %v7794_v4 = vor.u32 %v9670_v1, %v7791_v6  ;;  %v9387_v1 = vld [vmem:[#allocation4 + $0x158] sm:$0xf0] }
 0x22b   :  { %4011 = vmatpush.bf16.msra.mxu3 %v7282_v42  ;;  %v8175_v42 = vld [vmem:[#allocation4 + $0xed4] sm:$0xf0]  ;;  %v9451_v6 = vld [vmem:[#allocation4 + $0x398] sm:$0xf0] }
 0x22c   :  { %4018 = vmatpush.bf16.msra.mxu0 %v7730_v39  ;;  %v9766_v39 = vld [vmem:[#allocation4 + $0xeb4] sm:$0xf]  ;;  %v3768_v40 = vpop.f32.mrf.mxu0 }
 0x22d   :  { %4031 = vmatpush.bf16.msrb.mxu1 %v7986_v41  ;;  %3998 = vmatpush.bf16.msrb.mxu2 %v7026_v22  ;;  %v3781_v41 = vpop.f32.mrf.mxu1  ;;  %v8178_v49 = vor.u32 %v9766_v39, %v8175_v42  ;;  %v9758_v22 = vld [vmem:[#allocation4 + $0xe6c] sm:$0xf]  ;;  %v8303_v39 = vld [vmem:[#allocation4 + $0xff4] sm:$0xf0]  ;;  %v7509_v40 = vld [vmem:[#allocation4 + $0x8d0] sm:$0xf] }
 0x22e   :  { %4012 = vmatmul.bf16.vlgmr.msra.gmra.mxu3 %v10269_v23  ;;  %v9603_v41 = vld [vmem:[#allocation4 + $0x8f0] sm:$0xf0] }
 0x22f   :  { %4056 = vmatpush.bf16.msrb.mxu3 %v8530_v46  ;;  %v7858_v46 = vor.u32 %v9686_v37, %v7855_v38  ;;  %v9467_v37 = vld [vmem:[#allocation4 + $0x428] sm:$0xf0]  ;;  %v9798_v38 = vld [vmem:[#allocation4 + $0xfd4] sm:$0xf] }
 0x230   :  { %4019 = vmatpush.bf16.msra.mxu0 %v7698_v57  ;;  %3999 = vmatmul.bf16.vlgmr.msrb.gmra.mxu2 %v10271_v31  ;;  %v8143_v57 = vld [vmem:[#allocation4 + $0xe8c] sm:$0xf0]  ;;  %v8306_v47 = vor.u32 %v9798_v38, %v8303_v39  ;;  %v9371_v38 = vld [vmem:[#allocation4 + $0xc8] sm:$0xf0] }
 0x231   :  { %4032 = vmatpush.bf16.msrb.mxu1 %v7954_v55  ;;  %4043 = vmatpush.bf16.msra.mxu2 %v8274_v60  ;;  %v3805_v56 = vpop.f32.mrf.mxu3  ;;  %v9814_v55 = vld [vmem:[#allocation4 + $0x1064] sm:$0xf]  ;;  %v7826_v60 = vor.u32 %v9678_v53, %v7823_v54  ;;  %v8146_v2 = vor.u32 %v9758_v22, %v8143_v57  ;;  %v7510_v53 = vor.u32 %v9603_v41, %v7509_v40  ;;  %v6933_v54 = vld [vmem:[#allocation4 + $0x3c0] sm:$0xf]  ;;  %v9539_v57 = vld [vmem:[#allocation4 + $0x6b0] sm:$0xf0] }
 0x232   :  { %v8370_v3 = vor.u32 %v9814_v55, %v8367_v58  ;;  %v9459_v22 = vld [vmem:[#allocation4 + $0x3e0] sm:$0xf0]  ;;  %v7477_v55 = vld [vmem:[#allocation4 + $0x888] sm:$0xf]  ;;  %v9595_v58 = vld [vmem:[#allocation4 + $0x8a8] sm:$0xf0] }
 0x233   :  { %4057 = vmatpush.bf16.msrb.mxu3 %v8498_v62  ;;  %v9606_v62 = vld [vmem:[#allocation4 + $0x914] sm:$0xf]  ;;  %v3792_v0 = vpop.f32.mrf.mxu2  ;;  %v6837_v41 = vld [vmem:[#allocation4 + $0x2e8] sm:$0xf] }
 0x234   :  { %4020 = vmatpush.bf16.msra.mxu0 %v7666_v16  ;;  %v3793_v15 = vadd.f32 %v3792_v0, %v3780_v24  ;;  %v6741_v16 = vld [vmem:[#allocation4 + $0x210] sm:$0xf]  ;;  %v7538_v26 = vor.u32 %v9606_v62, %v7535_v63  ;;  %v6934_v62 = vor.u32 %v9459_v22, %v6933_v54  ;;  %v6645_v63 = vld [vmem:[#allocation4 + $0x138] sm:$0xf]  ;;  %v7478_v0 = vor.u32 %v9595_v58, %v7477_v55  ;;  %v9363_v54 = vld [vmem:[#allocation4 + $0x80] sm:$0xf0] }
 0x235   :  { %4033 = vmatpush.bf16.msrb.mxu1 %v7922_v18  ;;  %4044 = vmatpush.bf16.msra.mxu2 %v8242_v13  ;;  %v9411_v18 = vld [vmem:[#allocation4 + $0x230] sm:$0xf0]  ;;  %v9806_v13 = vld [vmem:[#allocation4 + $0x101c] sm:$0xf]  ;;  %v9427_v55 = vld [vmem:[#allocation4 + $0x2c0] sm:$0xf0] }
 0x236   :  { %v10349_v17 = vadd.f32 %v3805_v56, %v3793_v15  ;;  %v6742_v29 = vor.u32 %v9411_v18, %v6741_v16  ;;  %v7253_v56 = vld [vmem:[#allocation4 + $0x690] sm:$0xf]  ;;  %v9531_v16 = vld [vmem:[#allocation4 + $0x668] sm:$0xf0]  ;;  %v7445_v18 = vld [vmem:[#allocation4 + $0x840] sm:$0xf] }
 0x237   :  { %4058 = vmatpush.bf16.msrb.mxu3 %v8466_v25  ;;  %v8335_v25 = vld [vmem:[#allocation4 + $0x103c] sm:$0xf0]  ;;  %v7125_v58 = vld [vmem:[#allocation4 + $0x570] sm:$0xf] }
 0x238   :  { %4021 = vmatpush.bf16.msra.mxu0 %v7634_v32  ;;  %v8079_v32 = vld [vmem:[#allocation4 + $0xdfc] sm:$0xf0]  ;;  %v8338_v24 = vor.u32 %v9806_v13, %v8335_v25  ;;  %v6646_v13 = vor.u32 %v9387_v1, %v6645_v63  ;;  %v9563_v63 = vld [vmem:[#allocation4 + $0x788] sm:$0xf0] }
 0x239   :  { %4034 = vmatpush.bf16.msrb.mxu1 %v7890_v20  ;;  %4045 = vmatpush.bf16.msra.mxu2 %v8210_v21  ;;  %v6998_v20 = vor.u32 %v9475_v19, %v6997_v10  ;;  %v3807_v33 = vpop.f32.mrf.mxu3  ;;  %v9403_v21 = vld [vmem:[#allocation4 + $0x1e8] sm:$0xf0]  ;;  %v8082_v42 = vor.u32 %v9742_v30, %v8079_v32  ;;  %v9587_v10 = vld [vmem:[#allocation4 + $0x860] sm:$0xf0]  ;;  %v6869_v32 = vld [vmem:[#allocation4 + $0x330] sm:$0xf] }
 0x23a   :  { %v6710_v44 = vor.u32 %v9403_v21, %v6709_v34  ;;  %v7446_v30 = vor.u32 %v9587_v10, %v7445_v18  ;;  %v9523_v33 = vld [vmem:[#allocation4 + $0x620] sm:$0xf0]  ;;  %v7413_v34 = vld [vmem:[#allocation4 + $0x7f8] sm:$0xf]  ;;  %v9579_v21 = vld [vmem:[#allocation4 + $0x818] sm:$0xf0] }
 0x23b   :  { %4059 = vmatpush.bf16.msrb.mxu3 %v8434_v35  ;;  %v6965_v35 = vld [vmem:[#allocation4 + $0x408] sm:$0xf]  ;;  %v3794_v43 = vpop.f32.mrf.mxu2  ;;  %v7414_v40 = vor.u32 %v9579_v21, %v7413_v34  ;;  %v9499_v10 = vld [vmem:[#allocation4 + $0x548] sm:$0xf0]  ;;  %v7061_v21 = vld [vmem:[#allocation4 + $0x4e0] sm:$0xf] }
 0x23c   :  { %4022 = vmatpush.bf16.msra.mxu0 %v7602_v45  ;;  %v9734_v45 = vld [vmem:[#allocation4 + $0xd94] sm:$0xf]  ;;  %v7157_v43 = vld [vmem:[#allocation4 + $0x5b8] sm:$0xf]  ;;  %v7093_v18 = vld [vmem:[#allocation4 + $0x528] sm:$0xf] }
 0x23d   :  { %4035 = vmatpush.bf16.msrb.mxu1 %v7858_v46  ;;  %4046 = vmatpush.bf16.msra.mxu2 %v8178_v49  ;;  %v6966_v46 = vor.u32 %v9467_v37, %v6965_v35  ;;  %v6677_v49 = vld [vmem:[#allocation4 + $0x180] sm:$0xf]  ;;  %v6581_v37 = vld [vmem:[#allocation4 + $0xa8] sm:$0xf] }
 0x23f   :  { %4060 = vmatpush.bf16.msrb.mxu3 %v8402_v52  ;;  %v9395_v52 = vld [vmem:[#allocation4 + $0x1a0] sm:$0xf0] }
 0x240   :  { %4023 = vmatpush.bf16.msra.mxu0 %v7570_v59  ;;  %v8050_v59 = vor.u32 %v9734_v45, %v8047_v48  ;;  %v9571_v48 = vld [vmem:[#allocation4 + $0x7d0] sm:$0xf0] }
 0x241   :  { %4036 = vmatpush.bf16.msrb.mxu1 %v7826_v60  ;;  %4047 = vmatpush.bf16.msra.mxu2 %v8146_v2  ;;  %v6678_v60 = vor.u32 %v9395_v52, %v6677_v49  ;;  %v7254_v2 = vor.u32 %v9539_v57, %v7253_v56  ;;  %v6582_v49 = vor.u32 %v9371_v38, %v6581_v37  ;;  %v6805_v57 = vld [vmem:[#allocation4 + $0x2a0] sm:$0xf]  ;;  %v7733_v38 = vld [vmem:[#allocation4 + $0xac8] sm:$0xf] }
 0x243   :  { %4061 = vmatpush.bf16.msrb.mxu3 %v8370_v3  ;;  %v6901_v3 = vld [vmem:[#allocation4 + $0x378] sm:$0xf] }
 0x244   :  { %4024 = vmatpush.bf16.msra.mxu0 %v7538_v26  ;;  %v3818_v12 = vpop.f32.mrf.mxu0  ;;  %v6902_v25 = vor.u32 %v9451_v6, %v6901_v3  ;;  %v6613_v26 = vld [vmem:[#allocation4 + $0xf0] sm:$0xf]  ;;  %v9355_v3 = vld [vmem:[#allocation4 + $0x38] sm:$0xf0]  ;;  %v6773_v6 = vld [vmem:[#allocation4 + $0x258] sm:$0xf] }
 0x245   :  { %4037 = vmatpush.bf16.msrb.mxu1 %v7794_v4  ;;  %4048 = vmatpush.bf16.msra.mxu2 %v8114_v27  ;;  %v3831_v15 = vpop.f32.mrf.mxu1  ;;  %v3819_v19 = vadd.f32 %v3818_v12, %v10349_v17  ;;  %v9379_v4 = vld [vmem:[#allocation4 + $0x110] sm:$0xf0] }
 0x246   :  { %v6614_v17 = vor.u32 %v9379_v4, %v6613_v26  ;;  %v8021_v26 = vld [vmem:[#allocation4 + $0xd50] sm:$0xf]  ;;  %v9731_v4 = vld [vmem:[#allocation4 + $0xd70] sm:$0xf0] }
 0x247   :  { %4062 = vmatpush.bf16.msrb.mxu3 %v8338_v24  ;;  %4025 = vmatmul.bf16.vlgmr.msra.gmra.mxu0 %v10282_v5  ;;  %v3832_v27 = vadd.f32 %v3831_v15, %v3819_v19  ;;  %v7189_v24 = vld [vmem:[#allocation4 + $0x600] sm:$0xf] }
 0x248   :  { %4069 = vmatpush.bf16.msrb.mxu0 %v6742_v29  ;;  %4038 = vmatmul.bf16.vlgmr.msrb.gmra.mxu1 %v10284_v11  ;;  %v7222_v29 = vor.u32 %v9531_v16, %v7221_v7  ;;  %v7190_v39 = vor.u32 %v9523_v33, %v7189_v24  ;;  %v9419_v16 = vld [vmem:[#allocation4 + $0x278] sm:$0xf0]  ;;  %v7094_v33 = vor.u32 %v9499_v10, %v7093_v18  ;;  %v8245_v10 = vld [vmem:[#allocation4 + $0xf48] sm:$0xf] }
 0x249   :  { %4082 = vmatpush.bf16.msra.mxu1 %v6998_v20  ;;  %4049 = vmatpush.bf16.msra.mxu2 %v8082_v42  ;;  %v9443_v20 = vld [vmem:[#allocation4 + $0x350] sm:$0xf0]  ;;  %v9435_v42 = vld [vmem:[#allocation4 + $0x308] sm:$0xf0]  ;;  %v6774_v24 = vor.u32 %v9419_v16, %v6773_v6  ;;  %v7669_v6 = vld [vmem:[#allocation4 + $0xa38] sm:$0xf] }
 0x24a   :  { %v6870_v35 = vor.u32 %v9443_v20, %v6869_v32  ;;  %v6838_v52 = vor.u32 %v9435_v42, %v6837_v41  ;;  %v9723_v41 = vld [vmem:[#allocation4 + $0xd28] sm:$0xf0]  ;;  %v7285_v42 = vld [vmem:[#allocation4 + $0x6d8] sm:$0xf]  ;;  %v9707_v18 = vld [vmem:[#allocation4 + $0xc98] sm:$0xf0] }
 0x24b   :  { %4063 = vmatpush.bf16.msrb.mxu3 %v8306_v47  ;;  %v7381_v47 = vld [vmem:[#allocation4 + $0x7b0] sm:$0xf]  ;;  %v7925_v16 = vld [vmem:[#allocation4 + $0xc78] sm:$0xf] }
 0x24c   :  { %4070 = vmatpush.bf16.msrb.mxu0 %v6710_v44  ;;  %v3820_v44 = vpop.f32.mrf.mxu0  ;;  %v7382_v56 = vor.u32 %v9571_v48, %v7381_v47 }
 0x24d   :  { %4083 = vmatpush.bf16.msra.mxu1 %v6966_v46  ;;  %4050 = vmatpush.bf16.msra.mxu2 %v8050_v59  ;;  %v3833_v45 = vpop.f32.mrf.mxu1  ;;  %v9515_v46 = vld [vmem:[#allocation4 + $0x5d8] sm:$0xf0]  ;;  %v8533_v44 = vld [vmem:[#allocation4 + $0x11d0] sm:$0xf] }
 0x24e   :  { %4064 = vmatmul.bf16.vlgmr.msrb.gmra.mxu3 %v10289_v28  ;;  %v7158_v22 = vor.u32 %v9515_v46, %v7157_v43  ;;  %v9547_v43 = vld [vmem:[#allocation4 + $0x6f8] sm:$0xf0]  ;;  %v9859_v45 = vld [vmem:[#allocation4 + $0x11f0] sm:$0xf0] }
 0x24f   :  { %4108 = vmatpush.bf16.msra.mxu3 %v7510_v53  ;;  %v6549_v53 = vld [vmem:[#allocation4 + $0x60] sm:$0xf] }
 0x250   :  { %4071 = vmatpush.bf16.msrb.mxu0 %v6678_v60  ;;  %4051 = vmatmul.bf16.vlgmr.msra.gmra.mxu2 %v10291_v36  ;;  %v9507_v60 = vld [vmem:[#allocation4 + $0x590] sm:$0xf0]  ;;  %v6550_v1 = vor.u32 %v9363_v54, %v6549_v53  ;;  %v7286_v53 = vor.u32 %v9547_v43, %v7285_v42  ;;  %v9483_v54 = vld [vmem:[#allocation4 + $0x4b8] sm:$0xf0]  ;;  %v7605_v43 = vld [vmem:[#allocation4 + $0x9a8] sm:$0xf] }
 0x251   :  { %4084 = vmatpush.bf16.msra.mxu1 %v6934_v62  ;;  %4095 = vmatpush.bf16.msrb.mxu2 %v7254_v2  ;;  %v3857_v59 = vpop.f32.mrf.mxu3  ;;  %v7349_v62 = vld [vmem:[#allocation4 + $0x768] sm:$0xf]  ;;  %v6806_v2 = vor.u32 %v9427_v55, %v6805_v57  ;;  %v7126_v7 = vor.u32 %v9507_v60, %v7125_v58  ;;  %v8534_v57 = vor.u32 %v9859_v45, %v8533_v44  ;;  %v7957_v55 = vld [vmem:[#allocation4 + $0xcc0] sm:$0xf]  ;;  %v9715_v58 = vld [vmem:[#allocation4 + $0xce0] sm:$0xf0] }
 0x252   :  { %v7350_v15 = vor.u32 %v9563_v63, %v7349_v62  ;;  %v9795_v60 = vld [vmem:[#allocation4 + $0xfb0] sm:$0xf0]  ;;  %v8501_v62 = vld [vmem:[#allocation4 + $0x1188] sm:$0xf]  ;;  %v9851_v63 = vld [vmem:[#allocation4 + $0x11a8] sm:$0xf0] }
 0x253   :  { %4109 = vmatpush.bf16.msra.mxu3 %v7478_v0  ;;  %v6517_v0 = vld [vmem:[#allocation4 + $0x18] sm:$0xf]  ;;  %v3844_v12 = vpop.f32.mrf.mxu2  ;;  %v9627_v44 = vld [vmem:[#allocation4 + $0x9c8] sm:$0xf0] }
 0x254   :  { %4072 = vmatpush.bf16.msrb.mxu0 %v6646_v13  ;;  %v3845_v19 = vadd.f32 %v3844_v12, %v3832_v27  ;;  %v7765_v13 = vld [vmem:[#allocation4 + $0xb10] sm:$0xf]  ;;  %v6518_v20 = vor.u32 %v9355_v3, %v6517_v0  ;;  %v7958_v3 = vor.u32 %v9715_v58, %v7957_v55  ;;  %v7573_v58 = vld [vmem:[#allocation4 + $0x960] sm:$0xf] }
 0x255   :  { %4085 = vmatpush.bf16.msra.mxu1 %v6902_v25  ;;  %4096 = vmatpush.bf16.msrb.mxu2 %v7222_v29  ;;  %v9667_v25 = vld [vmem:[#allocation4 + $0xb30] sm:$0xf0]  ;;  %v7317_v29 = vld [vmem:[#allocation4 + $0x720] sm:$0xf] }
 0x256   :  { %v10356_v32 = vadd.f32 %v3857_v59, %v3845_v19  ;;  %v7766_v34 = vor.u32 %v9667_v25, %v7765_v13  ;;  %v8277_v59 = vld [vmem:[#allocation4 + $0xf90] sm:$0xf]  ;;  %v9787_v25 = vld [vmem:[#allocation4 + $0xf68] sm:$0xf0] }
 0x257   :  { %4110 = vmatpush.bf16.msra.mxu3 %v7446_v30  ;;  %v9555_v30 = vld [vmem:[#allocation4 + $0x740] sm:$0xf0]  ;;  %v8278_v12 = vor.u32 %v9795_v60, %v8277_v59 }
 0x258   :  { %4073 = vmatpush.bf16.msrb.mxu0 %v6614_v17  ;;  %v9491_v17 = vld [vmem:[#allocation4 + $0x500] sm:$0xf0]  ;;  %v7318_v27 = vor.u32 %v9555_v30, %v7317_v29  ;;  %vm4280_vm1 = vcmp.gt.f32.partialorder %v10356_v32, 0.0 }
 0x259   :  { %4086 = vmatpush.bf16.msra.mxu1 %v6870_v35  ;;  %4097 = vmatpush.bf16.msrb.mxu2 %v7190_v39  ;;  %v8022_v35 = vor.u32 %v9731_v4, %v8021_v26  ;;  %v3859_v37 = vpop.f32.mrf.mxu3  ;;  %v9659_v39 = vld [vmem:[#allocation4 + $0xae8] sm:$0xf0]  ;;  %v7062_v46 = vor.u32 %v9491_v17, %v7061_v21  ;;  %v8469_v26 = vld [vmem:[#allocation4 + $0x1140] sm:$0xf]  ;;  %v9843_v4 = vld [vmem:[#allocation4 + $0x1160] sm:$0xf0]  ;;  %v8246_v21 = vor.u32 %v9787_v25, %v8245_v10 }
 0x25a   :  { %v7734_v48 = vor.u32 %v9659_v39, %v7733_v38  ;;  %v8470_v17 = vor.u32 %v9843_v4, %v8469_v26  ;;  %v8213_v37 = vld [vmem:[#allocation4 + $0xf00] sm:$0xf]  ;;  %v9779_v38 = vld [vmem:[#allocation4 + $0xf20] sm:$0xf0]  ;;  %v8437_v39 = vld [vmem:[#allocation4 + $0x10f8] sm:$0xf] }
 0x25b   :  { %4111 = vmatpush.bf16.msra.mxu3 %v7414_v40  ;;  %v7989_v40 = vld [vmem:[#allocation4 + $0xd08] sm:$0xf]  ;;  %v3846_v47 = vpop.f32.mrf.mxu2  ;;  %v8214_v45 = vor.u32 %v9779_v38, %v8213_v37  ;;  %v9619_v59 = vld [vmem:[#allocation4 + $0x980] sm:$0xf0]  ;;  %v7797_v10 = vld [vmem:[#allocation4 + $0xb58] sm:$0xf] }
 0x25c   :  { %4074 = vmatpush.bf16.msrb.mxu0 %v6582_v49  ;;  %v7029_v49 = vld [vmem:[#allocation4 + $0x498] sm:$0xf]  ;;  %v7861_v47 = vld [vmem:[#allocation4 + $0xbe8] sm:$0xf]  ;;  %v9675_v26 = vld [vmem:[#allocation4 + $0xb78] sm:$0xf0] }
 0x25d   :  { %4087 = vmatpush.bf16.msra.mxu1 %v6838_v52  ;;  %4098 = vmatpush.bf16.msrb.mxu2 %v7158_v22  ;;  %v7990_v52 = vor.u32 %v9723_v41, %v7989_v40  ;;  %v7701_v22 = vld [vmem:[#allocation4 + $0xa80] sm:$0xf]  ;;  %v9835_v40 = vld [vmem:[#allocation4 + $0x1118] sm:$0xf0]  ;;  %v8117_v4 = vld [vmem:[#allocation4 + $0xe28] sm:$0xf]  ;;  %v7798_v37 = vor.u32 %v9675_v26, %v7797_v10 }
 0x25e   :  { %v9383_v10 = vld [vmem:[#allocation4 + $0x13c] sm:$0xf] }
 0x25f   :  { %4112 = vmatpush.bf16.msra.mxu3 %v7382_v56  ;;  %v9651_v56 = vld [vmem:[#allocation4 + $0xaa0] sm:$0xf0]  ;;  %v9447_v26 = vld [vmem:[#allocation4 + $0x37c] sm:$0xf] }
 0x260   :  { %4075 = vmatpush.bf16.msrb.mxu0 %v6550_v1  ;;  %v7030_v1 = vor.u32 %v9483_v54, %v7029_v49  ;;  %v7702_v0 = vor.u32 %v9651_v56, %v7701_v22  ;;  %v8181_v49 = vld [vmem:[#allocation4 + $0xeb8] sm:$0xf]  ;;  %v9771_v54 = vld [vmem:[#allocation4 + $0xed8] sm:$0xf0]  ;;  %v8405_v22 = vld [vmem:[#allocation4 + $0x10b0] sm:$0xf] }
 0x261   :  { %4088 = vmatpush.bf16.msra.mxu1 %v6806_v2  ;;  %4099 = vmatpush.bf16.msrb.mxu2 %v7126_v7  ;;  %v873_v2 = vperm.slane %v10307_v14, 4  ;;  %v9643_v7 = vld [vmem:[#allocation4 + $0xa58] sm:$0xf0]  ;;  %v9827_v56 = vld [vmem:[#allocation4 + $0x10d0] sm:$0xf0]  ;;  %v8182_v60 = vor.u32 %v9771_v54, %v8181_v49 }
 0x262   :  { %v7670_v30 = vor.u32 %v9643_v7, %v7669_v6  ;;  %v8373_v6 = vld [vmem:[#allocation4 + $0x1068] sm:$0xf]  ;;  %v9819_v7 = vld [vmem:[#allocation4 + $0x1088] sm:$0xf0]  ;;  %v8309_v49 = vld [vmem:[#allocation4 + $0xfd8] sm:$0xf] }
 0x263   :  { %4113 = vmatpush.bf16.msra.mxu3 %v7350_v15  ;;  %v8502_v15 = vor.u32 %v9851_v63, %v8501_v62  ;;  %v8406_v62 = vor.u32 %v9827_v56, %v8405_v22  ;;  %v7829_v63 = vld [vmem:[#allocation4 + $0xba0] sm:$0xf]  ;;  %v8374_v25 = vor.u32 %v9819_v7, %v8373_v6  ;;  %v7511_v54 = vld [vmem:[#allocation4 + $0x8f4] sm:$0xf0]  ;;  %v9591_v7 = vld [vmem:[#allocation4 + $0x88c] sm:$0xf] }
 0x264   :  { %4076 = vmatpush.bf16.msrb.mxu0 %v6518_v20  ;;  %v3870_v19 = vpop.f32.mrf.mxu0  ;;  %v7926_v20 = vor.u32 %v9707_v18, %v7925_v16  ;;  %v7541_v16 = vld [vmem:[#allocation4 + $0x918] sm:$0xf]  ;;  %v9611_v18 = vld [vmem:[#allocation4 + $0x938] sm:$0xf0] }
 0x265   :  { %4089 = vmatpush.bf16.msra.mxu1 %v6774_v24  ;;  %4100 = vmatpush.bf16.msrb.mxu2 %v7094_v33  ;;  %v3883_v13 = vpop.f32.mrf.mxu1  ;;  %v3871_v29 = vadd.f32 %v3870_v19, %v873_v2  ;;  %v7637_v24 = vld [vmem:[#allocation4 + $0x9f0] sm:$0xf]  ;;  %v9635_v33 = vld [vmem:[#allocation4 + $0xa10] sm:$0xf0]  ;;  %v7255_v6 = vld [vmem:[#allocation4 + $0x6b4] sm:$0xf0] }
 0x266   :  { %v7638_v41 = vor.u32 %v9635_v33, %v7637_v24  ;;  %v8149_v2 = vld [vmem:[#allocation4 + $0xe70] sm:$0xf]  ;;  %v6743_v24 = vld [vmem:[#allocation4 + $0x234] sm:$0xf0]  ;;  %v9471_v33 = vld [vmem:[#allocation4 + $0x454] sm:$0xf] }
 0x267   :  { %4114 = vmatpush.bf16.msra.mxu3 %v7318_v27  ;;  %4077 = vmatmul.bf16.vlgmr.msrb.gmra.mxu0 %v10253_v50  ;;  %v9699_v27 = vld [vmem:[#allocation4 + $0xc50] sm:$0xf0] }
 0x268   :  { %4121 = vmatpush.bf16.msra.mxu0 %v7766_v34  ;;  %4090 = vmatmul.bf16.vlgmr.msra.gmra.mxu1 %v10255_v51  ;;  %v3884_v34 = vadd.f32 %v3883_v13, %v3871_v29  ;;  %v9755_v29 = vld [vmem:[#allocation4 + $0xe48] sm:$0xf0] }
 0x269   :  { %4134 = vmatpush.bf16.msrb.mxu1 %v8022_v35  ;;  %4101 = vmatpush.bf16.msrb.mxu2 %v7062_v46  ;;  %v7893_v35 = vld [vmem:[#allocation4 + $0xc30] sm:$0xf]  ;;  %v8438_v46 = vor.u32 %v9835_v40, %v8437_v39  ;;  %v8118_v39 = vor.u32 %v9755_v29, %v8117_v4  ;;  %v6903_v4 = vld [vmem:[#allocation4 + $0x39c] sm:$0xf0]  ;;  %v9527_v29 = vld [vmem:[#allocation4 + $0x64c] sm:$0xf] }
 0x26a   :  { %v7894_v42 = vor.u32 %v9699_v27, %v7893_v35  ;;  %v9811_v35 = vld [vmem:[#allocation4 + $0x1040] sm:$0xf0]  ;;  %v7542_v27 = vor.u32 %v9611_v18, %v7541_v16 }
 0x26b   :  { %4115 = vmatpush.bf16.msra.mxu3 %v7286_v53 }
 0x26c   :  { %4122 = vmatpush.bf16.msra.mxu0 %v7734_v48  ;;  %v9691_v48 = vld [vmem:[#allocation4 + $0xc08] sm:$0xf0] }
 0x26d   :  { %4135 = vmatpush.bf16.msrb.mxu1 %v7990_v52  ;;  %4102 = vmatpush.bf16.msrb.mxu2 %v7030_v1  ;;  %v3872_v52 = vpop.f32.mrf.mxu0  ;;  %v3885_v53 = vpop.f32.mrf.mxu1  ;;  %v7862_v55 = vor.u32 %v9691_v48, %v7861_v47  ;;  %v9683_v1 = vld [vmem:[#allocation4 + $0xbc0] sm:$0xf0]  ;;  %v9463_v47 = vld [vmem:[#allocation4 + $0x40c] sm:$0xf]  ;;  %v6967_v48 = vld [vmem:[#allocation4 + $0x42c] sm:$0xf0] }
 0x26e   :  { %4116 = vmatmul.bf16.vlgmr.msra.gmra.mxu3 %v10269_v23  ;;  %v9803_v52 = vld [vmem:[#allocation4 + $0xff8] sm:$0xf0]  ;;  %v9599_v53 = vld [vmem:[#allocation4 + $0x8d4] sm:$0xf] }
 0x26f   :  { %4160 = vmatpush.bf16.msrb.mxu3 %v8534_v57  ;;  %v7606_v57 = vor.u32 %v9627_v44, %v7605_v43 }
 0x270   :  { %4123 = vmatpush.bf16.msra.mxu0 %v7702_v0  ;;  %4103 = vmatmul.bf16.vlgmr.msrb.gmra.mxu2 %v10271_v31 }
 0x271   :  { %4136 = vmatpush.bf16.msrb.mxu1 %v7958_v3  ;;  %4147 = vmatpush.bf16.msra.mxu2 %v8278_v12  ;;  %v3909_v0 = vpop.f32.mrf.mxu3  ;;  %v9763_v3 = vld [vmem:[#allocation4 + $0xe90] sm:$0xf0]  ;;  %v7574_v12 = vor.u32 %v9619_v59, %v7573_v58  ;;  %v6970_v58 = vor.u32 %v9463_v47, %v6967_v48  ;;  %v8310_v59 = vor.u32 %v9803_v52, %v8309_v49  ;;  %v7415_v47 = vld [vmem:[#allocation4 + $0x81c] sm:$0xf0]  ;;  %v9367_v49 = vld [vmem:[#allocation4 + $0xac] sm:$0xf] }
 0x272   :  { %v8150_v19 = vor.u32 %v9763_v3, %v8149_v2  ;;  %v9455_v2 = vld [vmem:[#allocation4 + $0x3c4] sm:$0xf]  ;;  %v9535_v3 = vld [vmem:[#allocation4 + $0x694] sm:$0xf]  ;;  %v6583_v52 = vld [vmem:[#allocation4 + $0xcc] sm:$0xf0] }
 0x273   :  { %4161 = vmatpush.bf16.msrb.mxu3 %v8502_v15  ;;  %v7830_v15 = vor.u32 %v9683_v1, %v7829_v63  ;;  %v3896_v13 = vpop.f32.mrf.mxu2  ;;  %v6679_v63 = vld [vmem:[#allocation4 + $0x1a4] sm:$0xf0]  ;;  %v7514_v1 = vor.u32 %v9599_v53, %v7511_v54 }
 0x274   :  { %4124 = vmatpush.bf16.msra.mxu0 %v7670_v30  ;;  %v3897_v30 = vadd.f32 %v3896_v13, %v3884_v34  ;;  %v7258_v13 = vor.u32 %v9535_v3, %v7255_v6 }
 0x275   :  { %4137 = vmatpush.bf16.msrb.mxu1 %v7926_v20  ;;  %4148 = vmatpush.bf16.msra.mxu2 %v8246_v21  ;;  %v9407_v20 = vld [vmem:[#allocation4 + $0x214] sm:$0xf]  ;;  %v6999_v21 = vld [vmem:[#allocation4 + $0x474] sm:$0xf0] }
 0x276   :  { %v10363_v38 = vadd.f32 %v3909_v0, %v3897_v30  ;;  %v6746_v40 = vor.u32 %v9407_v20, %v6743_v24  ;;  %v7002_v43 = vor.u32 %v9471_v33, %v6999_v21  ;;  %v6935_v0 = vld [vmem:[#allocation4 + $0x3e4] sm:$0xf0]  ;;  %v7223_v24 = vld [vmem:[#allocation4 + $0x66c] sm:$0xf0]  ;;  %v9583_v33 = vld [vmem:[#allocation4 + $0x844] sm:$0xf] }
 0x277   :  { %4162 = vmatpush.bf16.msrb.mxu3 %v8470_v17  ;;  %v8341_v17 = vld [vmem:[#allocation4 + $0x1020] sm:$0xf]  ;;  %v6938_v18 = vor.u32 %v9455_v2, %v6935_v0  ;;  %v7447_v21 = vld [vmem:[#allocation4 + $0x864] sm:$0xf0]  ;;  %v9359_v2 = vld [vmem:[#allocation4 + $0x64] sm:$0xf] }
 0x278   :  { %4125 = vmatpush.bf16.msra.mxu0 %v7638_v41  ;;  %v8085_v41 = vld [vmem:[#allocation4 + $0xde0] sm:$0xf]  ;;  %v8342_v34 = vor.u32 %v9811_v35, %v8341_v17  ;;  %v6551_v0 = vld [vmem:[#allocation4 + $0x84] sm:$0xf0] }
 0x279   :  { %4138 = vmatpush.bf16.msrb.mxu1 %v7894_v42  ;;  %4149 = vmatpush.bf16.msra.mxu2 %v8214_v45  ;;  %v9747_v42 = vld [vmem:[#allocation4 + $0xe00] sm:$0xf0]  ;;  %v3911_v44 = vpop.f32.mrf.mxu3  ;;  %v9399_v45 = vld [vmem:[#allocation4 + $0x1cc] sm:$0xf] }
 0x27a   :  { %v8086_v22 = vor.u32 %v9747_v42, %v8085_v41  ;;  %v7226_v41 = vor.u32 %v9527_v29, %v7223_v24  ;;  %v7450_v42 = vor.u32 %v9583_v33, %v7447_v21  ;;  %v9519_v44 = vld [vmem:[#allocation4 + $0x604] sm:$0xf]  ;;  %v9415_v29 = vld [vmem:[#allocation4 + $0x25c] sm:$0xf]  ;;  %v6775_v33 = vld [vmem:[#allocation4 + $0x27c] sm:$0xf0] }
 0x27b   :  { %4163 = vmatpush.bf16.msrb.mxu3 %v8438_v46  ;;  %v6711_v46 = vld [vmem:[#allocation4 + $0x1ec] sm:$0xf0]  ;;  %v3898_v56 = vpop.f32.mrf.mxu2  ;;  %v9495_v21 = vld [vmem:[#allocation4 + $0x52c] sm:$0xf] }
 0x27c   :  { %4126 = vmatpush.bf16.msra.mxu0 %v7606_v57  ;;  %v6714_v57 = vor.u32 %v9399_v45, %v6711_v46  ;;  %v7191_v45 = vld [vmem:[#allocation4 + $0x624] sm:$0xf0]  ;;  %v9575_v46 = vld [vmem:[#allocation4 + $0x7fc] sm:$0xf]  ;;  %v6839_v56 = vld [vmem:[#allocation4 + $0x30c] sm:$0xf0] }
 0x27d   :  { %4139 = vmatpush.bf16.msrb.mxu1 %v7862_v55  ;;  %4150 = vmatpush.bf16.msra.mxu2 %v8182_v60  ;;  %v8053_v55 = vld [vmem:[#allocation4 + $0xd98] sm:$0xf]  ;;  %v9739_v60 = vld [vmem:[#allocation4 + $0xdb8] sm:$0xf0]  ;;  %v7194_v53 = vor.u32 %v9519_v44, %v7191_v45  ;;  %v7418_v54 = vor.u32 %v9575_v46, %v7415_v47  ;;  %v6778_v45 = vor.u32 %v9415_v29, %v6775_v33  ;;  %v9783_v33 = vld [vmem:[#allocation4 + $0xf4c] sm:$0xf] }
 0x27e   :  { %v9639_v29 = vld [vmem:[#allocation4 + $0xa3c] sm:$0xf] }
 0x27f   :  { %4164 = vmatpush.bf16.msrb.mxu3 %v8406_v62  ;;  %v9391_v62 = vld [vmem:[#allocation4 + $0x184] sm:$0xf] }
 0x280   :  { %4127 = vmatpush.bf16.msra.mxu0 %v7574_v12  ;;  %v7479_v12 = vld [vmem:[#allocation4 + $0x8ac] sm:$0xf0]  ;;  %v6682_v16 = vor.u32 %v9391_v62, %v6679_v63  ;;  %v7383_v62 = vld [vmem:[#allocation4 + $0x7d4] sm:$0xf0]  ;;  %v6586_v63 = vor.u32 %v9367_v49, %v6583_v52 }
 0x281   :  { %4140 = vmatpush.bf16.msrb.mxu1 %v7830_v15  ;;  %4151 = vmatpush.bf16.msra.mxu2 %v8150_v19  ;;  %v8054_v15 = vor.u32 %v9739_v60, %v8053_v55  ;;  %v6647_v19 = vld [vmem:[#allocation4 + $0x15c] sm:$0xf0]  ;;  %v9567_v60 = vld [vmem:[#allocation4 + $0x7b4] sm:$0xf] }
 0x282   :  { %v6650_v35 = vor.u32 %v9383_v10, %v6647_v19  ;;  %v7386_v6 = vor.u32 %v9567_v60, %v7383_v62  ;;  %v9559_v10 = vld [vmem:[#allocation4 + $0x76c] sm:$0xf]  ;;  %v7351_v19 = vld [vmem:[#allocation4 + $0x78c] sm:$0xf0] }
 0x283   :  { %4165 = vmatpush.bf16.msrb.mxu3 %v8374_v25  ;;  %v7482_v25 = vor.u32 %v9591_v7, %v7479_v12  ;;  %v9423_v7 = vld [vmem:[#allocation4 + $0x2a4] sm:$0xf]  ;;  %v6807_v12 = vld [vmem:[#allocation4 + $0x2c4] sm:$0xf0]  ;;  %v7354_v24 = vor.u32 %v9559_v10, %v7351_v19  ;;  %v8279_v10 = vld [vmem:[#allocation4 + $0xfb4] sm:$0xf0] }
 0x284   :  { %4128 = vmatpush.bf16.msra.mxu0 %v7542_v27  ;;  %v3922_v30 = vpop.f32.mrf.mxu0  ;;  %v6906_v27 = vor.u32 %v9447_v26, %v6903_v4  ;;  %v9351_v26 = vld [vmem:[#allocation4 + $0x1c] sm:$0xf]  ;;  %v6519_v4 = vld [vmem:[#allocation4 + $0x3c] sm:$0xf0]  ;;  %v9847_v19 = vld [vmem:[#allocation4 + $0x118c] sm:$0xf] }
 0x285   :  { %4141 = vmatpush.bf16.msrb.mxu1 %v7798_v37  ;;  %4152 = vmatpush.bf16.msra.mxu2 %v8118_v39  ;;  %v3935_v20 = vpop.f32.mrf.mxu1  ;;  %v3923_v17 = vadd.f32 %v3922_v30, %v10363_v38  ;;  %v9375_v37 = vld [vmem:[#allocation4 + $0xf4] sm:$0xf]  ;;  %v6615_v39 = vld [vmem:[#allocation4 + $0x114] sm:$0xf0]  ;;  %v6522_v44 = vor.u32 %v9351_v26, %v6519_v4 }
 0x286   :  { %v6618_v38 = vor.u32 %v9375_v37, %v6615_v39  ;;  %v7767_v37 = vld [vmem:[#allocation4 + $0xb34] sm:$0xf0]  ;;  %v9727_v39 = vld [vmem:[#allocation4 + $0xd54] sm:$0xf] }
 0x287   :  { %4166 = vmatpush.bf16.msrb.mxu3 %v8342_v34  ;;  %4129 = vmatmul.bf16.vlgmr.msra.gmra.mxu0 %v10282_v5  ;;  %v6871_v34 = vld [vmem:[#allocation4 + $0x354] sm:$0xf0] }
 0x288   :  { %4173 = vmatpush.bf16.msrb.mxu0 %v6746_v40  ;;  %4142 = vmatmul.bf16.vlgmr.msrb.gmra.mxu1 %v10284_v11  ;;  %v3936_v40 = vadd.f32 %v3935_v20, %v3923_v17  ;;  %v7095_v17 = vld [vmem:[#allocation4 + $0x54c] sm:$0xf0] }
 0x289   :  { %4186 = vmatpush.bf16.msra.mxu1 %v7002_v43  ;;  %4153 = vmatpush.bf16.msra.mxu2 %v8086_v22  ;;  %v9439_v43 = vld [vmem:[#allocation4 + $0x334] sm:$0xf]  ;;  %v9431_v22 = vld [vmem:[#allocation4 + $0x2ec] sm:$0xf]  ;;  %v7098_v46 = vor.u32 %v9495_v21, %v7095_v17 }
 0x28a   :  { %v6874_v48 = vor.u32 %v9439_v43, %v6871_v34  ;;  %v7319_v43 = vld [vmem:[#allocation4 + $0x744] sm:$0xf0] }
 0x28b   :  { %4167 = vmatpush.bf16.msrb.mxu3 %v8310_v59  ;;  %v7159_v59 = vld [vmem:[#allocation4 + $0x5dc] sm:$0xf0] }
 0x28c   :  { %4174 = vmatpush.bf16.msrb.mxu0 %v6714_v57  ;;  %v9511_v57 = vld [vmem:[#allocation4 + $0x5bc] sm:$0xf]  ;;  %v3924_v55 = vpop.f32.mrf.mxu0 }
 0x28d   :  { %4187 = vmatpush.bf16.msra.mxu1 %v6970_v58  ;;  %4154 = vmatpush.bf16.msra.mxu2 %v8054_v15  ;;  %v3937_v58 = vpop.f32.mrf.mxu1  ;;  %v7162_v3 = vor.u32 %v9511_v57, %v7159_v59  ;;  %v9503_v15 = vld [vmem:[#allocation4 + $0x574] sm:$0xf]  ;;  %v9543_v57 = vld [vmem:[#allocation4 + $0x6dc] sm:$0xf]  ;;  %v7287_v55 = vld [vmem:[#allocation4 + $0x6fc] sm:$0xf0] }
 0x28e   :  { %4168 = vmatmul.bf16.vlgmr.msrb.gmra.mxu3 %v10289_v28  ;;  %v9855_v58 = vld [vmem:[#allocation4 + $0x11d4] sm:$0xf]  ;;  %v8535_v59 = vld [vmem:[#allocation4 + $0x11f4] sm:$0xf0] }
 0x28f   :  { %4212 = vmatpush.bf16.msra.mxu3 %v7514_v1  ;;  %v6842_v1 = vor.u32 %v9431_v22, %v6839_v56  ;;  %v9719_v22 = vld [vmem:[#allocation4 + $0xd0c] sm:$0xf]  ;;  %v7991_v56 = vld [vmem:[#allocation4 + $0xd2c] sm:$0xf0] }
 0x290   :  { %4175 = vmatpush.bf16.msrb.mxu0 %v6682_v16  ;;  %4155 = vmatmul.bf16.vlgmr.msra.gmra.mxu2 %v10291_v36 }
 0x291   :  { %4188 = vmatpush.bf16.msra.mxu1 %v6938_v18  ;;  %4199 = vmatpush.bf16.msrb.mxu2 %v7258_v13  ;;  %v3961_v16 = vpop.f32.mrf.mxu3  ;;  %v7127_v18 = vld [vmem:[#allocation4 + $0x594] sm:$0xf0]  ;;  %v6554_v13 = vor.u32 %v9359_v2, %v6551_v0  ;;  %v7994_v2 = vor.u32 %v9719_v22, %v7991_v56  ;;  %v7290_v0 = vor.u32 %v9543_v57, %v7287_v55  ;;  %v9687_v57 = vld [vmem:[#allocation4 + $0xbec] sm:$0xf]  ;;  %v7863_v55 = vld [vmem:[#allocation4 + $0xc0c] sm:$0xf0] }
 0x292   :  { %v7130_v30 = vor.u32 %v9503_v15, %v7127_v18  ;;  %v9711_v15 = vld [vmem:[#allocation4 + $0xcc4] sm:$0xf]  ;;  %v9791_v18 = vld [vmem:[#allocation4 + $0xf94] sm:$0xf] }
 0x293   :  { %4213 = vmatpush.bf16.msra.mxu3 %v7482_v25  ;;  %v6810_v25 = vor.u32 %v9423_v7, %v6807_v12  ;;  %v3948_v20 = vpop.f32.mrf.mxu2  ;;  %v7703_v7 = vld [vmem:[#allocation4 + $0xaa4] sm:$0xf0]  ;;  %v8538_v12 = vor.u32 %v9855_v58, %v8535_v59  ;;  %v9767_v58 = vld [vmem:[#allocation4 + $0xebc] sm:$0xf] }
 0x294   :  { %4176 = vmatpush.bf16.msrb.mxu0 %v6650_v35  ;;  %v3949_v35 = vadd.f32 %v3948_v20, %v3936_v40 }
 0x295   :  { %4189 = vmatpush.bf16.msra.mxu1 %v6906_v27  ;;  %4200 = vmatpush.bf16.msrb.mxu2 %v7226_v41  ;;  %v9663_v27 = vld [vmem:[#allocation4 + $0xb14] sm:$0xf]  ;;  %v8023_v41 = vld [vmem:[#allocation4 + $0xd74] sm:$0xf0] }
 0x296   :  { %v10370_v34 = vadd.f32 %v3961_v16, %v3949_v35  ;;  %v7770_v47 = vor.u32 %v9663_v27, %v7767_v37  ;;  %v8026_v49 = vor.u32 %v9727_v39, %v8023_v41  ;;  %v7959_v16 = vld [vmem:[#allocation4 + $0xce4] sm:$0xf0]  ;;  %v8247_v35 = vld [vmem:[#allocation4 + $0xf6c] sm:$0xf0]  ;;  %v9839_v27 = vld [vmem:[#allocation4 + $0x1144] sm:$0xf] }
 0x297   :  { %4214 = vmatpush.bf16.msra.mxu3 %v7450_v42  ;;  %v9551_v42 = vld [vmem:[#allocation4 + $0x724] sm:$0xf]  ;;  %v7962_v4 = vor.u32 %v9711_v15, %v7959_v16  ;;  %v8471_v37 = vld [vmem:[#allocation4 + $0x1164] sm:$0xf0]  ;;  %v9759_v16 = vld [vmem:[#allocation4 + $0xe74] sm:$0xf] }
 0x298   :  { %4177 = vmatpush.bf16.msrb.mxu0 %v6618_v38  ;;  %v9487_v38 = vld [vmem:[#allocation4 + $0x4e4] sm:$0xf]  ;;  %v7322_v40 = vor.u32 %v9551_v42, %v7319_v43  ;;  %v9631_v42 = vld [vmem:[#allocation4 + $0x9f4] sm:$0xf]  ;;  %v7639_v43 = vld [vmem:[#allocation4 + $0xa14] sm:$0xf0] }
 0x299   :  { %4190 = vmatpush.bf16.msra.mxu1 %v6874_v48  ;;  %4201 = vmatpush.bf16.msrb.mxu2 %v7194_v53  ;;  %v7063_v48 = vld [vmem:[#allocation4 + $0x504] sm:$0xf0]  ;;  %v3963_v52 = vpop.f32.mrf.mxu3  ;;  %v9655_v53 = vld [vmem:[#allocation4 + $0xacc] sm:$0xf]  ;;  %vm4281_vm2 = vcmp.gt.f32.partialorder %v10370_v34, 0.0 }
 0x29a   :  { %v7066_v60 = vor.u32 %v9487_v38, %v7063_v48  ;;  %v9775_v38 = vld [vmem:[#allocation4 + $0xf04] sm:$0xf]  ;;  %v8215_v48 = vld [vmem:[#allocation4 + $0xf24] sm:$0xf0] }
 0x29b   :  { %4215 = vmatpush.bf16.msra.mxu3 %v7418_v54  ;;  %v7735_v54 = vld [vmem:[#allocation4 + $0xaec] sm:$0xf0]  ;;  %v3950_v62 = vpop.f32.mrf.mxu2  ;;  %v8218_v22 = vor.u32 %v9775_v38, %v8215_v48  ;;  %v7831_v15 = vld [vmem:[#allocation4 + $0xbc4] sm:$0xf0]  ;;  %v9743_v38 = vld [vmem:[#allocation4 + $0xde4] sm:$0xf] }
 0x29c   :  { %4178 = vmatpush.bf16.msrb.mxu0 %v6586_v63  ;;  %v7738_v63 = vor.u32 %v9655_v53, %v7735_v54  ;;  %v9623_v53 = vld [vmem:[#allocation4 + $0x9ac] sm:$0xf]  ;;  %v7607_v54 = vld [vmem:[#allocation4 + $0x9cc] sm:$0xf0]  ;;  %v8183_v62 = vld [vmem:[#allocation4 + $0xedc] sm:$0xf0] }
 0x29d   :  { %4191 = vmatpush.bf16.msra.mxu1 %v6842_v1  ;;  %4202 = vmatpush.bf16.msrb.mxu2 %v7162_v3  ;;  %v9479_v1 = vld [vmem:[#allocation4 + $0x49c] sm:$0xf]  ;;  %v7031_v3 = vld [vmem:[#allocation4 + $0x4bc] sm:$0xf0]  ;;  %v8087_v48 = vld [vmem:[#allocation4 + $0xe04] sm:$0xf0] }
 0x29f   :  { %4216 = vmatpush.bf16.msra.mxu3 %v7386_v6  ;;  %v9647_v6 = vld [vmem:[#allocation4 + $0xa84] sm:$0xf] }
 0x2a0   :  { %4179 = vmatpush.bf16.msrb.mxu0 %v6554_v13  ;;  %v8503_v13 = vld [vmem:[#allocation4 + $0x11ac] sm:$0xf0]  ;;  %v7706_v26 = vor.u32 %v9647_v6, %v7703_v7  ;;  %v8186_v6 = vor.u32 %v9767_v58, %v8183_v62  ;;  %v9891_v58 = vld [vmem:[#allocation4 + $0x8f8] sm:$0xf0] }
 0x2a1   :  { %4192 = vmatpush.bf16.msra.mxu1 %v6810_v25  ;;  %4203 = vmatpush.bf16.msrb.mxu2 %v7130_v30  ;;  %v7034_v25 = vor.u32 %v9479_v1, %v7031_v3  ;;  %v7671_v30 = vld [vmem:[#allocation4 + $0xa5c] sm:$0xf0]  ;;  %v8506_v20 = vor.u32 %v9847_v19, %v8503_v13  ;;  %v7610_v1 = vor.u32 %v9623_v53, %v7607_v54  ;;  %v7575_v3 = vld [vmem:[#allocation4 + $0x984] sm:$0xf0]  ;;  %v9815_v19 = vld [vmem:[#allocation4 + $0x106c] sm:$0xf] }
 0x2a2   :  { %v7674_v39 = vor.u32 %v9639_v29, %v7671_v30  ;;  %v8375_v13 = vld [vmem:[#allocation4 + $0x108c] sm:$0xf0]  ;;  %v7543_v29 = vld [vmem:[#allocation4 + $0x93c] sm:$0xf0]  ;;  %v9671_v30 = vld [vmem:[#allocation4 + $0xb5c] sm:$0xf] }
 0x2a3   :  { %4217 = vmatpush.bf16.msra.mxu3 %v7354_v24  ;;  %v7927_v24 = vld [vmem:[#allocation4 + $0xc9c] sm:$0xf0]  ;;  %v9866_v53 = vld [vmem:[#allocation4 + $0x1f0] sm:$0xf0]  ;;  %v8597_v54 = vld [vmem:[#allocation4 + $0x410] sm:$0xf] }
 0x2a4   :  { %4180 = vmatpush.bf16.msrb.mxu0 %v6522_v44  ;;  %v10374_v21 = vpop.f32.mrf.mxu0  ;;  %v8250_v44 = vor.u32 %v9783_v33, %v8247_v35  ;;  %v9751_v33 = vld [vmem:[#allocation4 + $0xe2c] sm:$0xf]  ;;  %v8119_v35 = vld [vmem:[#allocation4 + $0xe4c] sm:$0xf0] }
 0x2a5   :  { %4193 = vmatpush.bf16.msra.mxu1 %v6778_v45  ;;  %4204 = vmatpush.bf16.msrb.mxu2 %v7098_v46  ;;  %v10376_v17 = vpop.f32.mrf.mxu1  ;;  %v8474_v45 = vor.u32 %v9839_v27, %v8471_v37  ;;  %v9695_v46 = vld [vmem:[#allocation4 + $0xc34] sm:$0xf]  ;;  %v8569_v27 = vld [vmem:[#allocation4 + $0x218] sm:$0xf]  ;;  %v9867_v37 = vld [vmem:[#allocation4 + $0x238] sm:$0xf0] }
 0x2a7   :  { %4218 = vmatpush.bf16.msra.mxu3 %v7322_v40  ;;  %4181 = vmatmul.bf16.vlgmr.msrb.gmra.mxu0 %v10253_v50  ;;  %v8282_v50 = vor.u32 %v9791_v18, %v8279_v10  ;;  %v8439_v40 = vld [vmem:[#allocation4 + $0x111c] sm:$0xf0]  ;;  %v8151_v10 = vld [vmem:[#allocation4 + $0xe94] sm:$0xf0] }
 0x2a8   :  { %4225 = vmatpush.bf16.msra.mxu0 %v7770_v47  ;;  %4194 = vmatmul.bf16.vlgmr.msra.gmra.mxu1 %v10255_v51  ;;  %v9703_v51 = vld [vmem:[#allocation4 + $0xc7c] sm:$0xf]  ;;  %v7895_v47 = vld [vmem:[#allocation4 + $0xc54] sm:$0xf0] }
 0x2a9   :  { %4238 = vmatpush.bf16.msrb.mxu1 %v8026_v49  ;;  %4205 = vmatpush.bf16.msrb.mxu2 %v7066_v60  ;;  %v7930_v41 = vor.u32 %v9703_v51, %v7927_v24  ;;  %v9831_v49 = vld [vmem:[#allocation4 + $0x10fc] sm:$0xf]  ;;  %v7898_v52 = vor.u32 %v9695_v46, %v7895_v47  ;;  %v8378_v51 = vor.u32 %v9815_v19, %v8375_v13  ;;  %v7799_v24 = vld [vmem:[#allocation4 + $0xb7c] sm:$0xf0]  ;;  %v9890_v19 = vld [vmem:[#allocation4 + $0x8b0] sm:$0xf0] }
 0x2aa   :  { %v8442_v56 = vor.u32 %v9831_v49, %v8439_v40  ;;  %v8122_v46 = vor.u32 %v9751_v33, %v8119_v35  ;;  %v8570_v47 = vor.u32 %v9867_v37, %v8569_v27  ;;  %v9882_v35 = vld [vmem:[#allocation4 + $0x670] sm:$0xf0]  ;;  %v8657_v27 = vld [vmem:[#allocation4 + $0x848] sm:$0xf]  ;;  %v9889_v37 = vld [vmem:[#allocation4 + $0x868] sm:$0xf0] }
 0x2ab   :  { %4219 = vmatpush.bf16.msra.mxu3 %v7290_v0  ;;  %v9615_v0 = vld [vmem:[#allocation4 + $0x964] sm:$0xf] }
 0x2ac   :  { %4226 = vmatpush.bf16.msra.mxu0 %v7738_v63  ;;  %v3976_v59 = vpop.f32.mrf.mxu0  ;;  %v8407_v63 = vld [vmem:[#allocation4 + $0x10d4] sm:$0xf0] }
 0x2ad   :  { %4239 = vmatpush.bf16.msrb.mxu1 %v7994_v2  ;;  %4206 = vmatpush.bf16.msrb.mxu2 %v7034_v25  ;;  %v3989_v60 = vpop.f32.mrf.mxu1  ;;  %v7866_v2 = vor.u32 %v9687_v57, %v7863_v55  ;;  %v7578_v25 = vor.u32 %v9615_v0, %v7575_v3  ;;  %v8311_v57 = vld [vmem:[#allocation4 + $0xffc] sm:$0xf0]  ;;  %v8665_v55 = vld [vmem:[#allocation4 + $0x8d8] sm:$0xf]  ;;  %v8090_v59 = vor.u32 %v9743_v38, %v8087_v48  ;;  %v8561_v0 = vld [vmem:[#allocation4 + $0x188] sm:$0xf] }
 0x2ae   :  { %4220 = vmatmul.bf16.vlgmr.msra.gmra.mxu3 %v10269_v23  ;;  %v7642_v23 = vor.u32 %v9631_v42, %v7639_v43  ;;  %v9807_v42 = vld [vmem:[#allocation4 + $0x1024] sm:$0xf]  ;;  %v8343_v43 = vld [vmem:[#allocation4 + $0x1044] sm:$0xf0]  ;;  %v9865_v3 = vld [vmem:[#allocation4 + $0x1a8] sm:$0xf0] }
 0x2af   :  { %4264 = vmatpush.bf16.msrb.mxu3 %v8538_v12  ;;  %v9679_v12 = vld [vmem:[#allocation4 + $0xba4] sm:$0xf]  ;;  %v8346_v40 = vor.u32 %v9807_v42, %v8343_v43  ;;  %v8553_v42 = vld [vmem:[#allocation4 + $0xf8] sm:$0xf]  ;;  %v9863_v43 = vld [vmem:[#allocation4 + $0x118] sm:$0xf0] }
 0x2b0   :  { %4227 = vmatpush.bf16.msra.mxu0 %v7706_v26  ;;  %4207 = vmatmul.bf16.vlgmr.msrb.gmra.mxu2 %v10271_v31  ;;  %v9823_v31 = vld [vmem:[#allocation4 + $0x10b4] sm:$0xf]  ;;  %v7834_v26 = vor.u32 %v9679_v12, %v7831_v15  ;;  %v9873_v12 = vld [vmem:[#allocation4 + $0x3e8] sm:$0xf0]  ;;  %v8633_v15 = vld [vmem:[#allocation4 + $0x698] sm:$0xf] }
 0x2b1   :  { %4240 = vmatpush.bf16.msrb.mxu1 %v7962_v4  ;;  %4251 = vmatpush.bf16.msra.mxu2 %v8282_v50  ;;  %v8410_v7 = vor.u32 %v9823_v31, %v8407_v63  ;;  %v10380_v18 = vpop.f32.mrf.mxu3  ;;  %v9607_v4 = vld [vmem:[#allocation4 + $0x91c] sm:$0xf]  ;;  %v8154_v50 = vor.u32 %v9759_v16, %v8151_v10  ;;  %v8661_v10 = vld [vmem:[#allocation4 + $0x890] sm:$0xf]  ;;  %v8625_v38 = vld [vmem:[#allocation4 + $0x608] sm:$0xf] }
 0x2b2   :  { %v9735_v31 = vld [vmem:[#allocation4 + $0xd9c] sm:$0xf]  ;;  %v9881_v48 = vld [vmem:[#allocation4 + $0x628] sm:$0xf0] }
 0x2b3   :  { %4265 = vmatpush.bf16.msrb.mxu3 %v8506_v20  ;;  %v10382_v20 = vpop.f32.mrf.mxu2  ;;  %v9883_v16 = vld [vmem:[#allocation4 + $0x6b8] sm:$0xf0] }
 0x2b4   :  { %4228 = vmatpush.bf16.msra.mxu0 %v7674_v39  ;;  %v8601_v39 = vld [vmem:[#allocation4 + $0x458] sm:$0xf] }
 0x2b5   :  { %4241 = vmatpush.bf16.msrb.mxu1 %v7930_v41  ;;  %4252 = vmatpush.bf16.msra.mxu2 %v8250_v44  ;;  %v9875_v41 = vld [vmem:[#allocation4 + $0x478] sm:$0xf0]  ;;  %v7546_v44 = vor.u32 %v9607_v4, %v7543_v29  ;;  %v8557_v4 = vld [vmem:[#allocation4 + $0x140] sm:$0xf]  ;;  %v9864_v29 = vld [vmem:[#allocation4 + $0x160] sm:$0xf0] }
 0x2b6   :  { %v8602_v49 = vor.u32 %v9875_v41, %v8601_v39  ;;  %v8558_v39 = vor.u32 %v9864_v29, %v8557_v4 }
 0x2b7   :  { %4266 = vmatpush.bf16.msrb.mxu3 %v8474_v45  ;;  %v7802_v45 = vor.u32 %v9671_v30, %v7799_v24  ;;  %v8662_v30 = vor.u32 %v9890_v19, %v8661_v10  ;;  %v8645_v10 = vld [vmem:[#allocation4 + $0x770] sm:$0xf]  ;;  %v9886_v19 = vld [vmem:[#allocation4 + $0x790] sm:$0xf0] }
 0x2b8   :  { %4229 = vmatpush.bf16.msra.mxu0 %v7642_v23 }
 0x2b9   :  { %4242 = vmatpush.bf16.msrb.mxu1 %v7898_v52  ;;  %4253 = vmatpush.bf16.msra.mxu2 %v8218_v22  ;;  %v4015_v23 = vpop.f32.mrf.mxu3  ;;  %v8565_v52 = vld [vmem:[#allocation4 + $0x1d0] sm:$0xf]  ;;  %v9874_v22 = vld [vmem:[#allocation4 + $0x430] sm:$0xf0] }
 0x2ba   :  { %v8566_v62 = vor.u32 %v9866_v53, %v8565_v52  ;;  %v8598_v63 = vor.u32 %v9874_v22, %v8597_v54  ;;  %v8549_v52 = vld [vmem:[#allocation4 + $0xb0] sm:$0xf]  ;;  %v9862_v53 = vld [vmem:[#allocation4 + $0xd0] sm:$0xf0]  ;;  %v8626_v54 = vor.u32 %v9881_v48, %v8625_v38 }
 0x2bb   :  { %4267 = vmatpush.bf16.msrb.mxu3 %v8442_v56  ;;  %v9799_v56 = vld [vmem:[#allocation4 + $0xfdc] sm:$0xf]  ;;  %v4002_v60 = vpop.f32.mrf.mxu2 }
 0x2bc   :  { %4230 = vmatpush.bf16.msra.mxu0 %v7610_v1  ;;  %v8314_v1 = vor.u32 %v9799_v56, %v8311_v57  ;;  %v8581_v56 = vld [vmem:[#allocation4 + $0x2f0] sm:$0xf]  ;;  %v9870_v57 = vld [vmem:[#allocation4 + $0x310] sm:$0xf0]  ;;  %v9880_v60 = vld [vmem:[#allocation4 + $0x5e0] sm:$0xf0] }
 0x2bd   :  { %4243 = vmatpush.bf16.msrb.mxu1 %v7866_v2  ;;  %4254 = vmatpush.bf16.msra.mxu2 %v8186_v6  ;;  %v8055_v2 = vld [vmem:[#allocation4 + $0xdbc] sm:$0xf0]  ;;  %v8666_v6 = vor.u32 %v9891_v58, %v8665_v55 }
 0x2be   :  { %v8058_v13 = vor.u32 %v9735_v31, %v8055_v2  ;;  %v8621_v55 = vld [vmem:[#allocation4 + $0x5c0] sm:$0xf]  ;;  %v8550_v31 = vor.u32 %v9862_v53, %v8549_v52  ;;  %v9861_v2 = vld [vmem:[#allocation4 + $0x88] sm:$0xf0] }
 0x2bf   :  { %4268 = vmatpush.bf16.msrb.mxu3 %v8410_v7  ;;  %v8593_v7 = vld [vmem:[#allocation4 + $0x3c8] sm:$0xf]  ;;  %v9877_v52 = vld [vmem:[#allocation4 + $0x508] sm:$0xf0] }
 0x2c0   :  { %4231 = vmatpush.bf16.msra.mxu0 %v7578_v25  ;;  %v8562_v25 = vor.u32 %v9865_v3, %v8561_v0  ;;  %v8622_v0 = vor.u32 %v9880_v60, %v8621_v55  ;;  %v8725_v55 = vld [vmem:[#allocation4 + $0xd10] sm:$0xf]  ;;  %v9884_v60 = vld [vmem:[#allocation4 + $0x700] sm:$0xf0] }
 0x2c1   :  { %4244 = vmatpush.bf16.msrb.mxu1 %v7834_v26  ;;  %4255 = vmatpush.bf16.msra.mxu2 %v8154_v50  ;;  %v8594_v26 = vor.u32 %v9873_v12, %v8593_v7  ;;  %v9872_v50 = vld [vmem:[#allocation4 + $0x3a0] sm:$0xf0]  ;;  %v9869_v7 = vld [vmem:[#allocation4 + $0x2c8] sm:$0xf0]  ;;  %v8617_v12 = vld [vmem:[#allocation4 + $0x578] sm:$0xf] }
 0x2c3   :  { %4269 = vmatpush.bf16.msrb.mxu3 %v8378_v51  ;;  %v8629_v51 = vld [vmem:[#allocation4 + $0x650] sm:$0xf] }
 0x2c4   :  { %4232 = vmatpush.bf16.msra.mxu0 %v7546_v44  ;;  %v10386_v24 = vpop.f32.mrf.mxu0  ;;  %v8630_v44 = vor.u32 %v9882_v35, %v8629_v51  ;;  %v8646_v35 = vor.u32 %v9886_v19, %v8645_v10  ;;  %v8721_v10 = vld [vmem:[#allocation4 + $0xcc8] sm:$0xf]  ;;  %v9905_v19 = vld [vmem:[#allocation4 + $0xce8] sm:$0xf0] }
 0x2c5   :  { %4245 = vmatpush.bf16.msrb.mxu1 %v7802_v45  ;;  %4256 = vmatpush.bf16.msra.mxu2 %v8122_v46  ;;  %v10388_v33 = vpop.f32.mrf.mxu1  ;;  %v8658_v45 = vor.u32 %v9889_v37, %v8657_v27  ;;  %v8585_v46 = vld [vmem:[#allocation4 + $0x338] sm:$0xf]  ;;  %v9868_v27 = vld [vmem:[#allocation4 + $0x280] sm:$0xf0]  ;;  %v8613_v37 = vld [vmem:[#allocation4 + $0x530] sm:$0xf] }
 0x2c7   :  { %4270 = vmatpush.bf16.msrb.mxu3 %v8346_v40  ;;  %4233 = vmatmul.bf16.vlgmr.msra.gmra.mxu0 %v10282_v5  ;;  %v8634_v5 = vor.u32 %v9883_v16, %v8633_v15  ;;  %v9888_v40 = vld [vmem:[#allocation4 + $0x820] sm:$0xf0]  ;;  %v9879_v16 = vld [vmem:[#allocation4 + $0x598] sm:$0xf0] }
 0x2c8   :  { %4822 = vmatpush.bf16.msrb.mxu0 %v8570_v47  ;;  %4246 = vmatmul.bf16.vlgmr.msrb.gmra.mxu1 %v10284_v11  ;;  %v8589_v11 = vld [vmem:[#allocation4 + $0x380] sm:$0xf]  ;;  %v9871_v47 = vld [vmem:[#allocation4 + $0x358] sm:$0xf0] }
 0x2c9   :  { %4835 = vmatpush.bf16.msra.mxu1 %v8602_v49  ;;  %4257 = vmatpush.bf16.msra.mxu2 %v8090_v59  ;;  %v8590_v41 = vor.u32 %v9872_v50, %v8589_v11  ;;  %v8653_v49 = vld [vmem:[#allocation4 + $0x800] sm:$0xf]  ;;  %v8586_v23 = vor.u32 %v9871_v47, %v8585_v46  ;;  %v8618_v50 = vor.u32 %v9879_v16, %v8617_v12  ;;  %v9885_v46 = vld [vmem:[#allocation4 + $0x748] sm:$0xf0]  ;;  %v8689_v12 = vld [vmem:[#allocation4 + $0xa88] sm:$0xf] }
 0x2ca   :  { %v8654_v22 = vor.u32 %v9888_v40, %v8653_v49  ;;  %v8573_v11 = vld [vmem:[#allocation4 + $0x260] sm:$0xf]  ;;  %v9897_v16 = vld [vmem:[#allocation4 + $0xaa8] sm:$0xf0] }
 0x2cb   :  { %4271 = vmatpush.bf16.msrb.mxu3 %v8314_v1  ;;  %v8545_v1 = vld [vmem:[#allocation4 + $0x68] sm:$0xf]  ;;  %v8574_v48 = vor.u32 %v9868_v27, %v8573_v11  ;;  %v8685_v11 = vld [vmem:[#allocation4 + $0xa40] sm:$0xf] }
 0x2cc   :  { %4823 = vmatpush.bf16.msrb.mxu0 %v8566_v62  ;;  %v4028_v58 = vpop.f32.mrf.mxu0  ;;  %v9887_v62 = vld [vmem:[#allocation4 + $0x7d8] sm:$0xf0]  ;;  %v8546_v4 = vor.u32 %v9861_v2, %v8545_v1  ;;  %v8717_v27 = vld [vmem:[#allocation4 + $0xc80] sm:$0xf] }
 0x2cd   :  { %4836 = vmatpush.bf16.msra.mxu1 %v8598_v63  ;;  %4258 = vmatpush.bf16.msra.mxu2 %v8058_v13  ;;  %v4041_v59 = vpop.f32.mrf.mxu1  ;;  %v8582_v63 = vor.u32 %v9870_v57, %v8581_v56  ;;  %v4285_v13 = vmul.f32 0.01, %v10318_v61  ;;  %v9898_v57 = vld [vmem:[#allocation4 + $0xaf0] sm:$0xf0] }
 0x2ce   :  { %4272 = vmatmul.bf16.vlgmr.msrb.gmra.mxu3 %v10289_v28  ;;  %v8554_v28 = vor.u32 %v9863_v43, %v8553_v42  ;;  %v9899_v42 = vld [vmem:[#allocation4 + $0xb38] sm:$0xf0]  ;;  %v8729_v43 = vld [vmem:[#allocation4 + $0xd58] sm:$0xf]  ;;  %v9906_v58 = vld [vmem:[#allocation4 + $0xd30] sm:$0xf0] }
 0x2cf   :  { %4861 = vmatpush.bf16.msra.mxu3 %v8666_v6  ;;  %v8577_v6 = vld [vmem:[#allocation4 + $0x2a8] sm:$0xf]  ;;  %v4293_v47 = vsel %vm4277_vm13, %v10318_v61, %v4285_v13  ;;  %v8693_v61 = vld [vmem:[#allocation4 + $0xad0] sm:$0xf]  ;;  %v8637_v59 = vld [vmem:[#allocation4 + $0x6e0] sm:$0xf] }
 0x2d0   :  { %4824 = vmatpush.bf16.msrb.mxu0 %v8562_v25  ;;  %4259 = vmatmul.bf16.vlgmr.msra.gmra.mxu2 %v10291_v36  ;;  %v8649_v36 = vld [vmem:[#allocation4 + $0x7b8] sm:$0xf]  ;;  %v4286_v25 = vmul.f32 0.01, %v10328_v9  ;;  %v8578_v29 = vor.u32 %v9869_v7, %v8577_v6  ;;  %v8694_v1 = vor.u32 %v9898_v57, %v8693_v61  ;;  %v8605_v6 = vld [vmem:[#allocation4 + $0x4a0] sm:$0xf] }
 0x2d1   :  { %4837 = vmatpush.bf16.msra.mxu1 %v8594_v26  ;;  %4848 = vmatpush.bf16.msrb.mxu2 %v8634_v5  ;;  %v8650_v3 = vor.u32 %v9887_v62, %v8649_v36  ;;  %v10393_v15 = vpop.f32.mrf.mxu3  ;;  %v874_v26 = vperm.slane %v10307_v14, 5  ;;  %v8541_v5 = vld [vmem:[#allocation4 + $0x20] sm:$0xf]  ;;  %v4301_v36 = vpack.c.bf16 %v4293_v47, %v4293_v47  ;;  %v9876_v7 = vld [vmem:[#allocation4 + $0x4c0] sm:$0xf0] }
 0x2d2   :  { %v4294_v49 = vsel %vm4278_vm14, %v10328_v9, %v4286_v25  ;;  %v4288_v9 = vmul.f32 0.01, %v10356_v32  ;;  %v8681_v47 = vld [vmem:[#allocation4 + $0x9f8] sm:$0xf] }
 0x2d3   :  { %4862 = vmatpush.bf16.msra.mxu3 %v8662_v30  ;;  %v9860_v30 = vld [vmem:[#allocation4 + $0x40] sm:$0xf0]  ;;  %v10399_v51 = vpop.f32.mrf.mxu2  ;;  %v3975_v53 = vadd.f32 %v10374_v21, %v874_v26  ;;  %v4302_v62 = vpack.c.bf16 %v4294_v49, %v4294_v49  ;;  %v8761_v26 = vld [vmem:[#allocation4 + $0xf98] sm:$0xf]  ;;  %v9903_v49 = vld [vmem:[#allocation4 + $0xc58] sm:$0xf0] }
 0x2d4   :  { %4825 = vmatpush.bf16.msrb.mxu0 %v8558_v39  ;;  %v9878_v39 = vld [vmem:[#allocation4 + $0x550] sm:$0xf0]  ;;  %v8542_v38 = vor.u32 %v9860_v30, %v8541_v5  ;;  %v4296_v13 = vsel %vm4280_vm1, %v10356_v32, %v4288_v9  ;;  %v8690_v5 = vor.u32 %v9897_v16, %v8689_v12  ;;  %v8722_v30 = vor.u32 %v9905_v19, %v8721_v10  ;;  %v9904_v32 = vld [vmem:[#allocation4 + $0xca0] sm:$0xf0]  ;;  %v9893_v9 = vld [vmem:[#allocation4 + $0x988] sm:$0xf0] }
 0x2d5   :  { %4838 = vmatpush.bf16.msra.mxu1 %v8590_v41  ;;  %4849 = vmatpush.bf16.msrb.mxu2 %v8630_v44  ;;  %v8697_v41 = vld [vmem:[#allocation4 + $0xb18] sm:$0xf]  ;;  %v9907_v44 = vld [vmem:[#allocation4 + $0xd78] sm:$0xf0]  ;;  %v8614_v40 = vor.u32 %v9878_v39, %v8613_v37  ;;  %v3988_v2 = vadd.f32 %v10376_v17, %v3975_v53  ;;  %v8669_v12 = vld [vmem:[#allocation4 + $0x920] sm:$0xf] }
 0x2d6   :  { %v9915_v17 = vld [vmem:[#allocation4 + $0xfb8] sm:$0xf0]  ;;  %v9892_v10 = vld [vmem:[#allocation4 + $0x940] sm:$0xf0]  ;;  %v8701_v19 = vld [vmem:[#allocation4 + $0xb60] sm:$0xf] }
 0x2d7   :  { %4863 = vmatpush.bf16.msra.mxu3 %v8658_v45  ;;  %v8641_v45 = vld [vmem:[#allocation4 + $0x728] sm:$0xf]  ;;  %v4001_v25 = vadd.f32 %v10382_v20, %v3988_v2  ;;  %v8762_v37 = vor.u32 %v9915_v17, %v8761_v26  ;;  %v8741_v17 = vld [vmem:[#allocation4 + $0xe30] sm:$0xf] }
 0x2d8   :  { %4826 = vmatpush.bf16.msrb.mxu0 %v8554_v28  ;;  %v8698_v28 = vor.u32 %v9899_v42, %v8697_v41  ;;  %v8757_v42 = vld [vmem:[#allocation4 + $0xf50] sm:$0xf] }
 0x2d9   :  { %4839 = vmatpush.bf16.msra.mxu1 %v8586_v23  ;;  %4850 = vmatpush.bf16.msrb.mxu2 %v8626_v54  ;;  %v8609_v23 = vld [vmem:[#allocation4 + $0x4e8] sm:$0xf]  ;;  %v8730_v54 = vor.u32 %v9907_v44, %v8729_v43  ;;  %v4067_v56 = vpop.f32.mrf.mxu3  ;;  %v4014_v20 = vadd.f32 %v10380_v18, %v4001_v25  ;;  %v9914_v43 = vld [vmem:[#allocation4 + $0xf70] sm:$0xf0] }
 0x2da   :  { %v8610_v21 = vor.u32 %v9877_v52, %v8609_v23  ;;  %v8758_v18 = vor.u32 %v9914_v43, %v8757_v42  ;;  %v9902_v56 = vld [vmem:[#allocation4 + $0xc10] sm:$0xf0]  ;;  %v875_v43 = vperm.slane %v10307_v14, 6 }
 0x2db   :  { %4864 = vmatpush.bf16.msra.mxu3 %v8654_v22  ;;  %v8642_v22 = vor.u32 %v9885_v46, %v8641_v45  ;;  %v8718_v46 = vor.u32 %v9904_v32, %v8717_v27  ;;  %v9909_v27 = vld [vmem:[#allocation4 + $0xe08] sm:$0xf0] }
 0x2dc   :  { %4827 = vmatpush.bf16.msrb.mxu0 %v8550_v31  ;;  %v4287_v31 = vmul.f32 0.01, %v10342_v8 }
 0x2dd   :  { %4840 = vmatpush.bf16.msra.mxu1 %v8582_v63  ;;  %4851 = vmatpush.bf16.msrb.mxu2 %v8622_v0  ;;  %v4054_v63 = vpop.f32.mrf.mxu2  ;;  %v8726_v0 = vor.u32 %v9906_v58, %v8725_v55 }
 0x2df   :  { %4865 = vmatpush.bf16.msra.mxu3 %v8650_v3  ;;  %v8638_v3 = vor.u32 %v9884_v60, %v8637_v59  ;;  %v8749_v59 = vld [vmem:[#allocation4 + $0xec0] sm:$0xf]  ;;  %v9912_v60 = vld [vmem:[#allocation4 + $0xee0] sm:$0xf0] }
 0x2e0   :  { %4828 = vmatpush.bf16.msrb.mxu0 %v8546_v4  ;;  %v8606_v4 = vor.u32 %v9876_v7, %v8605_v6  ;;  %v8750_v63 = vor.u32 %v9912_v60, %v8749_v59 }
 0x2e1   :  { %4841 = vmatpush.bf16.msra.mxu1 %v8578_v29  ;;  %4852 = vmatpush.bf16.msrb.mxu2 %v8618_v50  ;;  %v4295_v29 = vsel %vm4279_vm15, %v10342_v8, %v4287_v31  ;;  %v4304_v50 = vpack.c.bf16 %v4296_v13, %v4296_v13  ;;  %v4027_v8 = vadd.f32 %v10386_v24, %v4014_v20  ;;  %v8677_v24 = vld [vmem:[#allocation4 + $0x9b0] sm:$0xf]  ;;  %v8705_v31 = vld [vmem:[#allocation4 + $0xba8] sm:$0xf]  ;;  %v9900_v13 = vld [vmem:[#allocation4 + $0xb80] sm:$0xf0] }
 0x2e2   :  { %v4303_v44 = vpack.c.bf16 %v4295_v29, %v4295_v29  ;;  %v8702_v29 = vor.u32 %v9900_v13, %v8701_v19  ;;  %v8769_v13 = vld [vmem:[#allocation4 + $0x1028] sm:$0xf]  ;;  %vm6197_vm15 = vcmask 48128  }
 0x2e3   :  { %4866 = vmatpush.bf16.msra.mxu3 %v8646_v35  ;;  %v9896_v35 = vld [vmem:[#allocation4 + $0xa60] sm:$0xf0]  ;;  %v4040_v23 = vadd.f32 %v10388_v33, %v4027_v8 }
 0x2e4   :  { %4829 = vmatpush.bf16.msrb.mxu0 %v8542_v38  ;;  %v10421_v39 = vpop.f32.mrf.mxu0  ;;  %v8686_v45 = vor.u32 %v9896_v35, %v8685_v11  ;;  %v9895_v38 = vld [vmem:[#allocation4 + $0xa18] sm:$0xf0]  ;;  %v8737_v35 = vld [vmem:[#allocation4 + $0xde8] sm:$0xf]  ;;  %v9908_v8 = vld [vmem:[#allocation4 + $0xdc0] sm:$0xf0] }
 0x2e5   :  { %4842 = vmatpush.bf16.msra.mxu1 %v8574_v48  ;;  %4853 = vmatpush.bf16.msrb.mxu2 %v8614_v40  ;;  %v10423_v41 = vpop.f32.mrf.mxu1  ;;  %v8713_v48 = vld [vmem:[#allocation4 + $0xc38] sm:$0xf]  ;;  %v8753_v40 = vld [vmem:[#allocation4 + $0xf08] sm:$0xf]  ;;  %v8682_v52 = vor.u32 %v9895_v38, %v8681_v47  ;;  %v4053_v57 = vadd.f32 %v10399_v51, %v4040_v23  ;;  %v4289_v51 = vmul.f32 0.01, %v10370_v34  ;;  %v8738_v42 = vor.u32 %v9909_v27, %v8737_v35 }
 0x2e6   :  { %v8714_v53 = vor.u32 %v9903_v49, %v8713_v48 }
 0x2e7   :  { %4867 = vmatpush.bf16.msra.mxu3 %v8642_v22  ;;  %4830 = vmatmul.bf16.vlgmr.msrb.gmra.mxu0 %v4301_v36  ;;  %v8709_v22 = vld [vmem:[#allocation4 + $0xbf0] sm:$0xf] }
 0x2e8   :  { %4874 = vmatpush.bf16.msra.mxu0 %v8698_v28  ;;  %4843 = vmatmul.bf16.vlgmr.msra.gmra.mxu1 %v4302_v62  ;;  %v9913_v28 = vld [vmem:[#allocation4 + $0xf28] sm:$0xf0]  ;;  %v8710_v33 = vor.u32 %v9902_v56, %v8709_v22  ;;  %v8673_v62 = vld [vmem:[#allocation4 + $0x968] sm:$0xf] }
 0x2e9   :  { %4887 = vmatpush.bf16.msrb.mxu1 %v8730_v54  ;;  %4854 = vmatpush.bf16.msrb.mxu2 %v8610_v21  ;;  %v9894_v54 = vld [vmem:[#allocation4 + $0x9d0] sm:$0xf0]  ;;  %v8754_v61 = vor.u32 %v9913_v28, %v8753_v40  ;;  %v9901_v21 = vld [vmem:[#allocation4 + $0xbc8] sm:$0xf0]  ;;  %v8674_v6 = vor.u32 %v9893_v9, %v8673_v62 }
 0x2ea   :  { %v8678_v36 = vor.u32 %v9894_v54, %v8677_v24  ;;  %v8706_v7 = vor.u32 %v9901_v21, %v8705_v31  ;;  %v9921_v62 = vld [vmem:[#allocation4 + $0x1168] sm:$0xf0] }
 0x2eb   :  { %4868 = vmatpush.bf16.msra.mxu3 %v8638_v3  ;;  %v9911_v3 = vld [vmem:[#allocation4 + $0xe98] sm:$0xf0] }
 0x2ec   :  { %4875 = vmatpush.bf16.msra.mxu0 %v8694_v1  ;;  %v4080_v55 = vpop.f32.mrf.mxu0  ;;  %v4066_v1 = vadd.f32 %v10393_v15, %v4053_v57  ;;  %v8670_v15 = vor.u32 %v9892_v10, %v8669_v12  ;;  %v8789_v57 = vld [vmem:[#allocation4 + $0x1190] sm:$0xf] }
 0x2ed   :  { %4888 = vmatpush.bf16.msrb.mxu1 %v8726_v0  ;;  %4855 = vmatpush.bf16.msrb.mxu2 %v8606_v4  ;;  %v4093_v58 = vpop.f32.mrf.mxu1  ;;  %v8745_v0 = vld [vmem:[#allocation4 + $0xe78] sm:$0xf]  ;;  %v9910_v4 = vld [vmem:[#allocation4 + $0xe50] sm:$0xf0]  ;;  %v8773_v12 = vld [vmem:[#allocation4 + $0x1070] sm:$0xf] }
 0x2ee   :  { %4869 = vmatmul.bf16.vlgmr.msra.gmra.mxu3 %v4304_v50  ;;  %v8746_v25 = vor.u32 %v9911_v3, %v8745_v0  ;;  %v4290_v26 = vmul.f32 0.01, %v4066_v1  ;;  %vm4282_vm3 = vcmp.gt.f32.partialorder %v4066_v1, 0.0  ;;  %v9922_v55 = vld [vmem:[#allocation4 + $0x11b0] sm:$0xf0] }
 0x2ef   :  { %v8777_v0 = vld [vmem:[#allocation4 + $0x10b8] sm:$0xf]  ;;  %v9919_v3 = vld [vmem:[#allocation4 + $0x10d8] sm:$0xf0] }
 0x2f0   :  { %4876 = vmatpush.bf16.msra.mxu0 %v8690_v5  ;;  %4856 = vmatmul.bf16.vlgmr.msrb.gmra.mxu2 %v4303_v44  ;;  %v8742_v5 = vor.u32 %v9910_v4, %v8741_v17  ;;  %v4298_v11 = vsel %vm4282_vm3, %v4066_v1, %v4290_v26  ;;  %v8733_v44 = vld [vmem:[#allocation4 + $0xda0] sm:$0xf]  ;;  %v9920_v1 = vld [vmem:[#allocation4 + $0x1120] sm:$0xf0]  ;;  %vm6459_vm3 = vcmask 343040  }
 0x2f1   :  { %4889 = vmatpush.bf16.msrb.mxu1 %v8722_v30  ;;  %4900 = vmatpush.bf16.msra.mxu2 %v8762_v37  ;;  %v4117_v2 = vpop.f32.mrf.mxu3  ;;  %v4297_v30 = vsel %vm4281_vm2, %v10370_v34, %v4289_v51  ;;  %v4306_v37 = vpack.c.bf16 %v4298_v11, %v4298_v11  ;;  %v4079_v34 = vadd.f32 %v10421_v39, %v875_v43  ;;  %v9923_v39 = vld [vmem:[#allocation4 + $0x11f8] sm:$0xf0]  ;;  %v8765_v4 = vld [vmem:[#allocation4 + $0xfe0] sm:$0xf]  ;;  %v876_v11 = vperm.slane %v10307_v14, 7 }
 0x2f2   :  { %v4305_v32 = vpack.c.bf16 %v4297_v30, %v4297_v30  ;;  %v8778_v51 = vor.u32 %v9919_v3, %v8777_v0  ;;  %v8893_v0 = vld [vmem:[#allocation6 + $0x180] sm:$0xf]  ;;  %v9975_v3 = vld [vmem:[#allocation6 + $0x194] sm:$0xf0]  ;;  %vm6457_vm2 = vcmask 293888  }
 0x2f3   :  { %v4104_v16 = vpop.f32.mrf.mxu2  ;;  %v4092_v38 = vadd.f32 %v10423_v41, %v4079_v34 }
 0x2f4   :  { %4877 = vmatpush.bf16.msra.mxu0 %v8686_v45  ;;  %v8734_v45 = vor.u32 %v9908_v8, %v8733_v44 }
 0x2f5   :  { %4890 = vmatpush.bf16.msrb.mxu1 %v8718_v46  ;;  %4901 = vmatpush.bf16.msra.mxu2 %v8758_v18  ;;  %v4105_v48 = vadd.f32 %v4104_v16, %v4092_v38  ;;  %v9918_v16 = vld [vmem:[#allocation4 + $0x1090] sm:$0xf0] }
 0x2f6   :  { %v8774_v10 = vor.u32 %v9918_v16, %v8773_v12  ;;  %v8894_v16 = vor.u32 %v9975_v3, %v8893_v0  ;;  %v8951_v0 = vld [vmem:[#allocation6 + $0x200] sm:$0xf0] }
 0x2f7   :  { %v4118_v49 = vadd.f32 %v4117_v2, %v4105_v48 }
 0x2f8   :  { %4878 = vmatpush.bf16.msra.mxu0 %v8682_v52 }
 0x2f9   :  { %4891 = vmatpush.bf16.msrb.mxu1 %v8714_v53  ;;  %4902 = vmatpush.bf16.msra.mxu2 %v8754_v61  ;;  %v4119_v50 = vpop.f32.mrf.mxu3  ;;  %v8793_v61 = vld [vmem:[#allocation4 + $0x11d8] sm:$0xf] }
 0x2fa   :  { %v8794_v59 = vor.u32 %v9923_v39, %v8793_v61  ;;  %v8967_v61 = vld [vmem:[#allocation6 + $0x228] sm:$0xf0]  ;;  %v8941_v39 = vld [vmem:[#allocation6 + $0x1e0] sm:$0xf] }
 0x2fb   :  { %v4106_v20 = vpop.f32.mrf.mxu2 }
 0x2fc   :  { %4879 = vmatpush.bf16.msra.mxu0 %v8678_v36  ;;  %4913 = vmatpush.bf16.msrb.mxu3 %v8794_v59  ;;  %v8790_v36 = vor.u32 %v9922_v55, %v8789_v57  ;;  %v9987_v57 = vld [vmem:[#allocation6 + $0x1f4] sm:$0xf0] }
 0x2fd   :  { %4892 = vmatpush.bf16.msrb.mxu1 %v8710_v33  ;;  %4903 = vmatpush.bf16.msra.mxu2 %v8750_v63  ;;  %v8785_v33 = vld [vmem:[#allocation4 + $0x1148] sm:$0xf]  ;;  %v8781_v63 = vld [vmem:[#allocation4 + $0x1100] sm:$0xf] }
 0x2fe   :  { %v8786_v9 = vor.u32 %v9921_v62, %v8785_v33  ;;  %v8782_v2 = vor.u32 %v9920_v1, %v8781_v63  ;;  %v8917_v62 = vld [vmem:[#allocation6 + $0x1b0] sm:$0xf] }
 0x300   :  { %4880 = vmatpush.bf16.msra.mxu0 %v8674_v6  ;;  %4914 = vmatpush.bf16.msrb.mxu3 %v8790_v36  ;;  %v8942_v36 = vor.u32 %v9987_v57, %v8941_v39  ;;  %v9991_v39 = vld [vmem:[#allocation6 + $0x21c] sm:$0xf] }
 0x301   :  { %4893 = vmatpush.bf16.msrb.mxu1 %v8706_v7  ;;  %4904 = vmatpush.bf16.msra.mxu2 %v8746_v25  ;;  %v9917_v25 = vld [vmem:[#allocation4 + $0x1048] sm:$0xf0] }
 0x302   :  { %v8770_v17 = vor.u32 %v9917_v25, %v8769_v13 }
 0x304   :  { %4881 = vmatpush.bf16.msra.mxu0 %v8670_v15  ;;  %v4130_v46 = vpop.f32.mrf.mxu0  ;;  %4915 = vmatpush.bf16.msrb.mxu3 %v8786_v9  ;;  %v9916_v15 = vld [vmem:[#allocation4 + $0x1000] sm:$0xf0]  ;;  %v9981_v9 = vld [vmem:[#allocation6 + $0x1c4] sm:$0xf0] }
 0x305   :  { %4894 = vmatpush.bf16.msrb.mxu1 %v8702_v29  ;;  %4905 = vmatpush.bf16.msra.mxu2 %v8742_v5  ;;  %v4143_v47 = vpop.f32.mrf.mxu1  ;;  %v4131_v28 = vadd.f32 %v4130_v46, %v4118_v49  ;;  %v8766_v29 = vor.u32 %v9916_v15, %v8765_v4  ;;  %v8918_v1 = vor.u32 %v9981_v9, %v8917_v62  ;;  %v8901_v62 = vld [vmem:[#allocation6 + $0x188] sm:$0xf]  ;;  %v10076_v9 = vld [vmem:[%s10547_s0] sm:$0x3] }
 0x307   :  { %4882 = vmatmul.bf16.vlgmr.msra.gmra.mxu0 %v4305_v32  ;;  %v4144_v52 = vadd.f32 %v4143_v47, %v4131_v28 }
 0x308   :  { %4895 = vmatmul.bf16.vlgmr.msrb.gmra.mxu1 %v4306_v37  ;;  %4916 = vmatpush.bf16.msrb.mxu3 %v8782_v2 }
 0x309   :  { %4906 = vmatpush.bf16.msra.mxu2 %v8738_v42 }
 0x30c   :  { %v4132_v18 = vpop.f32.mrf.mxu0  ;;  %4917 = vmatpush.bf16.msrb.mxu3 %v8778_v51 }
 0x30d   :  { %4907 = vmatpush.bf16.msra.mxu2 %v8734_v45  ;;  %v4145_v40 = vpop.f32.mrf.mxu1 }
 0x30e   :  { %v4437_v40 = vld [vmem:[#allocation2 + $0x6] ss:$0 sm:$0xff] }
 0x310   :  { %4918 = vmatpush.bf16.msrb.mxu3 %v8774_v10 }
 0x311   :  { %v4169_v23 = vpop.f32.mrf.mxu3 }
 0x313   :  { %v4156_v53 = vpop.f32.mrf.mxu2 }
 0x314   :  { %v4157_v24 = vadd.f32 %v4156_v53, %v4144_v52  ;;  %4919 = vmatpush.bf16.msrb.mxu3 %v8770_v17 }
 0x316   :  { %v4170_v54 = vadd.f32 %v4169_v23, %v4157_v24  ;;  %v8965_v24 = vld [vmem:[#allocation6 + $0x210] sm:$0xf] }
 0x318   :  { %vm4283_vm4 = vcmp.gt.f32.partialorder %v4170_v54, 0.0  ;;  %v4291_v22 = vmul.f32 0.01, %v4170_v54  ;;  %4920 = vmatpush.bf16.msrb.mxu3 %v8766_v29  ;;  %v8869_v29 = vld [vmem:[#allocation6 + $0x150] sm:$0xf] }
 0x319   :  { %v4171_v56 = vpop.f32.mrf.mxu3 }
 0x31a   :  { %v4299_v58 = vsel %vm4283_vm4, %v4170_v54, %v4291_v22  ;;  %v9993_v54 = vld [vmem:[#allocation6 + $0x224] sm:$0xf0]  ;;  %v9990_v22 = vld [vmem:[#allocation6 + $0x214] sm:$0xf]  ;;  %vm6461_vm4 = vcmask 490496  }
 0x31b   :  { %v4307_v41 = vpack.c.bf16 %v4299_v58, %v4299_v58  ;;  %v4158_v60 = vpop.f32.mrf.mxu2  ;;  %v8966_v56 = vor.u32 %v9993_v54, %v8965_v24  ;;  %v8970_v59 = vor.u32 %v9990_v22, %v8967_v61  ;;  %v9948_v24 = vld [vmem:[#allocation6 + $0xc4] sm:$0xf]  ;;  %v8799_v54 = vld [vmem:[#allocation6 + $0xd8] sm:$0xf0]  ;;  %v9982_v61 = vld [vmem:[#allocation6 + $0x1cc] sm:$0xf0] }
 0x31c   :  { %v8943_v60 = vld [vmem:[#allocation6 + $0x1f8] sm:$0xf0]  ;;  %v8802_v57 = vor.u32 %v9948_v24, %v8799_v54  ;;  %v9961_v54 = vld [vmem:[#allocation6 + $0x12c] sm:$0xf] }
 0x31d   :  { %4908 = vmatmul.bf16.vlgmr.msra.gmra.mxu2 %v4307_v41  ;;  %v9984_v41 = vld [vmem:[#allocation6 + $0x1e4] sm:$0xf]  ;;  %5240 = vmatpush.bf16.msrb.mxu0 %v8966_v56  ;;  %v8925_v56 = vld [vmem:[#allocation6 + $0x1b8] sm:$0xf] }
 0x31e   :  { %5253 = vmatpush.bf16.msra.mxu1 %v8970_v59  ;;  %v8946_v33 = vor.u32 %v9984_v41, %v8943_v60  ;;  %v9995_v59 = vld [vmem:[#allocation6 + $0x234] sm:$0xf0] }
 0x321   :  { %5241 = vmatpush.bf16.msrb.mxu0 %v8942_v36  ;;  %v9992_v36 = vld [vmem:[#allocation6 + $0x224] sm:$0xf] }
 0x322   :  { %5254 = vmatpush.bf16.msra.mxu1 %v8946_v33  ;;  %v8983_v33 = vld [vmem:[#allocation6 + $0x238] sm:$0xf0] }
 0x324   :  { %v4182_v31 = vpop.f32.mrf.mxu0 }
 0x325   :  { %v4195_v21 = vpop.f32.mrf.mxu1  ;;  %v4183_v50 = vadd.f32 %v4182_v31, %v876_v11  ;;  %v9978_v31 = vld [vmem:[#allocation6 + $0x1b4] sm:$0xf]  ;;  %5242 = vmatpush.bf16.msrb.mxu0 %v8918_v1  ;;  %v9976_v1 = vld [vmem:[#allocation6 + $0x19c] sm:$0xf0] }
 0x327   :  { %v4196_v32 = vadd.f32 %v4195_v21, %v4183_v50  ;;  %v8919_v21 = vld [vmem:[#allocation6 + $0x1c8] sm:$0xf0] }
 0x328   :  { %v8922_v2 = vor.u32 %v9978_v31, %v8919_v21  ;;  %v8871_v50 = vld [vmem:[#allocation6 + $0x168] sm:$0xf0]  ;;  %v10441_v31 = vpack.c.bf16 %v10076_v9, %v10076_v9  ;;  %v8926_v21 = vor.u32 %v9982_v61, %v8925_v56  ;;  %v8861_v61 = vld [vmem:[#allocation6 + $0x130] sm:$0xf]  ;;  %v8831_v9 = vld [vmem:[#allocation6 + $0x110] sm:$0xf0] }
 0x329   :  { %5243 = vmatpush.bf16.msrb.mxu0 %v8894_v16  ;;  %v8959_v16 = vld [vmem:[#allocation6 + $0x208] sm:$0xf0] }
 0x32a   :  { %5255 = vmatpush.bf16.msra.mxu1 %v8922_v2  ;;  %v9985_v2 = vld [vmem:[#allocation6 + $0x1ec] sm:$0xf] }
 0x32b   :  { %v8954_v3 = vor.u32 %v9985_v2, %v8951_v0  ;;  %v8837_v2 = vld [vmem:[#allocation6 + $0x100] sm:$0xf]  ;;  %v9959_v0 = vld [vmem:[#allocation6 + $0x114] sm:$0xf0] }
 0x32c   :  { %v4184_v6 = vpop.f32.mrf.mxu0 }
 0x32d   :  { %v4197_v7 = vpop.f32.mrf.mxu1  ;;  %v9972_v6 = vld [vmem:[#allocation6 + $0x184] sm:$0xf] }
 0x32e   :  { %v8895_v7 = vld [vmem:[#allocation6 + $0x198] sm:$0xf0] }
 0x331   :  { %v4221_v19 = vpop.f32.mrf.mxu3 }
 0x333   :  { %v4208_v26 = vpop.f32.mrf.mxu2 }
 0x334   :  { %v4209_v37 = vadd.f32 %v4208_v26, %v4196_v32 }
 0x336   :  { %v4222_v20 = vadd.f32 %v4221_v19, %v4209_v37  ;;  %v8898_v19 = vor.u32 %v9972_v6, %v8895_v7  ;;  %v9960_v37 = vld [vmem:[#allocation6 + $0x124] sm:$0xf]  ;;  %v9989_v6 = vld [vmem:[#allocation6 + $0x204] sm:$0xf0]  ;;  %v9986_v7 = vld [vmem:[#allocation6 + $0x1f4] sm:$0xf] }
 0x338   :  { %5256 = vmatpush.bf16.msra.mxu1 %v8898_v19  ;;  %v9979_v19 = vld [vmem:[#allocation6 + $0x1bc] sm:$0xf] }
 0x339   :  { %v4223_v5 = vpop.f32.mrf.mxu3 }
 0x33a   :  { %v9969_v5 = vld [vmem:[#allocation6 + $0x164] sm:$0xf0] }
 0x33b   :  { %v4210_v30 = vpop.f32.mrf.mxu2  ;;  %v8870_v11 = vor.u32 %v9969_v5, %v8869_v29  ;;  %v8935_v29 = vld [vmem:[#allocation6 + $0x1d8] sm:$0xf0]  ;;  %v8877_v5 = vld [vmem:[#allocation6 + $0x158] sm:$0xf] }
 0x33c   :  { %v9966_v30 = vld [vmem:[#allocation6 + $0x154] sm:$0xf] }
 0x33d   :  { %v8874_v32 = vor.u32 %v9966_v30, %v8871_v50  ;;  %5244 = vmatpush.bf16.msrb.mxu0 %v8870_v11  ;;  %v9970_v30 = vld [vmem:[#allocation6 + $0x16c] sm:$0xf0] }
 0x33f   :  { %5257 = vmatpush.bf16.msra.mxu1 %v8874_v32 }
 0x344   :  { %v4234_v35 = vpop.f32.mrf.mxu0 }
 0x345   :  { %v4247_v27 = vpop.f32.mrf.mxu1  ;;  %v4235_v44 = vadd.f32 %v4234_v35, %v4222_v20  ;;  %v8845_v35 = vld [vmem:[#allocation6 + $0x120] sm:$0xf]  ;;  %v8847_v20 = vld [vmem:[#allocation6 + $0x138] sm:$0xf0] }
 0x347   :  { %v4248_v45 = vadd.f32 %v4247_v27, %v4235_v44  ;;  %v9963_v27 = vld [vmem:[#allocation6 + $0x134] sm:$0xf0] }
 0x348   :  { %v8846_v44 = vor.u32 %v9963_v27, %v8845_v35  ;;  %v9973_v35 = vld [vmem:[#allocation6 + $0x18c] sm:$0xf]  ;;  %v8903_v27 = vld [vmem:[#allocation6 + $0x1a0] sm:$0xf0] }
 0x34a   :  { %5245 = vmatpush.bf16.msrb.mxu0 %v8846_v44  ;;  %v8911_v44 = vld [vmem:[#allocation6 + $0x1a8] sm:$0xf0] }
 0x34c   :  { %v4236_v42 = vpop.f32.mrf.mxu0 }
 0x34d   :  { %v4249_v43 = vpop.f32.mrf.mxu1 }
 0x351   :  { %v4273_v8 = vpop.f32.mrf.mxu3 }
 0x353   :  { %v4260_v34 = vpop.f32.mrf.mxu2 }
 0x354   :  { %v4261_v46 = vadd.f32 %v4260_v34, %v4248_v45  ;;  %v8973_v45 = vld [vmem:[#allocation6 + $0x218] sm:$0xf]  ;;  %v9994_v34 = vld [vmem:[#allocation6 + $0x22c] sm:$0xf0] }
 0x356   :  { %v4274_v47 = vadd.f32 %v4273_v8, %v4261_v46  ;;  %v8850_v8 = vor.u32 %v9960_v37, %v8847_v20  ;;  %v8821_v46 = vld [vmem:[#allocation6 + $0xf0] sm:$0xf]  ;;  %v9977_v20 = vld [vmem:[#allocation6 + $0x1a4] sm:$0xf0] }
 0x357   :  { %v8909_v37 = vld [vmem:[#allocation6 + $0x190] sm:$0xf] }
 0x358   :  { %vm4284_vm5 = vcmp.gt.f32.partialorder %v4274_v47, 0.0  ;;  %v4292_v38 = vmul.f32 0.01, %v4274_v47  ;;  %5258 = vmatpush.bf16.msra.mxu1 %v8850_v8  ;;  %v8853_v8 = vld [vmem:[#allocation6 + $0x128] sm:$0xf] }
 0x359   :  { %v4275_v48 = vpop.f32.mrf.mxu3 }
 0x35a   :  { %v4300_v49 = vsel %vm4284_vm5, %v4274_v47, %v4292_v38  ;;  %v8974_v47 = vor.u32 %v9994_v34, %v8973_v45  ;;  %v9957_v38 = vld [vmem:[#allocation6 + $0x104] sm:$0xf0]  ;;  %v9954_v48 = vld [vmem:[#allocation6 + $0xf4] sm:$0xf]  ;;  %v9964_v45 = vld [vmem:[#allocation6 + $0x13c] sm:$0xf0]  ;;  %v8906_v34 = vor.u32 %v9973_v35, %v8903_v27 }
 0x35b   :  { %v4308_v18 = vpack.c.bf16 %v4300_v49, %v4300_v49  ;;  %v4262_v14 = vpop.f32.mrf.mxu2  ;;  %v8823_v49 = vld [vmem:[#allocation6 + $0x108] sm:$0xf0]  ;;  %v9947_v35 = vld [vmem:[#allocation6 + $0xb4] sm:$0xf0]  ;;  %vm6463_vm5 = vcmask 637952  }
 0x35c   :  { %v8826_v14 = vor.u32 %v9954_v48, %v8823_v49  ;;  %5266 = vmatpush.bf16.msrb.mxu2 %v8974_v47  ;;  %v9967_v47 = vld [vmem:[#allocation6 + $0x15c] sm:$0xf]  ;;  %v8885_v49 = vld [vmem:[#allocation6 + $0x160] sm:$0xf] }
 0x35d   :  { %4921 = vmatmul.bf16.vlgmr.msrb.gmra.mxu3 %v4308_v18  ;;  %v8822_v18 = vor.u32 %v9957_v38, %v8821_v46  ;;  %v8910_v46 = vor.u32 %v9977_v20, %v8909_v37  ;;  %v8879_v38 = vld [vmem:[#allocation6 + $0x170] sm:$0xf0]  ;;  %v9944_v37 = vld [vmem:[#allocation6 + $0xa4] sm:$0xf]  ;;  %v9079_v20 = vld [vmem:[#allocation6 + $0xb8] sm:$0xf0] }
 0x35e   :  { %5259 = vmatpush.bf16.msra.mxu1 %v8826_v14  ;;  %v8854_v14 = vor.u32 %v9964_v45, %v8853_v8  ;;  %v9013_v8 = vld [vmem:[#allocation6 + $0x30] sm:$0xf]  ;;  %v9933_v45 = vld [vmem:[#allocation6 + $0x44] sm:$0xf0] }
 0x35f   :  { %5246 = vmatpush.bf16.msrb.mxu0 %v8822_v18  ;;  %v9971_v18 = vld [vmem:[#allocation6 + $0x174] sm:$0xf0] }
 0x360   :  { %v8886_v24 = vor.u32 %v9971_v18, %v8885_v49  ;;  %v9053_v49 = vld [vmem:[#allocation6 + $0x70] sm:$0xf]  ;;  %v9941_v18 = vld [vmem:[#allocation6 + $0x84] sm:$0xf0] }
 0x362   :  { %5260 = vmatpush.bf16.msra.mxu1 %v8802_v57 }
 0x364   :  { %v4831_v28 = vpop.f32.mrf.mxu0 }
 0x365   :  { %v4844_v23 = vpop.f32.mrf.mxu1  ;;  %v4832_v52 = vadd.f32 %v4831_v28, %v4437_v40  ;;  %v8949_v40 = vld [vmem:[#allocation6 + $0x1e8] sm:$0xf]  ;;  %v9988_v28 = vld [vmem:[#allocation6 + $0x1fc] sm:$0xf0]  ;;  %5261 = vmatmul.bf16.vlgmr.msra.gmra.mxu1 %v10441_v31 }
 0x367   :  { %v4845_v53 = vadd.f32 %v4844_v23, %v4832_v52  ;;  %v8797_v23 = vld [vmem:[#allocation6 + $0xc0] sm:$0xf]  ;;  %v8950_v52 = vor.u32 %v9988_v28, %v8949_v40  ;;  %v9968_v40 = vld [vmem:[#allocation6 + $0x164] sm:$0xf]  ;;  %v8887_v28 = vld [vmem:[#allocation6 + $0x178] sm:$0xf0] }
 0x368   :  { %v8890_v56 = vor.u32 %v9968_v40, %v8887_v28  ;;  %v9055_v40 = vld [vmem:[#allocation6 + $0x88] sm:$0xf0]  ;;  %v9014_v28 = vor.u32 %v9933_v45, %v9013_v8 }
 0x369   :  { %5267 = vmatpush.bf16.msrb.mxu2 %v8950_v52  ;;  %v9958_v52 = vld [vmem:[#allocation6 + $0x10c] sm:$0xf0] }
 0x36c   :  { %v4833_v55 = vpop.f32.mrf.mxu0 }
 0x36d   :  { %v4846_v58 = vpop.f32.mrf.mxu1  ;;  %v8975_v55 = vld [vmem:[#allocation6 + $0x230] sm:$0xf0]  ;;  %5268 = vmatpush.bf16.msrb.mxu2 %v8926_v21  ;;  %v9061_v21 = vld [vmem:[#allocation6 + $0x90] sm:$0xf] }
 0x36e   :  { %v8981_v58 = vld [vmem:[#allocation6 + $0x220] sm:$0xf]  ;;  %v8978_v41 = vor.u32 %v9991_v39, %v8975_v55  ;;  %v9965_v39 = vld [vmem:[#allocation6 + $0x144] sm:$0xf0]  ;;  %v9962_v55 = vld [vmem:[#allocation6 + $0x134] sm:$0xf] }
 0x36f   :  { %v8982_v60 = vor.u32 %v9995_v59, %v8981_v58  ;;  %v8863_v58 = vld [vmem:[#allocation6 + $0x148] sm:$0xf0] }
 0x370   :  { %5279 = vmatpush.bf16.msra.mxu3 %v8978_v41  ;;  %v8805_v41 = vld [vmem:[#allocation6 + $0xc8] sm:$0xf] }
 0x371   :  { %v4870_v63 = vpop.f32.mrf.mxu3 }
 0x373   :  { %v4857_v51 = vpop.f32.mrf.mxu2 }
 0x374   :  { %v4858_v12 = vadd.f32 %v4857_v51, %v4845_v53  ;;  %v9951_v53 = vld [vmem:[#allocation6 + $0xd4] sm:$0xf0]  ;;  %v8957_v51 = vld [vmem:[#allocation6 + $0x1f0] sm:$0xf]  ;;  %5280 = vmatpush.bf16.msra.mxu3 %v8954_v3 }
 0x375   :  { %v8798_v22 = vor.u32 %v9951_v53, %v8797_v23  ;;  %v8829_v23 = vld [vmem:[#allocation6 + $0xf8] sm:$0xf]  ;;  %v8882_v53 = vor.u32 %v9967_v47, %v8879_v38  ;;  %v9936_v47 = vld [vmem:[#allocation6 + $0x64] sm:$0xf]  ;;  %v9039_v38 = vld [vmem:[#allocation6 + $0x78] sm:$0xf0] }
 0x376   :  { %v4871_v10 = vadd.f32 %v4870_v63, %v4858_v12  ;;  %v8986_v63 = vor.u32 %v9992_v36, %v8983_v33  ;;  %v8958_v12 = vor.u32 %v9989_v6, %v8957_v51  ;;  %v8830_v57 = vor.u32 %v9958_v52, %v8829_v23  ;;  %v9955_v33 = vld [vmem:[#allocation6 + $0xfc] sm:$0xf]  ;;  %v9956_v51 = vld [vmem:[#allocation6 + $0x104] sm:$0xf] }
 0x377   :  { %5247 = vmatpush.bf16.msrb.mxu0 %v8798_v22  ;;  %v8855_v22 = vld [vmem:[#allocation6 + $0x140] sm:$0xf0]  ;;  %v8839_v6 = vld [vmem:[#allocation6 + $0x118] sm:$0xf0]  ;;  %v9042_v23 = vor.u32 %v9936_v47, %v9039_v38  ;;  %v9054_v52 = vor.u32 %v9941_v18, %v9053_v49  ;;  %v10003_v47 = vld [vmem:[#allocation6 + $0x4dc] sm:$0xf0] }
 0x378   :  { %5305 = vmatpush.bf16.msrb.mxu1 %v8986_v63  ;;  %v8858_v36 = vor.u32 %v9961_v54, %v8855_v22  ;;  %v9945_v63 = vld [vmem:[#allocation6 + $0xa4] sm:$0xf0]  ;;  %v9029_v22 = vld [vmem:[#allocation6 + $0x40] sm:$0xf]  ;;  %v9115_v38 = vld [vmem:[#allocation6 + $0x498] sm:$0xf] }
 0x379   :  { %v4872_v13 = vpop.f32.mrf.mxu3 }
 0x37a   :  { %v8927_v13 = vld [vmem:[#allocation6 + $0x1d0] sm:$0xf0]  ;;  %5248 = vmatmul.bf16.vlgmr.msrb.gmra.mxu0 %v10441_v31 }
 0x37b   :  { %v4859_v25 = vpop.f32.mrf.mxu2  ;;  %5292 = vmatpush.bf16.msra.mxu0 %v8982_v60  ;;  %v8930_v11 = vor.u32 %v9979_v19, %v8927_v13  ;;  %v9952_v60 = vld [vmem:[#allocation6 + $0xdc] sm:$0xf0]  ;;  %v9062_v19 = vor.u32 %v9945_v63, %v9061_v21  ;;  %v8838_v13 = vor.u32 %v9959_v0, %v8837_v2  ;;  %v9929_v21 = vld [vmem:[#allocation6 + $0x24] sm:$0xf0]  ;;  %v9926_v2 = vld [vmem:[#allocation6 + $0x14] sm:$0xf] }
 0x37c   :  { %v8933_v25 = vld [vmem:[#allocation6 + $0x1c0] sm:$0xf]  ;;  %v8806_v3 = vor.u32 %v9952_v60, %v8805_v41  ;;  %v9927_v60 = vld [vmem:[#allocation6 + $0x14] sm:$0xf0] }
 0x37d   :  { %5281 = vmatpush.bf16.msra.mxu3 %v8930_v11  ;;  %v8815_v11 = vld [vmem:[#allocation6 + $0xe8] sm:$0xf0]  ;;  %v8989_v41 = vld [vmem:[#allocation6] sm:$0xf] }
 0x37f   :  { %5293 = vmatpush.bf16.msra.mxu0 %v8958_v12  ;;  %v9949_v12 = vld [vmem:[#allocation6 + $0xcc] sm:$0xf] }
 0x381   :  { %5282 = vmatpush.bf16.msra.mxu3 %v8906_v34 }
 0x384   :  { %v4883_v26 = vpop.f32.mrf.mxu0 }
 0x385   :  { %v4896_v17 = vpop.f32.mrf.mxu1  ;;  %v4884_v4 = vadd.f32 %v4883_v26, %v4871_v10  ;;  %v8962_v10 = vor.u32 %v9986_v7, %v8959_v16  ;;  %v8902_v26 = vor.u32 %v9976_v1, %v8901_v62  ;;  %5283 = vmatpush.bf16.msra.mxu3 %v8882_v53  ;;  %v8862_v62 = vor.u32 %v9965_v39, %v8861_v61  ;;  %v8807_v16 = vld [vmem:[#allocation6 + $0xe0] sm:$0xf0]  ;;  %v9930_v53 = vld [vmem:[#allocation6 + $0x34] sm:$0xf]  ;;  %v9031_v39 = vld [vmem:[#allocation6 + $0x58] sm:$0xf0] }
 0x386   :  { %v8866_v1 = vor.u32 %v9962_v55, %v8863_v58  ;;  %v8834_v7 = vor.u32 %v9955_v33, %v8831_v9  ;;  %v9932_v61 = vld [vmem:[#allocation6 + $0x44] sm:$0xf]  ;;  %v8990_v33 = vor.u32 %v9927_v60, %v8989_v41  ;;  %v9005_v9 = vld [vmem:[#allocation6 + $0x10] sm:$0xf]  ;;  %v9103_v60 = vld [vmem:[#allocation6 + $0x408] sm:$0xf] }
 0x387   :  { %v10436_v15 = vadd.f32 %v4896_v17, %v4884_v4  ;;  %v9983_v17 = vld [vmem:[#allocation6 + $0x1d4] sm:$0xf0]  ;;  %v9980_v4 = vld [vmem:[#allocation6 + $0x1c4] sm:$0xf]  ;;  %5306 = vmatpush.bf16.msrb.mxu1 %v8962_v10  ;;  %5269 = vmatpush.bf16.msrb.mxu2 %v8902_v26  ;;  %v8813_v10 = vld [vmem:[#allocation6 + $0xd0] sm:$0xf]  ;;  %v9034_v58 = vor.u32 %v9932_v61, %v9031_v39 }
 0x388   :  { %v8934_v50 = vor.u32 %v9983_v17, %v8933_v25  ;;  %v8938_v32 = vor.u32 %v9980_v4, %v8935_v29  ;;  %v9953_v25 = vld [vmem:[#allocation6 + $0xe4] sm:$0xf0]  ;;  %v9037_v26 = vld [vmem:[#allocation6 + $0x60] sm:$0xf]  ;;  %v9939_v17 = vld [vmem:[#allocation6 + $0x74] sm:$0xf0]  ;;  %v8842_v4 = vor.u32 %v9956_v51, %v8839_v6 }
 0x389   :  { %5284 = vmatpush.bf16.msra.mxu3 %v8858_v36  ;;  %v9950_v29 = vld [vmem:[#allocation6 + $0xd4] sm:$0xf]  ;;  %v9924_v36 = vld [vmem:[#allocation6 + $0x4] sm:$0xf]  ;;  %v9946_v51 = vld [vmem:[#allocation6 + $0xac] sm:$0xf0] }
 0x38a   :  { %5294 = vmatpush.bf16.msra.mxu0 %v8934_v50  ;;  %v9077_v50 = vld [vmem:[#allocation6 + $0xa0] sm:$0xf]  ;;  %v8818_v34 = vor.u32 %v9950_v29, %v8815_v11  ;;  %v9943_v6 = vld [vmem:[#allocation6 + $0x9c] sm:$0xf] }
 0x38b   :  { %5307 = vmatpush.bf16.msrb.mxu1 %v8938_v32  ;;  %v8810_v32 = vor.u32 %v9949_v12, %v8807_v16  ;;  %v9071_v12 = vld [vmem:[#allocation6 + $0xb0] sm:$0xf0] }
 0x38c   :  { %v4885_v42 = vpop.f32.mrf.mxu0  ;;  %v9074_v16 = vor.u32 %v9943_v6, %v9071_v12  ;;  %v10004_v12 = vld [vmem:[#allocation6 + $0x25c] sm:$0xf] }
 0x38d   :  { %v4898_v43 = vpop.f32.mrf.mxu1  ;;  %v8878_v42 = vor.u32 %v9970_v30, %v8877_v5  ;;  %v9942_v5 = vld [vmem:[#allocation6 + $0x94] sm:$0xf]  ;;  %v9063_v30 = vld [vmem:[#allocation6 + $0xa8] sm:$0xf0]  ;;  %5285 = vmatpush.bf16.msra.mxu3 %v8834_v7 }
 0x38e   :  { %v9974_v43 = vld [vmem:[#allocation6 + $0x194] sm:$0xf]  ;;  %5295 = vmatpush.bf16.msra.mxu0 %v8910_v46  ;;  %v9078_v46 = vor.u32 %v9947_v35, %v9077_v50  ;;  %v8997_v35 = vld [vmem:[#allocation6 + $0x8] sm:$0xf] }
 0x38f   :  { %v8914_v48 = vor.u32 %v9974_v43, %v8911_v44  ;;  %5270 = vmatpush.bf16.msrb.mxu2 %v8878_v42  ;;  %v9038_v42 = vor.u32 %v9939_v17, %v9037_v26  ;;  %v8814_v43 = vor.u32 %v9953_v25, %v8813_v10  ;;  %v9066_v44 = vor.u32 %v9942_v5, %v9063_v30  ;;  %v9045_v10 = vld [vmem:[#allocation6 + $0x68] sm:$0xf]  ;;  %v9047_v26 = vld [vmem:[#allocation6 + $0x80] sm:$0xf0]  ;;  %v9021_v17 = vld [vmem:[#allocation6 + $0x38] sm:$0xf] }
 0x390   :  { %v9931_v5 = vld [vmem:[#allocation6 + $0x3c] sm:$0xf]  ;;  %v9023_v30 = vld [vmem:[#allocation6 + $0x50] sm:$0xf0] }
 0x391   :  { %5308 = vmatpush.bf16.msrb.mxu1 %v8914_v48  ;;  %v9082_v48 = vor.u32 %v9944_v37, %v9079_v20  ;;  %5286 = vmatpush.bf16.msra.mxu3 %v8810_v32  ;;  %v9026_v50 = vor.u32 %v9931_v5, %v9023_v30  ;;  %v9925_v32 = vld [vmem:[#allocation6 + $0xc] sm:$0xf]  ;;  %v8999_v37 = vld [vmem:[#allocation6 + $0x20] sm:$0xf0] }
 0x392   :  { %5296 = vmatpush.bf16.msra.mxu0 %v8886_v24  ;;  %v9015_v24 = vld [vmem:[#allocation6 + $0x48] sm:$0xf0] }
 0x393   :  { %5271 = vmatpush.bf16.msrb.mxu2 %v8854_v14  ;;  %v9938_v14 = vld [vmem:[#allocation6 + $0x74] sm:$0xf] }
 0x394   :  { %5287 = vmatmul.bf16.vlgmr.msra.gmra.mxu3 %v10441_v31  ;;  %v9058_v54 = vor.u32 %v9938_v14, %v9055_v40  ;;  %v9111_v14 = vld [vmem:[#allocation6 + $0x468] sm:$0xf]  ;;  %v10001_v40 = vld [vmem:[#allocation6 + $0x47c] sm:$0xf0] }
 0x395   :  { %5309 = vmatpush.bf16.msrb.mxu1 %v8890_v56  ;;  %5459 = vmatpush.bf16.msrb.mxu3 %v9066_v44  ;;  %v9935_v56 = vld [vmem:[#allocation6 + $0x54] sm:$0xf0] }
 0x396   :  { %5297 = vmatpush.bf16.msra.mxu0 %v8862_v62  ;;  %v9030_v55 = vor.u32 %v9935_v56, %v9029_v22  ;;  %v8991_v62 = vld [vmem:[#allocation6 + $0x18] sm:$0xf0] }
 0x397   :  { %5272 = vmatpush.bf16.msrb.mxu2 %v8830_v57  ;;  %v9018_v57 = vor.u32 %v9930_v53, %v9015_v24  ;;  %v8994_v63 = vor.u32 %v9924_v36, %v8991_v62  ;;  %v9999_v36 = vld [vmem:[#allocation6 + $0x41c] sm:$0xf0]  ;;  %v9099_v62 = vld [vmem:[#allocation6 + $0x3d8] sm:$0xf] }
 0x399   :  { %5310 = vmatpush.bf16.msrb.mxu1 %v8866_v1  ;;  %5460 = vmatpush.bf16.msrb.mxu3 %v9042_v23  ;;  %v9006_v1 = vor.u32 %v9929_v21, %v9005_v9  ;;  %v9112_v23 = vor.u32 %v10001_v40, %v9111_v14  ;;  %v9998_v9 = vld [vmem:[#allocation6 + $0x3ec] sm:$0xf0] }
 0x39a   :  { %5298 = vmatpush.bf16.msra.mxu0 %v8838_v13  ;;  %v9937_v13 = vld [vmem:[#allocation6 + $0x6c] sm:$0xf]  ;;  %v9100_v21 = vor.u32 %v9998_v9, %v9099_v62 }
 0x39b   :  { %5273 = vmatpush.bf16.msrb.mxu2 %v8806_v3  ;;  %v9069_v3 = vld [vmem:[#allocation6 + $0x98] sm:$0xf]  ;;  %v9050_v29 = vor.u32 %v9937_v13, %v9047_v26  ;;  %v9176_v9 = vld [vmem:[#allocation6 + $0x4cc] sm:$0xf] }
 0x39c   :  { %v9070_v7 = vor.u32 %v9946_v51, %v9069_v3  ;;  %v10458_v51 = vld [vmem:[#allocation6 + $0x250] sm:$0x11] }
 0x39d   :  { %5311 = vmatpush.bf16.msrb.mxu1 %v8842_v4  ;;  %5461 = vmatpush.bf16.msrb.mxu3 %v9018_v57  ;;  %v9934_v4 = vld [vmem:[#allocation6 + $0x4c] sm:$0xf0]  ;;  %v5528_v6 = vunpack.c.h.bf16 %v10458_v51 }
 0x39e   :  { %5274 = vmatmul.bf16.vlgmr.msrb.gmra.mxu2 %v10441_v31  ;;  %5299 = vmatpush.bf16.msra.mxu0 %v8814_v43  ;;  %v9022_v11 = vor.u32 %v9934_v4, %v9021_v17 }
 0x39f   :  { %5446 = vmatpush.bf16.msra.mxu2 %v9062_v19  ;;  %v9940_v19 = vld [vmem:[#allocation6 + $0x7c] sm:$0xf0] }
 0x3a0   :  { %v10445_v59 = vpop.f32.mrf.mxu2  ;;  %v9046_v25 = vor.u32 %v9940_v19, %v9045_v10  ;;  %v5534_v19 = vperm.slane %v5528_v6, 0  ;;  %v9168_v6 = vld [vmem:[#allocation6 + $0x46c] sm:$0xf] }
 0x3a1   :  { %5312 = vmatpush.bf16.msrb.mxu1 %v8818_v34  ;;  %5300 = vmatmul.bf16.vlgmr.msra.gmra.mxu0 %v10441_v31  ;;  %v4910_v43 = vadd.f32 %v10445_v59, %v10436_v15  ;;  %v10002_v15 = vld [vmem:[#allocation6 + $0x4ac] sm:$0xf0] }
 0x3a2   :  { %5498 = vmatpush.bf16.msrb.mxu0 %v9078_v46  ;;  %5462 = vmatpush.bf16.msrb.mxu3 %v8994_v63  ;;  %v9119_v46 = vld [vmem:[#allocation6 + $0x4c8] sm:$0xf]  ;;  %v9116_v18 = vor.u32 %v10002_v15, %v9115_v38 }
 0x3a3   :  { %5447 = vmatpush.bf16.msra.mxu2 %v9038_v42  ;;  %v9002_v42 = vor.u32 %v9925_v32, %v8999_v37  ;;  %v9095_v63 = vld [vmem:[#allocation6 + $0x3a8] sm:$0xf] }
 0x3a4   :  { %5313 = vmatmul.bf16.vlgmr.msrb.gmra.mxu1 %v10441_v31  ;;  %v9007_v31 = vld [vmem:[#allocation6 + $0x28] sm:$0xf0] }
 0x3a5   :  { %5511 = vmatpush.bf16.msra.mxu1 %v9082_v48  ;;  %v9010_v0 = vor.u32 %v9926_v2, %v9007_v31  ;;  %v9120_v48 = vor.u32 %v10003_v47, %v9119_v46  ;;  %v9091_v31 = vld [vmem:[#allocation6 + $0x378] sm:$0xf]  ;;  %v10468_v38 = vld [vmem:[#allocation6 + $0x248] sm:$0x11] }
 0x3a6   :  { %5499 = vmatpush.bf16.msrb.mxu0 %v9054_v52  ;;  %5485 = vmatpush.bf16.msra.mxu3 %v9074_v16  ;;  %v10000_v52 = vld [vmem:[#allocation6 + $0x44c] sm:$0xf0]  ;;  %v9121_v16 = vld [vmem:[#allocation6 + $0x270] sm:$0x30] }
 0x3a7   :  { %5448 = vmatpush.bf16.msra.mxu2 %v9014_v28  ;;  %v9107_v28 = vld [vmem:[#allocation6 + $0x438] sm:$0xf]  ;;  %v9124_v10 = vor.u32 %v10004_v12, %v9121_v16 }
 0x3a8   :  { %v4911_v27 = vpop.f32.mrf.mxu2 }
 0x3a9   :  { %5512 = vmatpush.bf16.msra.mxu1 %v9058_v54  ;;  %v9928_v27 = vld [vmem:[#allocation6 + $0x1c] sm:$0xf0]  ;;  %v9108_v54 = vor.u32 %v10000_v52, %v9107_v28  ;;  %v5659_v17 = vsel %vm5657_vm7, %v9124_v10, 0  ;;  %v9164_v10 = vld [vmem:[#allocation6 + $0x43c] sm:$0xf] }
 0x3aa   :  { %5500 = vmatpush.bf16.msrb.mxu0 %v9030_v55  ;;  %5486 = vmatpush.bf16.msra.mxu3 %v9050_v29  ;;  %v8998_v20 = vor.u32 %v9928_v27, %v8997_v35  ;;  %v9127_v52 = vld [vmem:[#allocation6 + $0x260] sm:$0xf] }
 0x3ab   :  { %5449 = vmatpush.bf16.msra.mxu2 %v8990_v33  ;;  %v9104_v33 = vor.u32 %v9999_v36, %v9103_v60  ;;  %v9137_v60 = vld [vmem:[#allocation6 + $0x280] sm:$0x30] }
 0x3ad   :  { %5513 = vmatpush.bf16.msra.mxu1 %v9034_v58 }
 0x3ae   :  { %5501 = vmatpush.bf16.msrb.mxu0 %v9006_v1  ;;  %5487 = vmatpush.bf16.msra.mxu3 %v9026_v50  ;;  %v9997_v1 = vld [vmem:[#allocation6 + $0x3bc] sm:$0xf0] }
 0x3af   :  { %5472 = vmatpush.bf16.msrb.mxu2 %v9070_v7  ;;  %v9096_v2 = vor.u32 %v9997_v1, %v9095_v63  ;;  %v5520_v7 = vld [vmem:[#allocation6 + $0x240] sm:$0x11]  ;;  %v9172_v63 = vld [vmem:[#allocation6 + $0x49c] sm:$0xf]  ;;  %v5561_v1 = vld [vmem:[#allocation6 + $0x4f8] sm:$0x1] }
 0x3b0   :  { %v5523_v26 = vunpack.c.l.bf16 %v5520_v7  ;;  %v5524_v4 = vunpack.c.h.bf16 %v5520_v7  ;;  %v10014_v7 = vld [vmem:[#allocation6 + $0x480] sm:$0xf0] }
 0x3b1   :  { %5514 = vmatpush.bf16.msra.mxu1 %v9010_v0  ;;  %v9996_v0 = vld [vmem:[#allocation6 + $0x38c] sm:$0xf0]  ;;  %v9169_v12 = vor.u32 %v10014_v7, %v9168_v6  ;;  %v10017_v6 = vld [vmem:[#allocation6 + $0x294] sm:$0xf]  ;;  %v9182_v7 = vld [vmem:[#allocation6 + $0x2a8] sm:$0xf0] }
 0x3b2   :  { %5488 = vmatpush.bf16.msra.mxu3 %v9002_v42  ;;  %v9092_v3 = vor.u32 %v9996_v0, %v9091_v31  ;;  %v5530_v50 = vperm.slane %v5524_v4, 0  ;;  %v10015_v31 = vld [vmem:[#allocation6 + $0x4b0] sm:$0xf0]  ;;  %v10012_v4 = vld [vmem:[#allocation6 + $0x420] sm:$0xf0] }
 0x3b3   :  { %5473 = vmatpush.bf16.msrb.mxu2 %v9046_v25  ;;  %v9173_v0 = vor.u32 %v10015_v31, %v9172_v63 }
 0x3b7   :  { %5474 = vmatpush.bf16.msrb.mxu2 %v9022_v11  ;;  %v5529_v11 = vperm.slane %v5523_v26, 0 }
 0x3bb   :  { %5475 = vmatpush.bf16.msrb.mxu2 %v8998_v20 }
 0x3e0   :  { %v4922_v44 = vpop.f32.mrf.mxu3 }
 0x3e1   :  { %v4923_v8 = vadd.f32 %v4922_v44, %v4910_v43 }
 0x3e2   :  { %v5262_v49 = vpop.f32.mrf.mxu1 }
 0x3e3   :  { %v4926_v45 = vpack.c.bf16 %v4923_v8, %v4923_v8  ;;  %6468 = vst [vmem:[%s10551_s4 + $0x2] sm:$0x3] %v4923_v8 }
 0x3e5   :  { %9083 = vmatmul.msk.bf16.vlgmr.msra.gmra.mxu2 %vm5438_vm6, %v4926_v45  ;;  %9084 = vmatmul.msk.bf16.vlgmr.msrb.gmra.mxu3 %vm5438_vm6, %v4926_v45 }
 0x3e6   :  { %9087 = vmatmul.msk.bf16.vlgmr.msrb.gmra.mxu0 %vm5438_vm6, %v4926_v45  ;;  %9088 = vmatmul.msk.bf16.vlgmr.msra.gmra.mxu1 %vm5438_vm6, %v4926_v45 }
 0x3e7   :  { %5612 = vmatpush.bf16.msra.mxu2 %v9120_v48  ;;  %5680 = vmatpush.bf16.msrb.mxu3 %v5659_v17  ;;  %v5526_v48 = vunpack.c.h.bf16 %v10468_v38  ;;  %v9160_v17 = vld [vmem:[#allocation6 + $0x40c] sm:$0xf] }
 0x3e8   :  { %v4924_v34 = vpop.f32.mrf.mxu3 }
 0x3e9   :  { %v5532_v15 = vperm.slane %v5526_v48, 0 }
 0x3ea   :  { %v5264_v24 = vpop.f32.mrf.mxu1 }
 0x3eb   :  { %5613 = vmatpush.bf16.msra.mxu2 %v9116_v18  ;;  %v10005_v24 = vld [vmem:[#allocation6 + $0x264] sm:$0xf] }
 0x3ef   :  { %5614 = vmatpush.bf16.msra.mxu2 %v9112_v23 }
 0x3f3   :  { %5615 = vmatpush.bf16.msra.mxu2 %v9108_v54 }
 0x3f5   :  { %9085 = vmatmul.msk.bf16.vlgmr.msrb.gmra.mxu2 %vm5438_vm6, %v4926_v45  ;;  %9086 = vmatmul.msk.bf16.vlgmr.msra.gmra.mxu3 %vm5438_vm6, %v4926_v45  ;;  %vm6465_vm6 = vcmask 736256  }
 0x3f7   :  { %v5249_v59 = vpop.f32.mrf.mxu0  ;;  %5616 = vmatpush.bf16.msra.mxu2 %v9104_v33 }
 0x3fb   :  { %5617 = vmatpush.bf16.msra.mxu2 %v9100_v21  ;;  %v10016_v21 = vld [vmem:[#allocation6 + $0x4e0] sm:$0xf0] }
 0x3ff   :  { %v5251_v53 = vpop.f32.mrf.mxu0  ;;  %5618 = vmatpush.bf16.msra.mxu2 %v9096_v2  ;;  %v9177_v2 = vor.u32 %v10016_v21, %v9176_v9 }
 0x400   :  { %v10007_v53 = vld [vmem:[#allocation6 + $0x274] sm:$0x30] }
 0x401   :  { %v9128_v54 = vor.u32 %v10007_v53, %v9127_v52 }
 0x403   :  { %5619 = vmatpush.bf16.msra.mxu2 %v9092_v3  ;;  %v5562_v3 = vunpack.c.l.bf16 %v5561_v1 }
 0x405   :  { %v5563_v16 = vperm.slane %v5562_v3, 0 }
 0x417   :  { %v5288_v39 = vpop.f32.mrf.mxu3 }
 0x41e   :  { %v5301_v56 = vpop.f32.mrf.mxu0 }
 0x41f   :  { %v5290_v41 = vpop.f32.mrf.mxu3 }
 0x420   :  { %v10006_v41 = vld [vmem:[#allocation6 + $0x26c] sm:$0xf] }
 0x421   :  { %v10456_v22 = vpop.f32.mrf.mxu2  ;;  %v5314_v61 = vpop.f32.mrf.mxu1  ;;  %v9140_v36 = vor.u32 %v10006_v41, %v9137_v60 }
 0x423   :  { %v5671_v62 = vsel %vm5657_vm7, %v9140_v36, 0 }
 0x426   :  { %v5303_v55 = vpop.f32.mrf.mxu0 }
 0x429   :  { %v5277_v57 = vpop.f32.mrf.mxu2  ;;  %v5316_v58 = vpop.f32.mrf.mxu1 }
 0x42a   :  { %v5662_v57 = vsel %vm5657_vm7, %v9128_v54, 0  ;;  %v9135_v58 = vld [vmem:[#allocation6 + $0x268] sm:$0xf] }
 0x42b   :  { %5693 = vmatpush.bf16.msra.mxu0 %v5662_v57  ;;  %v10019_v54 = vld [vmem:[#allocation6 + $0x2a4] sm:$0xf0] }
 0x42f   :  { %5732 = vmatpush.bf16.msrb.mxu0 %v5671_v62  ;;  %v5527_v62 = vunpack.c.l.bf16 %v10458_v51 }
 0x431   :  { %v5533_v1 = vperm.slane %v5527_v62, 0  ;;  %v9230_v62 = vld [vmem:[#allocation6 + $0x2f0] sm:$0xf0] }
 0x463   :  { %v5503_v13 = vpop.f32.mrf.mxu0  ;;  %v5516_v25 = vpop.f32.mrf.mxu1 }
 0x464   :  { %v10462_v29 = vadd.f32 %v5503_v13, %v5301_v56  ;;  %v5517_v5 = vadd.f32 %v5516_v25, %v5314_v61  ;;  %v9129_v56 = vld [vmem:[#allocation6 + $0x278] sm:$0x30] }
 0x465   :  { %v9132_v61 = vor.u32 %v10005_v24, %v9129_v56  ;;  %v9180_v24 = vld [vmem:[#allocation6 + $0x290] sm:$0xf] }
 0x466   :  { %v10464_v30 = vadd.f32 %v5534_v19, %v5517_v5  ;;  %v10013_v19 = vld [vmem:[#allocation6 + $0x450] sm:$0xf0] }
 0x467   :  { %v5665_v55 = vsel %vm5657_vm7, %v9132_v61, 0  ;;  %v9165_v25 = vor.u32 %v10013_v19, %v9164_v10  ;;  %v10020_v10 = vld [vmem:[#allocation6 + $0x2ac] sm:$0xf0] }
 0x468   :  { %v5451_v35 = vpop.f32.mrf.mxu2  ;;  %v5464_v27 = vpop.f32.mrf.mxu3  ;;  %5706 = vmatpush.bf16.msrb.mxu1 %v5665_v55  ;;  %v9181_v55 = vor.u32 %v10019_v54, %v9180_v24  ;;  %v9204_v54 = vld [vmem:[#allocation6 + $0x3b0] sm:$0xf] }
 0x469   :  { %v5452_v32 = vadd.f32 %v5451_v35, %v5249_v59  ;;  %v5465_v37 = vadd.f32 %v5464_v27, %v5262_v49  ;;  %v9156_v35 = vld [vmem:[#allocation6 + $0x3dc] sm:$0xf]  ;;  %v10011_v27 = vld [vmem:[#allocation6 + $0x3f0] sm:$0xf0] }
 0x46b   :  { %v5535_v20 = vadd.f32 %v5529_v11, %v5452_v32  ;;  %v5505_v42 = vpop.f32.mrf.mxu0  ;;  %v5518_v43 = vpop.f32.mrf.mxu1  ;;  %v10466_v44 = vadd.f32 %v5530_v50, %v5465_v37  ;;  %v9161_v11 = vor.u32 %v10012_v4, %v9160_v17  ;;  %v9157_v32 = vor.u32 %v10011_v27, %v9156_v35  ;;  %v9152_v37 = vld [vmem:[#allocation6 + $0x3ac] sm:$0xf]  ;;  %v9228_v4 = vld [vmem:[#allocation6 + $0x4d0] sm:$0xf]  ;;  %v10027_v27 = vld [vmem:[#allocation6 + $0x4b4] sm:$0xf0] }
 0x46c   :  { %5814 = vmatpush.bf16.msra.mxu1 %v9177_v2  ;;  %v9148_v43 = vld [vmem:[#allocation6 + $0x37c] sm:$0xf]  ;;  %v5539_v2 = vadd.f32 %v5533_v1, %v10462_v29 }
 0x46d   :  { %vm5541_vm8 = vcmp.gt.f32.partialorder %v5535_v20, 0.0  ;;  %v5542_v8 = vmul.f32 0.01, %v5535_v20 }
 0x46f   :  { %v5543_v45 = vsel %vm5541_vm8, %v5535_v20, %v5542_v8  ;;  %v10010_v20 = vld [vmem:[#allocation6 + $0x3c0] sm:$0xf0]  ;;  %v10009_v8 = vld [vmem:[#allocation6 + $0x390] sm:$0xf0] }
 0x470   :  { %v5544_v34 = vpack.c.bf16 %v5543_v45, %v5543_v45  ;;  %v5453_v46 = vpop.f32.mrf.mxu2  ;;  %v5466_v47 = vpop.f32.mrf.mxu3  ;;  %5815 = vmatpush.bf16.msra.mxu1 %v9173_v0  ;;  %v9153_v42 = vor.u32 %v10010_v20, %v9152_v37  ;;  %v9149_v45 = vor.u32 %v10009_v8, %v9148_v43  ;;  %v9220_v20 = vld [vmem:[#allocation6 + $0x470] sm:$0xf] }
 0x471   :  { %v5832_v47 = vld [vmem:[#allocation6 + $0x2c0] sm:$0x11] }
 0x472   :  { %5620 = vmatmul.bf16.vlgmr.msra.gmra.mxu2 %v5544_v34  ;;  %v5525_v34 = vunpack.c.l.bf16 %v10468_v38 }
 0x474   :  { %5816 = vmatpush.bf16.msra.mxu1 %v9169_v12  ;;  %v5531_v46 = vperm.slane %v5525_v34, 0  ;;  %v9188_v12 = vld [vmem:[#allocation6 + $0x298] sm:$0xf] }
 0x475   :  { %v9189_v51 = vor.u32 %v10020_v10, %v9188_v12  ;;  %v10025_v34 = vld [vmem:[#allocation6 + $0x454] sm:$0xf0] }
 0x478   :  { %v5477_v18 = vpop.f32.mrf.mxu2  ;;  %v5490_v59 = vpop.f32.mrf.mxu3  ;;  %5817 = vmatpush.bf16.msra.mxu1 %v9165_v25  ;;  %v9190_v25 = vld [vmem:[#allocation6 + $0x2b0] sm:$0xf0] }
 0x479   :  { %v10472_v49 = vadd.f32 %v5477_v18, %v10456_v22  ;;  %v5491_v14 = vadd.f32 %v5490_v59, %v5288_v39  ;;  %v10008_v22 = vld [vmem:[#allocation6 + $0x27c] sm:$0x30]  ;;  %v5849_v18 = vunpack.c.h.b16 %v5832_v47  ;;  %v5833_v59 = vld [vmem:[#allocation6 + $0x2c8] sm:$0x11] }
 0x47a   :  { %v9136_v39 = vor.u32 %v10008_v22, %v9135_v58  ;;  %v5851_v19 = vunpack.c.h.b16 %v5833_v59 }
 0x47b   :  { %v10474_v40 = vadd.f32 %v5532_v15, %v5491_v14  ;;  %v5537_v48 = vadd.f32 %v5531_v46, %v10472_v49  ;;  %v5848_v15 = vunpack.c.l.b16 %v5832_v47  ;;  %v5857_v56 = vpack.c.b16 %v5849_v18, %v5849_v18  ;;  %v10024_v18 = vld [vmem:[#allocation6 + $0x424] sm:$0xf0] }
 0x47c   :  { %v5668_v33 = vsel %vm5657_vm7, %v9136_v39, 0  ;;  %5818 = vmatpush.bf16.msra.mxu1 %v9161_v11  ;;  %v9224_v11 = vld [vmem:[#allocation6 + $0x4a0] sm:$0xf] }
 0x47d   :  { %5719 = vmatpush.bf16.msra.mxu3 %v5668_v33  ;;  %v5856_v53 = vpack.c.b16 %v5848_v15, %v5848_v15  ;;  %v5873_v49 = vsel %vm5868_vm10, %v5857_v56, 0  ;;  %v9212_v15 = vld [vmem:[#allocation6 + $0x410] sm:$0xf]  ;;  %v10022_v56 = vld [vmem:[#allocation6 + $0x3c4] sm:$0xf0] }
 0x47f   :  { %v5870_v57 = vsel %vm5868_vm10, %v5856_v53, 0  ;;  %v10023_v53 = vld [vmem:[#allocation6 + $0x3f4] sm:$0xf0] }
 0x480   :  { %v5479_v28 = vpop.f32.mrf.mxu2  ;;  %v5492_v23 = vpop.f32.mrf.mxu3  ;;  %5819 = vmatpush.bf16.msra.mxu1 %v9157_v32  ;;  %5887 = vmatpush.bf16.msrb.mxu2 %v5870_v57  ;;  %v9225_v32 = vor.u32 %v10027_v27, %v9224_v11  ;;  %v9200_v57 = vld [vmem:[#allocation6 + $0x380] sm:$0xf] }
 0x481   :  { %v5850_v28 = vunpack.c.l.b16 %v5833_v59 }
 0x483   :  { %v5858_v38 = vpack.c.b16 %v5850_v28, %v5850_v28 }
 0x484   :  { %5820 = vmatpush.bf16.msra.mxu1 %v9153_v42  ;;  %5888 = vmatpush.bf16.msrb.mxu2 %v9181_v55  ;;  %v10026_v42 = vld [vmem:[#allocation6 + $0x484] sm:$0xf0] }
 0x485   :  { %v5876_v58 = vsel %vm5868_vm10, %v5858_v38, 0  ;;  %v9221_v43 = vor.u32 %v10026_v42, %v9220_v20  ;;  %v9205_v38 = vor.u32 %v10022_v56, %v9204_v54  ;;  %v10034_v56 = vld [vmem:[#allocation6 + $0x3f8] sm:$0xf0] }
 0x488   :  { %5821 = vmatpush.bf16.msra.mxu1 %v9149_v45  ;;  %v9216_v45 = vld [vmem:[#allocation6 + $0x440] sm:$0xf] }
 0x489   :  { %v9217_v47 = vor.u32 %v10025_v34, %v9216_v45  ;;  %v9271_v45 = vld [vmem:[#allocation6 + $0x4a4] sm:$0xf] }
 0x4f5   :  { %v5621_v13 = vpop.f32.mrf.mxu2 }
 0x4f6   :  { %v10480_v26 = vadd.f32 %v5621_v13, %v5563_v16  ;;  %v9185_v16 = vor.u32 %v10017_v6, %v9182_v7  ;;  %v5859_v13 = vpack.c.b16 %v5851_v19, %v5851_v19 }
 0x4f8   :  { %v5625_v5 = vpack.c.bf16 %v10480_v26, %v10480_v26  ;;  %v5879_v17 = vsel %vm5868_vm10, %v5859_v13, 0 }
 0x4f9   :  { %5926 = vmatpush.bf16.msra.mxu2 %v5879_v17 }
 0x4fa   :  { %9141 = vmatmul.msk.bf16.vlgmr.msrb.gmra.mxu3 %vm5653_vm9, %v5625_v5  ;;  %9142 = vmatmul.msk.bf16.vlgmr.msra.gmra.mxu0 %vm5653_vm9, %v5625_v5 }
 0x4fb   :  { %9143 = vmatmul.msk.bf16.vlgmr.msrb.gmra.mxu1 %vm5653_vm9, %v5625_v5  ;;  %5900 = vmatpush.bf16.msrb.mxu3 %v5873_v49  ;;  %v10021_v49 = vld [vmem:[#allocation6 + $0x394] sm:$0xf0] }
 0x4fc   :  { %5913 = vmatpush.bf16.msra.mxu0 %v5876_v58  ;;  %v9201_v55 = vor.u32 %v10021_v49, %v9200_v57  ;;  %v6026_v58 = vld [vmem:[#allocation6 + $0x308] sm:$0x11]  ;;  %v9251_v57 = vld [vmem:[#allocation6 + $0x3b4] sm:$0xf] }
 0x4fd   :  { %v5623_v50 = vpop.f32.mrf.mxu2  ;;  %v10033_v49 = vld [vmem:[#allocation6 + $0x3c8] sm:$0xf0] }
 0x4fe   :  { %v5763_v50 = vld [vmem:[#allocation6 + $0x4fc] sm:$0x1] }
 0x4ff   :  { %5901 = vmatpush.bf16.msrb.mxu3 %v9185_v16  ;;  %v5764_v37 = vunpack.c.l.bf16 %v5763_v50 }
 0x500   :  { %5914 = vmatpush.bf16.msra.mxu0 %v9189_v51 }
 0x501   :  { %v5765_v8 = vperm.slane %v5764_v37, 0 }
 0x50a   :  { %9144 = vmatmul.msk.bf16.vlgmr.msra.gmra.mxu3 %vm5653_vm9, %v5625_v5  ;;  %9145 = vmatmul.msk.bf16.vlgmr.msrb.gmra.mxu0 %vm5653_vm9, %v5625_v5  ;;  %v10028_v5 = vld [vmem:[#allocation6 + $0x4e4] sm:$0xf0] }
 0x50b   :  { %v9229_v35 = vor.u32 %v10028_v5, %v9228_v4  ;;  %v9236_v4 = vld [vmem:[#allocation6 + $0x2e0] sm:$0xf]  ;;  %v10031_v5 = vld [vmem:[#allocation6 + $0x2f4] sm:$0xf0] }
 0x50c   :  { %v9237_v11 = vor.u32 %v10031_v5, %v9236_v4  ;;  %v9301_v4 = vld [vmem:[#allocation6 + $0x478] sm:$0xf]  ;;  %v10045_v5 = vld [vmem:[#allocation6 + $0x48c] sm:$0xf0] }
 0x50d   :  { %6008 = vmatpush.bf16.msra.mxu3 %v9229_v35  ;;  %v5957_v35 = vld [vmem:[#allocation6 + $0x500] sm:$0x1] }
 0x50e   :  { %v5958_v27 = vunpack.c.l.bf16 %v5957_v35 }
 0x511   :  { %6009 = vmatpush.bf16.msra.mxu3 %v9225_v32  ;;  %v5959_v32 = vperm.slane %v5958_v27, 0 }
 0x515   :  { %6010 = vmatpush.bf16.msra.mxu3 %v9221_v43  ;;  %v9275_v43 = vld [vmem:[#allocation6 + $0x4d4] sm:$0xf] }
 0x519   :  { %6011 = vmatpush.bf16.msra.mxu3 %v9217_v47 }
 0x577   :  { %v5695_v14 = vpop.f32.mrf.mxu0 }
 0x578   :  { %v10486_v23 = vadd.f32 %v5695_v14, %v5537_v48  ;;  %v5708_v52 = vpop.f32.mrf.mxu1  ;;  %v9213_v14 = vor.u32 %v10024_v18, %v9212_v15  ;;  %v9267_v15 = vld [vmem:[#allocation6 + $0x474] sm:$0xf]  ;;  %v10037_v18 = vld [vmem:[#allocation6 + $0x488] sm:$0xf0] }
 0x579   :  { %v10489_v61 = vadd.f32 %v5708_v52, %v10474_v40  ;;  %v9208_v52 = vld [vmem:[#allocation6 + $0x3e0] sm:$0xf] }
 0x57a   :  { %6012 = vmatpush.bf16.msra.mxu3 %v9213_v14  ;;  %v9209_v24 = vor.u32 %v10023_v53, %v9208_v52  ;;  %v9263_v14 = vld [vmem:[#allocation6 + $0x444] sm:$0xf]  ;;  %v9259_v53 = vld [vmem:[#allocation6 + $0x414] sm:$0xf] }
 0x57d   :  { %v5682_v22 = vpop.f32.mrf.mxu3 }
 0x57e   :  { %v5738_v41 = vadd.f32 %v5682_v22, %v10466_v44  ;;  %6013 = vmatpush.bf16.msra.mxu3 %v9209_v24  ;;  %v6040_v22 = vunpack.c.h.b16 %v6026_v58  ;;  %v10035_v24 = vld [vmem:[#allocation6 + $0x428] sm:$0xf0]  ;;  %v9247_v58 = vld [vmem:[#allocation6 + $0x384] sm:$0xf] }
 0x57f   :  { %v5697_v39 = vpop.f32.mrf.mxu0  ;;  %v9260_v54 = vor.u32 %v10035_v24, %v9259_v53 }
 0x580   :  { %vm5743_vm11 = vcmp.gt.f32.partialorder %v5738_v41, 0.0  ;;  %v5744_v60 = vmul.f32 0.01, %v5738_v41  ;;  %v5710_v40 = vpop.f32.mrf.mxu1 }
 0x582   :  { %v5745_v36 = vsel %vm5743_vm11, %v5738_v41, %v5744_v60  ;;  %6014 = vmatpush.bf16.msra.mxu3 %v9205_v38  ;;  %v6027_v41 = vld [vmem:[#allocation6 + $0x310] sm:$0x11] }
 0x583   :  { %v5746_v33 = vpack.c.bf16 %v5745_v36, %v5745_v36  ;;  %v6041_v39 = vunpack.c.l.b16 %v6027_v41  ;;  %v6042_v60 = vunpack.c.h.b16 %v6027_v41  ;;  %v6046_v36 = vpack.c.b16 %v6040_v22, %v6040_v22  ;;  %v10032_v22 = vld [vmem:[#allocation6 + $0x398] sm:$0xf0] }
 0x584   :  { %v9248_v41 = vor.u32 %v10032_v22, %v9247_v58 }
 0x585   :  { %v5684_v9 = vpop.f32.mrf.mxu3  ;;  %5822 = vmatmul.bf16.vlgmr.msra.gmra.mxu1 %v5746_v33  ;;  %v10029_v33 = vld [vmem:[#allocation6 + $0x2dc] sm:$0xf]  ;;  %v6048_v1 = vpack.c.b16 %v6042_v60, %v6042_v60 }
 0x586   :  { %6015 = vmatpush.bf16.msra.mxu3 %v9201_v55  ;;  %v9252_v55 = vor.u32 %v10033_v49, %v9251_v57 }
 0x587   :  { %v5734_v21 = vpop.f32.mrf.mxu0 }
 0x588   :  { %v10497_v63 = vadd.f32 %v5734_v21, %v10464_v30  ;;  %v10018_v30 = vld [vmem:[#allocation6 + $0x29c] sm:$0xf]  ;;  %v6047_v21 = vpack.c.b16 %v6041_v39, %v6041_v39  ;;  %v6191_v39 = vld [vmem:[#allocation6 + $0x328] sm:$0x77] }
 0x589   :  { %v9193_v29 = vor.u32 %v10018_v30, %v9190_v25  ;;  %v6193_v60 = vunpack.c.l.b16 %v6191_v39 }
 0x58b   :  { %5927 = vmatpush.bf16.msra.mxu2 %v9193_v29 }
 0x58d   :  { %v5721_v31 = vpop.f32.mrf.mxu3 }
 0x58e   :  { %v10500_v44 = vadd.f32 %v5721_v31, %v5539_v2  ;;  %v6056_v2 = vsel %vm5868_vm10, %v6046_v36, 0  ;;  %v9233_v31 = vor.u32 %v10029_v33, %v9230_v62 }
 0x58f   :  { %v5736_v0 = vpop.f32.mrf.mxu0  ;;  %6070 = vmatpush.bf16.msrb.mxu0 %v6056_v2 }
 0x590   :  { %v6059_v0 = vsel %vm5868_vm10, %v6047_v21, 0 }
 0x591   :  { %6083 = vmatpush.bf16.msrb.mxu1 %v6059_v0 }
 0x593   :  { %6071 = vmatpush.bf16.msrb.mxu0 %v9233_v31 }
 0x595   :  { %v5723_v3 = vpop.f32.mrf.mxu3  ;;  %6084 = vmatpush.bf16.msrb.mxu1 %v9237_v11 }
 0x596   :  { %v6062_v3 = vsel %vm5868_vm10, %v6048_v1, 0 }
 0x602   :  { %v5823_v46 = vpop.f32.mrf.mxu1 }
 0x603   :  { %v10503_v48 = vadd.f32 %v5823_v46, %v5765_v8  ;;  %v10039_v8 = vld [vmem:[#allocation6 + $0x4e8] sm:$0xf0]  ;;  %v10038_v46 = vld [vmem:[#allocation6 + $0x4b8] sm:$0xf0] }
 0x604   :  { %v9276_v34 = vor.u32 %v10039_v8, %v9275_v43  ;;  %v9272_v47 = vor.u32 %v10038_v46, %v9271_v45  ;;  %v10043_v43 = vld [vmem:[#allocation6 + $0x42c] sm:$0xf0]  ;;  %v9289_v45 = vld [vmem:[#allocation6 + $0x3e8] sm:$0xf] }
 0x605   :  { %v5827_v59 = vpack.c.bf16 %v10503_v48, %v10503_v48 }
 0x607   :  { %9194 = vmatmul.msk.bf16.vlgmr.msrb.gmra.mxu2 %vm5864_vm12, %v5827_v59  ;;  %9195 = vmatmul.msk.bf16.vlgmr.msrb.gmra.mxu3 %vm5864_vm12, %v5827_v59 }
 0x608   :  { %9196 = vmatmul.msk.bf16.vlgmr.msra.gmra.mxu0 %vm5864_vm12, %v5827_v59  ;;  %6096 = vmatpush.bf16.msrb.mxu2 %v6062_v3 }
 0x609   :  { %6177 = vmatpush.bf16.msra.mxu0 %v9276_v34  ;;  %v10042_v34 = vld [vmem:[#allocation6 + $0x3fc] sm:$0xf0] }
 0x60a   :  { %v5825_v28 = vpop.f32.mrf.mxu1  ;;  %v9290_v46 = vor.u32 %v10042_v34, %v9289_v45 }
 0x60b   :  { %v10036_v28 = vld [vmem:[#allocation6 + $0x458] sm:$0xf0] }
 0x60c   :  { %v9264_v52 = vor.u32 %v10036_v28, %v9263_v14  ;;  %v10040_v14 = vld [vmem:[#allocation6 + $0x39c] sm:$0xf0] }
 0x60d   :  { %6178 = vmatpush.bf16.msra.mxu0 %v9272_v47  ;;  %v9285_v47 = vld [vmem:[#allocation6 + $0x3b8] sm:$0xf] }
 0x617   :  { %9197 = vmatmul.msk.bf16.vlgmr.msra.gmra.mxu2 %vm5864_vm12, %v5827_v59  ;;  %v9268_v59 = vor.u32 %v10037_v18, %v9267_v15  ;;  %v10041_v15 = vld [vmem:[#allocation6 + $0x3cc] sm:$0xf0] }
 0x618   :  { %v9286_v18 = vor.u32 %v10041_v15, %v9285_v47 }
 0x619   :  { %6179 = vmatpush.bf16.msra.mxu0 %v9268_v59  ;;  %v9281_v59 = vld [vmem:[#allocation6 + $0x388] sm:$0xf] }
 0x61a   :  { %v9282_v28 = vor.u32 %v10040_v14, %v9281_v59 }
 0x61d   :  { %6180 = vmatpush.bf16.msra.mxu0 %v9264_v52  ;;  %v6322_v52 = vld [vmem:[#allocation6 + $0x370] sm:$0x11] }
 0x61e   :  { %v6328_v53 = vunpack.c.h.b16 %v6322_v52 }
 0x620   :  { %v6330_v24 = vpack.c.b16 %v6328_v53, %v6328_v53 }
 0x621   :  { %6181 = vmatpush.bf16.msra.mxu0 %v9260_v54  ;;  %v10048_v54 = vld [vmem:[#allocation6 + $0x344] sm:$0xf] }
 0x685   :  { %v5916_v40 = vpop.f32.mrf.mxu0 }
 0x686   :  { %v10512_v9 = vadd.f32 %v5916_v40, %v10500_v44  ;;  %v6195_v40 = vpack.c.b16 %v6193_v60, %v6193_v60 }
 0x688   :  { %v6202_v36 = vsel %vm135_vm0, %v6195_v40, 0 }
 0x689   :  { %6214 = vmatpush.bf16.msra.mxu1 %v6202_v36  ;;  %v9346_v36 = vld [vmem:[#allocation6 + $0x4dc] sm:$0xf] }
 0x68a   :  { %v5890_v6 = vpop.f32.mrf.mxu2  ;;  %v5903_v7 = vpop.f32.mrf.mxu3 }
 0x68b   :  { %v5933_v12 = vadd.f32 %v5890_v6, %v10486_v23  ;;  %v10519_v16 = vadd.f32 %v5903_v7, %v10489_v61  ;;  %v10030_v23 = vld [vmem:[#allocation6 + $0x2e4] sm:$0xf]  ;;  %v9238_v61 = vld [vmem:[#allocation6 + $0x2f8] sm:$0xf0] }
 0x68c   :  { %v9241_v50 = vor.u32 %v10030_v23, %v9238_v61  ;;  %v6126_v23 = vld [vmem:[#allocation6 + $0x504] sm:$0x1] }
 0x68d   :  { %vm5937_vm13 = vcmp.gt.f32.partialorder %v5933_v12, 0.0  ;;  %v5938_v44 = vmul.f32 0.01, %v5933_v12  ;;  %v5918_v10 = vpop.f32.mrf.mxu0  ;;  %v6127_v11 = vunpack.c.l.bf16 %v6126_v23  ;;  %v9322_v23 = vld [vmem:[#allocation6 + $0x3bc] sm:$0xf] }
 0x68e   :  { %6097 = vmatpush.bf16.msrb.mxu2 %v9241_v50  ;;  %v6194_v10 = vunpack.c.h.b16 %v6191_v39 }
 0x68f   :  { %v5939_v51 = vsel %vm5937_vm13, %v5933_v12, %v5938_v44  ;;  %v6128_v61 = vperm.slane %v6127_v11, 0  ;;  %v10050_v11 = vld [vmem:[#allocation6 + $0x3d0] sm:$0xf0] }
 0x690   :  { %v5940_v19 = vpack.c.bf16 %v5939_v51, %v5939_v51  ;;  %v6196_v51 = vpack.c.b16 %v6194_v10, %v6194_v10 }
 0x692   :  { %v5892_v13 = vpop.f32.mrf.mxu2  ;;  %v5905_v30 = vpop.f32.mrf.mxu3  ;;  %6016 = vmatmul.bf16.vlgmr.msra.gmra.mxu3 %v5940_v19  ;;  %v6205_v19 = vsel %vm135_vm0, %v6196_v51, 0 }
 0x693   :  { %6227 = vmatpush.bf16.msra.mxu2 %v6205_v19  ;;  %v9305_v13 = vld [vmem:[#allocation6 + $0x4a8] sm:$0xf] }
 0x69a   :  { %v5929_v25 = vpop.f32.mrf.mxu2 }
 0x69b   :  { %v10522_v17 = vadd.f32 %v5929_v25, %v10497_v63  ;;  %v10046_v25 = vld [vmem:[#allocation6 + $0x4bc] sm:$0xf0] }
 0x6a2   :  { %v5931_v29 = vpop.f32.mrf.mxu2 }
 0x6a3   :  { %v9306_v29 = vor.u32 %v10046_v25, %v9305_v13  ;;  %v9330_v13 = vld [vmem:[#allocation6 + $0x41c] sm:$0xf]  ;;  %v10052_v25 = vld [vmem:[#allocation6 + $0x430] sm:$0xf0] }
 0x715   :  { %v6017_v37 = vpop.f32.mrf.mxu3 }
 0x716   :  { %v6018_v20 = vadd.f32 %v6017_v37, %v5959_v32  ;;  %v9297_v37 = vld [vmem:[#allocation6 + $0x448] sm:$0xf] }
 0x718   :  { %v6021_v42 = vpack.c.bf16 %v6018_v20, %v6018_v20  ;;  %6445 = vrot.lane.b32.xlu2 %v6018_v20, %s10162_s11  ;;  %v10044_v20 = vld [vmem:[#allocation6 + $0x45c] sm:$0xf0] }
 0x71a   :  { %9242 = vmatmul.msk.bf16.vlgmr.msrb.gmra.mxu0 %vm5864_vm12, %v6021_v42  ;;  %9243 = vmatmul.msk.bf16.vlgmr.msrb.gmra.mxu1 %vm5864_vm12, %v6021_v42 }
 0x71b   :  { %9244 = vmatmul.msk.bf16.vlgmr.msrb.gmra.mxu2 %vm5864_vm12, %v6021_v42  ;;  %v9293_v42 = vld [vmem:[#allocation6 + $0x418] sm:$0xf] }
 0x71c   :  { %v9294_v8 = vor.u32 %v10043_v43, %v9293_v42 }
 0x71d   :  { %v6019_v63 = vpop.f32.mrf.mxu3 }
 0x71e   :  { %v9298_v63 = vor.u32 %v10044_v20, %v9297_v37 }
 0x720   :  { %6449 = vrot.lane.b32.xlu2 %v10503_v48, %s10163_s12  ;;  %v9255_v48 = vld [vmem:[#allocation6 + $0x3e4] sm:$0xf] }
 0x721   :  { %v9256_v38 = vor.u32 %v10034_v56, %v9255_v48  ;;  %v9311_v48 = vld [vmem:[#allocation6 + $0x358] sm:$0xf0]  ;;  %v6336_v56 = vsel %vm5868_vm10, %v6330_v24, 0 }
 0x722   :  { %6344 = vmatpush.bf16.msrb.mxu1 %v6336_v56 }
 0x723   :  { %6182 = vmatpush.bf16.msra.mxu0 %v9256_v38  ;;  %v9314_v38 = vor.u32 %v10048_v54, %v9311_v48 }
 0x726   :  { %6345 = vmatpush.bf16.msrb.mxu1 %v9314_v38 }
 0x727   :  { %6183 = vmatpush.bf16.msra.mxu0 %v9252_v55 }
 0x72b   :  { %6184 = vmatpush.bf16.msra.mxu0 %v9248_v41 }
 0x772   :  { %v6446_v34 = vpop.permute.xlu2 %6445 }
 0x797   :  { %v6073_v33 = vpop.f32.mrf.mxu0  ;;  %v6086_v62 = vpop.f32.mrf.mxu1 }
 0x798   :  { %v6103_v21 = vadd.f32 %v6073_v33, %v10519_v16  ;;  %v10531_v1 = vadd.f32 %v6086_v62, %v10512_v9  ;;  %v9309_v16 = vld [vmem:[#allocation6 + $0x4d8] sm:$0xf]  ;;  %v10047_v9 = vld [vmem:[#allocation6 + $0x4ec] sm:$0xf0]  ;;  %v10056_v33 = vld [vmem:[#allocation6 + $0x4f0] sm:$0xf0] }
 0x799   :  { %v9310_v30 = vor.u32 %v10047_v9, %v9309_v16  ;;  %v9342_v62 = vld [vmem:[#allocation6 + $0x4ac] sm:$0xf]  ;;  %v10053_v9 = vld [vmem:[#allocation6 + $0x460] sm:$0xf0] }
 0x79a   :  { %vm6106_vm14 = vcmp.gt.f32.partialorder %v6103_v21, 0.0  ;;  %v6107_v2 = vmul.f32 0.01, %v6103_v21  ;;  %v9334_v16 = vld [vmem:[#allocation6 + $0x44c] sm:$0xf] }
 0x79b   :  { %6306 = vmatpush.bf16.msrb.mxu3 %v9310_v30  ;;  %v9335_v30 = vor.u32 %v10053_v9, %v9334_v16 }
 0x79c   :  { %v6108_v31 = vsel %vm6106_vm14, %v6103_v21, %v6107_v2  ;;  %v9347_v21 = vor.u32 %v10056_v33, %v9346_v36  ;;  %v10055_v2 = vld [vmem:[#allocation6 + $0x4c0] sm:$0xf0] }
 0x79d   :  { %v6109_v0 = vpack.c.bf16 %v6108_v31, %v6108_v31  ;;  %v9343_v31 = vor.u32 %v10055_v2, %v9342_v62 }
 0x79e   :  { %v6099_v3 = vpop.f32.mrf.mxu2  ;;  %6423 = vmatpush.bf16.msrb.mxu2 %v9347_v21 }
 0x79f   :  { %v10534_v6 = vadd.f32 %v6099_v3, %v10522_v17  ;;  %v6075_v7 = vpop.f32.mrf.mxu0  ;;  %v6088_v12 = vpop.f32.mrf.mxu1  ;;  %6185 = vmatmul.bf16.vlgmr.msra.gmra.mxu0 %v6109_v0  ;;  %6307 = vmatpush.bf16.msrb.mxu3 %v9306_v29  ;;  %v9302_v17 = vor.u32 %v10045_v5, %v9301_v4  ;;  %v9338_v0 = vld [vmem:[#allocation6 + $0x47c] sm:$0xf]  ;;  %v10054_v3 = vld [vmem:[#allocation6 + $0x490] sm:$0xf0]  ;;  %v9331_v29 = vor.u32 %v10052_v25, %v9330_v13  ;;  %v9326_v4 = vld [vmem:[#allocation6 + $0x3ec] sm:$0xf] }
 0x7a0   :  { %v6255_v7 = vld [vmem:[#allocation6 + $0x508] sm:$0x1]  ;;  %v10051_v5 = vld [vmem:[#allocation6 + $0x400] sm:$0xf0] }
 0x7a1   :  { %v6256_v12 = vunpack.c.l.bf16 %v6255_v7 }
 0x7a2   :  { %6424 = vmatpush.bf16.msrb.mxu2 %v9343_v31 }
 0x7a3   :  { %6308 = vmatpush.bf16.msrb.mxu3 %v9302_v17  ;;  %v9327_v17 = vor.u32 %v10051_v5, %v9326_v4 }
 0x7a6   :  { %v6101_v44 = vpop.f32.mrf.mxu2 }
 0x7a7   :  { %6309 = vmatpush.bf16.msrb.mxu3 %v9298_v63  ;;  %v6257_v44 = vperm.slane %v6256_v12, 0 }
 0x7ab   :  { %6310 = vmatpush.bf16.msrb.mxu3 %v9294_v8  ;;  %v6372_v8 = vld [vmem:[#allocation6 + $0x50c] sm:$0x1] }
 0x7ac   :  { %v6373_v45 = vunpack.c.l.bf16 %v6372_v8 }
 0x7ae   :  { %v6374_v47 = vperm.slane %v6373_v45, 0 }
 0x7af   :  { %6311 = vmatpush.bf16.msrb.mxu3 %v9290_v46 }
 0x7b3   :  { %6312 = vmatpush.bf16.msrb.mxu3 %v9286_v18 }
 0x7b7   :  { %6313 = vmatpush.bf16.msrb.mxu3 %v9282_v28  ;;  %v6450_v28 = vpop.permute.xlu2 %6449 }
 0x81c   :  { %v6186_v50 = vpop.f32.mrf.mxu0 }
 0x81d   :  { %v6187_v35 = vadd.f32 %v6186_v50, %v6128_v61  ;;  %v9323_v61 = vor.u32 %v10050_v11, %v9322_v23  ;;  %v9318_v50 = vld [vmem:[#allocation6 + $0x38c] sm:$0xf] }
 0x81f   :  { %v6190_v27 = vpack.c.bf16 %v6187_v35, %v6187_v35  ;;  %6441 = vrot.lane.b32.xlu1 %v6187_v35, %s10155_s24  ;;  %v10049_v35 = vld [vmem:[#allocation6 + $0x3a0] sm:$0xf0] }
 0x821   :  { %9277 = vmatmul.msk.bf16.vlgmr.msra.gmra.mxu1 %vm6197_vm15, %v6190_v27  ;;  %9278 = vmatmul.msk.bf16.vlgmr.msra.gmra.mxu2 %vm6197_vm15, %v6190_v27  ;;  %v9319_v27 = vor.u32 %v10049_v35, %v9318_v50 }
 0x824   :  { %v6188_v32 = vpop.f32.mrf.mxu0 }
 0x891   :  { %v6442_v43 = vpop.permute.xlu1 %6441 }
 0x89e   :  { %v6216_v57 = vpop.f32.mrf.mxu1 }
 0x89f   :  { %v6233_v49 = vadd.f32 %v6216_v57, %v10531_v1  ;;  %v9339_v1 = vor.u32 %v10054_v3, %v9338_v0 }
 0x8a1   :  { %vm6235_vm0 = vcmp.gt.f32.partialorder %v6233_v49, 0.0  ;;  %v6236_v55 = vmul.f32 0.01, %v6233_v49  ;;  %6425 = vmatpush.bf16.msrb.mxu2 %v9339_v1 }
 0x8a3   :  { %v6237_v58 = vsel %vm6235_vm0, %v6233_v49, %v6236_v55 }
 0x8a4   :  { %v6238_v22 = vpack.c.bf16 %v6237_v58, %v6237_v58  ;;  %v6229_v41 = vpop.f32.mrf.mxu2 }
 0x8a5   :  { %v6234_v39 = vadd.f32 %v6229_v41, %v10534_v6  ;;  %6426 = vmatpush.bf16.msrb.mxu2 %v9335_v30 }
 0x8a6   :  { %v6218_v60 = vpop.f32.mrf.mxu1  ;;  %6314 = vmatmul.bf16.vlgmr.msrb.gmra.mxu3 %v6238_v22 }
 0x8a9   :  { %6427 = vmatpush.bf16.msrb.mxu2 %v9331_v29 }
 0x8ac   :  { %v6231_v40 = vpop.f32.mrf.mxu2 }
 0x8ad   :  { %6428 = vmatpush.bf16.msrb.mxu2 %v9327_v17 }
 0x8b1   :  { %6429 = vmatpush.bf16.msrb.mxu2 %v9323_v61 }
 0x8b5   :  { %6430 = vmatpush.bf16.msrb.mxu2 %v9319_v27 }
 0x929   :  { %v6315_v10 = vpop.f32.mrf.mxu3 }
 0x92a   :  { %v6316_v6 = vadd.f32 %v6315_v10, %v6257_v44 }
 0x92c   :  { %v6319_v51 = vpack.c.bf16 %v6316_v6, %v6316_v6  ;;  %6437 = vrot.lane.b32.xlu1 %v6316_v6, %s10164_s13 }
 0x92e   :  { %9315 = vmatmul.msk.bf16.vlgmr.msrb.gmra.mxu1 %vm5864_vm12, %v6319_v51 }
 0x931   :  { %v6317_v19 = vpop.f32.mrf.mxu3 }
 0x934   :  { %6453 = vrot.lane.b32.xlu1 %v10480_v26, %s10165_s14 }
 0x99e   :  { %v6438_v46 = vpop.permute.xlu1 %6437 }
 0x9a6   :  { %v6454_v53 = vpop.permute.xlu1 %6453 }
 0x9ab   :  { %v6347_v26 = vpop.f32.mrf.mxu1 }
 0x9ac   :  { %v6351_v32 = vadd.f32 %v6347_v26, %v6234_v39 }
 0x9ae   :  { %vm6352_vm1 = vcmp.gt.f32.partialorder %v6351_v32, 0.0  ;;  %v6353_v37 = vmul.f32 0.01, %v6351_v32 }
 0x9b0   :  { %v6354_v20 = vsel %vm6352_vm1, %v6351_v32, %v6353_v37 }
 0x9b1   :  { %v6355_v42 = vpack.c.bf16 %v6354_v20, %v6354_v20 }
 0x9b3   :  { %v6349_v63 = vpop.f32.mrf.mxu1  ;;  %6431 = vmatmul.bf16.vlgmr.msrb.gmra.mxu2 %v6355_v42 }
 0xa36   :  { %v6432_v15 = vpop.f32.mrf.mxu2 }
 0xa37   :  { %v6433_v18 = vadd.f32 %v6432_v15, %v6374_v47 }
 0xa39   :  { %v6456_v59 = vsel %vm5864_vm12, %v6433_v18, %v6438_v46 }
 0xa3a   :  { %v6458_v14 = vsel %vm6457_vm2, %v6456_v59, %v6442_v43 }
 0xa3b   :  { %v6460_v52 = vsel %vm6459_vm3, %v6458_v14, %v6446_v34 }
 0xa3c   :  { %v6462_v24 = vsel %vm6461_vm4, %v6460_v52, %v6450_v28 }
 0xa3d   :  { %v6464_v54 = vsel %vm6463_vm5, %v6462_v24, %v6454_v53 }
 0xa3e   :  { %v6466_v48 = vsel %vm6465_vm6, %v6464_v54, 0.0  ;;  %v6434_v56 = vpop.f32.mrf.mxu2 }
 0xa3f   :  { %6467 = vst [vmem:[%s10551_s4] sm:$0x3] %v6466_v48 }
 0xa40   :  { %6473 = vsyncpa [#allocation3], 1 }
 0xa41   :  { %6474 = vsyncpa [#allocation5], 1 }

</bundles_post_ra>
